<compile_context>
chip_gen: v5e
topology: v5e:2x2
jax: 0.10.0
libtpu: 0.0.40
codegen_flags: <defaults>
</compile_context>

<pallas_src>
import functools

import jax
import jax.numpy as jnp
from jax.experimental import pallas as pl
from jax.experimental.pallas import tpu as pltpu


# ----------------------------- linear kernel --------------------------------
def _linear_kernel(x_ref, w_ref, b_ref, o_ref):
    # x: (TILE_M, Cin), w: (Cin, Cout), b: (1, Cout) -> o: (TILE_M, Cout)
    acc = jnp.dot(x_ref[...], w_ref[...], preferred_element_type=jnp.float32)
    o_ref[...] = (acc + b_ref[...]).astype(o_ref.dtype)


def pallas_linear(x2d, w, b, *, tile_m=256):
    m, cin = x2d.shape
    cout = w.shape[1]
    tile_m = max(8, min(tile_m, m))
    mp = pl.cdiv(m, tile_m) * tile_m
    if mp != m:
        x2d = jnp.pad(x2d, ((0, mp - m), (0, 0)))
    out = pl.pallas_call(
        _linear_kernel,
        out_shape=jax.ShapeDtypeStruct((mp, cout), x2d.dtype),
        grid=(mp // tile_m,),
        in_specs=[
            pl.BlockSpec((tile_m, cin), lambda i: (i, 0)),
            pl.BlockSpec((cin, cout), lambda i: (0, 0)),
            pl.BlockSpec((1, cout), lambda i: (0, 0)),
        ],
        out_specs=pl.BlockSpec((tile_m, cout), lambda i: (i, 0)),
        compiler_params=pltpu.CompilerParams(
            dimension_semantics=("parallel",)),
    )(x2d, w, b.reshape(1, cout))
    return out[:m] if mp != m else out


# ------------------------ neighborhood attention kernel ----------------------
def _nat_kernel(q_ref, k_ref, v_ref, rmat_ref, bmat_ref, amat_ref, rpb_ref,
                o_ref, *, kernel_size):
    # q/k/v/o blocks: (1, nh*H, L) with L = W*head_dim on the lane axis.
    # rmat/bmat: (ks, L, L); amat: (ks, nh*H, nh*H) block-diag per head;
    # rpb: (ks*ks, nh*H, 1) per-row bias.
    ks = kernel_size
    q = q_ref[0]                              # (nh*H, L) f32, lane dense
    k = k_ref[0]
    v = v_ref[0]

    t = q * k                                 # full-lane VPU multiply

    # u_j[r, w*hd+d] = scale * sum_d' (q.k)[r, ((w+j*dil)%W)*hd + d']
    # (W shift + head_dim reduce + replicate over head lanes + scale, all one
    #  MXU matmul per j)
    u = [jnp.dot(t, rmat_ref[j], preferred_element_type=jnp.float32)
         for j in range(ks)]
    # W-shifted copies of v (pure lane permutation on the MXU); j=0 is id.
    vs = [v] + [jnp.dot(v, bmat_ref[j], preferred_element_type=jnp.float32)
                for j in range(1, ks)]

    def rshift(x, i):
        # circular shift by -i*dilation along H inside every head block
        if i == 0:
            return x
        return jnp.dot(amat_ref[i], x, preferred_element_type=jnp.float32)

    def logit(i, j):
        return rshift(u[j], i) + rpb_ref[i * ks + j]

    # ---- pass 1: per-position max over the ks*ks neighborhood --------------
    m = logit(0, 0)
    for i in range(ks):
        for j in range(ks):
            if i or j:
                m = jnp.maximum(m, logit(i, j))

    # ---- pass 2: exp + unnormalized V accumulation --------------------------
    # Logits are recomputed from the resident u_j (cheap MXU shifts) rather
    # than kept live -> small vreg working set at the nh*H tile size.
    den = jnp.zeros_like(m)
    acc = jnp.zeros_like(v)
    for i in range(ks):
        for j in range(ks):
            e = jnp.exp(logit(i, j) - m)        # EUP
            den = den + e
            acc = acc + e * rshift(vs[j], i)    # full-lane FMA

    # TODO(synk): attn_drop is nn.Dropout(0.0) -> identity; no dropout.
    o_ref[0] = (acc * pl.reciprocal(den, approx=True)).astype(o_ref.dtype)


def _build_shift_mats(h, w, hd, nh, kernel_size, dilation, scale):
    """Precompute the shift / reduce matrices used inside the kernel."""
    lane = w * hd
    rows = nh * h
    li = jnp.arange(lane)
    w_of, d_of = li // hd, li % hd
    wa, wb = w_of[:, None], w_of[None, :]
    da, db = d_of[:, None], d_of[None, :]
    rj, bj = [], []
    for j in range(kernel_size):
        tgt = (wb + j * dilation) % w
        # R_j[a, b] = scale  iff input lane a belongs to column (w_b + j*dil)%W
        rj.append(jnp.where(wa == tgt, jnp.float32(scale), 0.0))
        # B_j[a, b] = 1      iff same as above and same head-dim channel
        bj.append(jnp.where((wa == tgt) & (da == db), 1.0, 0.0))
    ri = jnp.arange(rows)
    head_of, r_of = ri // h, ri % h
    ai = []
    for i in range(kernel_size):
        # A_i[a, b] = 1 iff same head and row(b) == (row(a) + i*dil) % H
        src = (r_of[:, None] + i * dilation) % h
        ai.append(jnp.where((head_of[None, :] == head_of[:, None]) &
                            (r_of[None, :] == src), 1.0, 0.0))
    return (jnp.stack(rj).astype(jnp.float32),
            jnp.stack(bj).astype(jnp.float32),
            jnp.stack(ai).astype(jnp.float32))


def neighborhood_attention(q, k, v, rpb_e, shift_mats, *, kernel_size):
    b, rows, lane = q.shape
    rmat, bmat, amat = shift_mats
    ks = kernel_size
    qkv_spec = pl.BlockSpec((1, rows, lane), lambda bi: (bi, 0, 0))
    const3 = lambda bi: (0, 0, 0)
    kern = functools.partial(_nat_kernel, kernel_size=ks)
    return pl.pallas_call(
        kern,
        out_shape=jax.ShapeDtypeStruct((b, rows, lane), q.dtype),
        grid=(b,),
        in_specs=[
            qkv_spec, qkv_spec, qkv_spec,                       # q, k, v
            pl.BlockSpec((ks, lane, lane), const3),             # rmat
            pl.BlockSpec((ks, lane, lane), const3),             # bmat
            pl.BlockSpec((ks, rows, rows), const3),             # amat
            pl.BlockSpec((ks * ks, rows, 1), const3),           # rpb bias
        ],
        out_specs=qkv_spec,
        compiler_params=pltpu.CompilerParams(
            dimension_semantics=("parallel",)),
    )(q, k, v, rmat, bmat, amat, rpb_e)


# ------------------------------ module glue ----------------------------------
def init_params(key, dim, kernel_size, num_heads):
    k1, k2, k3, k4, k5 = jax.random.split(key, 5)
    return {
        # torch Linear weights are stored (out_features, in_features)
        "qkv_w": 0.02 * jax.random.normal(k1, (3 * dim, dim), jnp.float32),
        "qkv_b": 0.02 * jax.random.normal(k2, (3 * dim,), jnp.float32),
        "proj_w": 0.02 * jax.random.normal(k3, (dim, dim), jnp.float32),
        "proj_b": 0.02 * jax.random.normal(k4, (dim,), jnp.float32),
        # trunc_normal_(std=0.02, a=-2, b=2)
        "rpb": 0.02 * jax.random.truncated_normal(
            k5, -2.0, 2.0, (num_heads, 1, 1, kernel_size, kernel_size),
            jnp.float32),
    }


def nat2d_forward(params, x, *, dim, kernel_size, num_heads, dilation=1):
    head_dim = dim // num_heads
    scale = head_dim ** (-0.5)
    window = kernel_size * dilation
    b, c, h, w = x.shape
    pad_r = pad_b = 0
    if h < window or w < window:
        pad_r = max(0, window - w)
        pad_b = max(0, window - h)
        x = jnp.pad(x, ((0, 0), (0, 0), (0, pad_b), (0, pad_r)))
        h, w = x.shape[2], x.shape[3]

    xh = jnp.transpose(x, (0, 2, 3, 1))                          # (B, H, W, C)
    qkv = pallas_linear(xh.reshape(b * h * w, c),
                        params["qkv_w"].T, params["qkv_b"])      # (BHW, 3C)
    qkv = qkv.reshape(b, h, w, 3, num_heads, head_dim)
    qkv = jnp.transpose(qkv, (3, 0, 4, 1, 2, 5))                 # (3,B,nh,H,W,hd)
    rows = num_heads * h                                         # heads on sublanes
    lane = w * head_dim                                          # lane-dense minor dim
    q = qkv[0].reshape(b, rows, lane)
    k = qkv[1].reshape(b, rows, lane)
    v = qkv[2].reshape(b, rows, lane)

    ks = kernel_size
    # per-row bias: rpb_e[i*ks+j, head*H + r, 0] = rpb[head, i, j]
    rpb_e = jnp.repeat(
        params["rpb"].reshape(num_heads, ks * ks).T, h, axis=1
    )[..., None].astype(jnp.float32)                             # (ks*ks, nh*H, 1)
    shift_mats = _build_shift_mats(h, w, head_dim, num_heads, ks, dilation,
                                   scale)

    out = neighborhood_attention(q, k, v, rpb_e, shift_mats,
                                 kernel_size=ks)                 # (B, nh*H, W*hd)
    out = out.reshape(b, num_heads, h, w, head_dim)
    out = jnp.transpose(out, (0, 2, 3, 1, 4)).reshape(b, h, w, dim)
    if pad_r or pad_b:
        out = out[:, :h - pad_b, :w - pad_r, :]
    ho, wo = out.shape[1], out.shape[2]
    out = pallas_linear(out.reshape(b * ho * wo, dim),
                        params["proj_w"].T, params["proj_b"])
    out = out.reshape(b, ho, wo, dim)
    # TODO(synk): proj_drop is nn.Dropout(0.0) -> identity; no dropout applied.
    return jnp.transpose(out, (0, 3, 1, 2))                      # NCHW


# --------------------------- pure-JAX reference -------------------------------
def nat2d_reference(params, x, *, dim, kernel_size, num_heads, dilation=1):
    head_dim = dim // num_heads
    scale = head_dim ** (-0.5)
    window = kernel_size * dilation
    b, c, h, w = x.shape
    pad_r = pad_b = 0
    if h < window or w < window:
        pad_r = max(0, window - w)
        pad_b = max(0, window - h)
        x = jnp.pad(x, ((0, 0), (0, 0), (0, pad_b), (0, pad_r)))
        h, w = x.shape[2], x.shape[3]
    xh = jnp.transpose(x, (0, 2, 3, 1))
    qkv = xh @ params["qkv_w"].T + params["qkv_b"]
    qkv = qkv.reshape(b, h, w, 3, num_heads, head_dim)
    qkv = jnp.transpose(qkv, (3, 0, 4, 1, 2, 5))
    q, k, v = qkv[0] * scale, qkv[1], qkv[2]
    ks, dil = kernel_size, dilation
    rpb = params["rpb"]
    attn = jnp.zeros((b, num_heads, h, w, ks * ks), x.dtype)
    for i in range(ks):
        for j in range(ks):
            qs = jnp.roll(q, shift=(-i * dil, -j * dil), axis=(2, 3))
            ksft = jnp.roll(k, shift=(-i * dil, -j * dil), axis=(2, 3))
            a_ij = jnp.sum(qs * ksft, axis=-1) + rpb[:, :, :, i, j]
            attn = attn.at[:, :, :, :, i * ks + j].set(a_ij)
    attn = jax.nn.softmax(attn, axis=-1)
    out = jnp.zeros_like(v)
    for i in range(ks):
        for j in range(ks):
            vs = jnp.roll(v, shift=(-i * dil, -j * dil), axis=(2, 3))
            out = out + attn[:, :, :, :, i * ks + j][..., None] * vs
    out = jnp.transpose(out, (0, 2, 3, 1, 4)).reshape(b, h, w, dim)
    if pad_r or pad_b:
        out = out[:, :h - pad_b, :w - pad_r, :]
    out = out @ params["proj_w"].T + params["proj_b"]
    return jnp.transpose(out, (0, 3, 1, 2))


if __name__ == "__main__":
    dim, kernel_size, num_heads, dilation = 32, 3, 4, 1
    B, H, W = 2, 16, 16

    key = jax.random.PRNGKey(0)
    pkey, xkey = jax.random.split(key)
    params = init_params(pkey, dim, kernel_size, num_heads)
    x = jax.random.normal(xkey, (B, dim, H, W), jnp.float32)     # NCHW input

    fwd = jax.jit(functools.partial(nat2d_forward, dim=dim,
                                    kernel_size=kernel_size,
                                    num_heads=num_heads, dilation=dilation))
    out = jax.block_until_ready(fwd(params, x))
    assert out.shape == (B, dim, H, W), out.shape

    ref = nat2d_reference(params, x, dim=dim, kernel_size=kernel_size,
                          num_heads=num_heads, dilation=dilation)
    # tolerance 2e-3: MXU-based shift/reduce matmuls + approx reciprocal vs the
    # pure-f32 elementwise reference.
    err = float(jnp.max(jnp.abs(out - ref)))
    assert err < 2e-3, f"max abs err {err}"
    print("KERNEL_OK")
</pallas_src>

<mosaic_0001>
module attributes {stable_mosaic.version = 11 : i64} {
  func.func @_linear_kernel(%arg0: i32, %arg1: memref<256x32xf32, #tpu.memory_space<vmem>>, %arg2: memref<32x96xf32, #tpu.memory_space<vmem>>, %arg3: memref<1x96xf32, #tpu.memory_space<vmem>>, %arg4: memref<256x96xf32, #tpu.memory_space<vmem>>) attributes {dimension_semantics = [#tpu.dimension_semantics<parallel>], iteration_bounds = array<i64: 2>, scalar_prefetch = 0 : i64, scratch_operands = 0 : i64, tpu.core_type = #tpu.core_type<tc>, window_params = [{transform_indices = @transform_0, window_bounds = array<i64: 256, 32>}, {pipeline_mode = #tpu.pipeline_mode<synchronous>, transform_indices = @transform_1, window_bounds = array<i64: 32, 96>}, {pipeline_mode = #tpu.pipeline_mode<synchronous>, transform_indices = @transform_2, window_bounds = array<i64: 1, 96>}, {transform_indices = @transform_3, window_bounds = array<i64: 256, 96>}]} {
    %c0 = arith.constant 0 : index
    %c0_0 = arith.constant 0 : index
    %0 = vector.load %arg1[%c0, %c0_0] : memref<256x32xf32, #tpu.memory_space<vmem>>, vector<256x32xf32>
    %c0_1 = arith.constant 0 : index
    %c0_2 = arith.constant 0 : index
    %1 = vector.load %arg2[%c0_1, %c0_2] : memref<32x96xf32, #tpu.memory_space<vmem>>, vector<32x96xf32>
    %cst = arith.constant dense<0.000000e+00> : vector<256x96xf32>
    %2 = tpu.matmul %0, %1, %cst {dimension_numbers = #tpu.dot_dimension_numbers<[1], [0], [0], [1], [0, 0, 1, 1], [], []>} : vector<256x32xf32>, vector<32x96xf32>, vector<256x96xf32> -> vector<256x96xf32>
    %c0_3 = arith.constant 0 : index
    %c0_4 = arith.constant 0 : index
    %3 = vector.load %arg3[%c0_3, %c0_4] : memref<1x96xf32, #tpu.memory_space<vmem>>, vector<1x96xf32>
    %4 = vector.broadcast %3 : vector<1x96xf32> to vector<256x96xf32>
    %5 = arith.addf %2, %4 : vector<256x96xf32>
    %c0_5 = arith.constant 0 : index
    %c0_6 = arith.constant 0 : index
    %6 = vector.load %arg4[%c0_5, %c0_6] : memref<256x96xf32, #tpu.memory_space<vmem>>, vector<256x96xf32>
    tpu.vector_store %arg4[%c0_5, %c0_6], %5 {strides = array<i32>} : memref<256x96xf32, #tpu.memory_space<vmem>>, vector<256x96xf32>,
    return
  }
  func.func @transform_0(%arg0: i32) -> (i32, i32) {
    %c0_i32 = arith.constant 0 : i32
    %c0_i32_0 = arith.constant 0 : i32
    return %arg0, %c0_i32 : i32, i32
  }
  func.func @transform_1(%arg0: i32) -> (i32, i32) {
    %c0_i32 = arith.constant 0 : i32
    %c0_i32_0 = arith.constant 0 : i32
    %c0_i32_1 = arith.constant 0 : i32
    return %c0_i32, %c0_i32_0 : i32, i32
  }
  func.func @transform_2(%arg0: i32) -> (i32, i32) {
    %c0_i32 = arith.constant 0 : i32
    %c0_i32_0 = arith.constant 0 : i32
    %c0_i32_1 = arith.constant 0 : i32
    return %c0_i32, %c0_i32_0 : i32, i32
  }
  func.func @transform_3(%arg0: i32) -> (i32, i32) {
    %c0_i32 = arith.constant 0 : i32
    %c0_i32_0 = arith.constant 0 : i32
    return %arg0, %c0_i32 : i32, i32
  }
}

module attributes {stable_mosaic.version = 11 : i64} {
  func.func @_nat_kernel(%arg0: i32, %arg1: memref<1x64x128xf32, #tpu.memory_space<vmem>>, %arg2: memref<1x64x128xf32, #tpu.memory_space<vmem>>, %arg3: memref<1x64x128xf32, #tpu.memory_space<vmem>>, %arg4: memref<3x128x128xf32, #tpu.memory_space<vmem>>, %arg5: memref<3x128x128xf32, #tpu.memory_space<vmem>>, %arg6: memref<3x64x64xf32, #tpu.memory_space<vmem>>, %arg7: memref<9x64x1xf32, #tpu.memory_space<vmem>>, %arg8: memref<1x64x128xf32, #tpu.memory_space<vmem>>) attributes {dimension_semantics = [#tpu.dimension_semantics<parallel>], iteration_bounds = array<i64: 2>, scalar_prefetch = 0 : i64, scratch_operands = 0 : i64, tpu.core_type = #tpu.core_type<tc>, window_params = [{transform_indices = @transform_0, window_bounds = array<i64: 1, 64, 128>}, {transform_indices = @transform_1, window_bounds = array<i64: 1, 64, 128>}, {transform_indices = @transform_2, window_bounds = array<i64: 1, 64, 128>}, {pipeline_mode = #tpu.pipeline_mode<synchronous>, transform_indices = @transform_3, window_bounds = array<i64: 3, 128, 128>}, {pipeline_mode = #tpu.pipeline_mode<synchronous>, transform_indices = @transform_4, window_bounds = array<i64: 3, 128, 128>}, {pipeline_mode = #tpu.pipeline_mode<synchronous>, transform_indices = @transform_5, window_bounds = array<i64: 3, 64, 64>}, {pipeline_mode = #tpu.pipeline_mode<synchronous>, transform_indices = @transform_6, window_bounds = array<i64: 9, 64, 1>}, {transform_indices = @transform_7, window_bounds = array<i64: 1, 64, 128>}]} {
    %c0 = arith.constant 0 : index
    %c0_0 = arith.constant 0 : index
    %c0_1 = arith.constant 0 : index
    %0 = vector.load %arg1[%c0, %c0_0, %c0_1] : memref<1x64x128xf32, #tpu.memory_space<vmem>>, vector<1x64x128xf32>
    %1 = vector.shape_cast %0 : vector<1x64x128xf32> to vector<64x128xf32>
    %c0_2 = arith.constant 0 : index
    %c0_3 = arith.constant 0 : index
    %c0_4 = arith.constant 0 : index
    %2 = vector.load %arg2[%c0_2, %c0_3, %c0_4] : memref<1x64x128xf32, #tpu.memory_space<vmem>>, vector<1x64x128xf32>
    %3 = vector.shape_cast %2 : vector<1x64x128xf32> to vector<64x128xf32>
    %c0_5 = arith.constant 0 : index
    %c0_6 = arith.constant 0 : index
    %c0_7 = arith.constant 0 : index
    %4 = vector.load %arg3[%c0_5, %c0_6, %c0_7] : memref<1x64x128xf32, #tpu.memory_space<vmem>>, vector<1x64x128xf32>
    %5 = vector.shape_cast %4 : vector<1x64x128xf32> to vector<64x128xf32>
    %6 = arith.mulf %1, %3 : vector<64x128xf32>
    %c0_8 = arith.constant 0 : index
    %c0_9 = arith.constant 0 : index
    %c0_10 = arith.constant 0 : index
    %7 = vector.load %arg4[%c0_8, %c0_9, %c0_10] : memref<3x128x128xf32, #tpu.memory_space<vmem>>, vector<1x128x128xf32>
    %8 = vector.shape_cast %7 : vector<1x128x128xf32> to vector<128x128xf32>
    %cst = arith.constant dense<0.000000e+00> : vector<64x128xf32>
    %9 = tpu.matmul %6, %8, %cst {dimension_numbers = #tpu.dot_dimension_numbers<[1], [0], [0], [1], [0, 0, 1, 1], [], []>} : vector<64x128xf32>, vector<128x128xf32>, vector<64x128xf32> -> vector<64x128xf32>
    %c1 = arith.constant 1 : index
    %c0_11 = arith.constant 0 : index
    %c0_12 = arith.constant 0 : index
    %10 = vector.load %arg4[%c1, %c0_11, %c0_12] : memref<3x128x128xf32, #tpu.memory_space<vmem>>, vector<1x128x128xf32>
    %11 = vector.shape_cast %10 : vector<1x128x128xf32> to vector<128x128xf32>
    %cst_13 = arith.constant dense<0.000000e+00> : vector<64x128xf32>
    %12 = tpu.matmul %6, %11, %cst_13 {dimension_numbers = #tpu.dot_dimension_numbers<[1], [0], [0], [1], [0, 0, 1, 1], [], []>} : vector<64x128xf32>, vector<128x128xf32>, vector<64x128xf32> -> vector<64x128xf32>
    %c2 = arith.constant 2 : index
    %c0_14 = arith.constant 0 : index
    %c0_15 = arith.constant 0 : index
    %13 = vector.load %arg4[%c2, %c0_14, %c0_15] : memref<3x128x128xf32, #tpu.memory_space<vmem>>, vector<1x128x128xf32>
    %14 = vector.shape_cast %13 : vector<1x128x128xf32> to vector<128x128xf32>
    %cst_16 = arith.constant dense<0.000000e+00> : vector<64x128xf32>
    %15 = tpu.matmul %6, %14, %cst_16 {dimension_numbers = #tpu.dot_dimension_numbers<[1], [0], [0], [1], [0, 0, 1, 1], [], []>} : vector<64x128xf32>, vector<128x128xf32>, vector<64x128xf32> -> vector<64x128xf32>
    %c1_17 = arith.constant 1 : index
    %c0_18 = arith.constant 0 : index
    %c0_19 = arith.constant 0 : index
    %16 = vector.load %arg5[%c1_17, %c0_18, %c0_19] : memref<3x128x128xf32, #tpu.memory_space<vmem>>, vector<1x128x128xf32>
    %17 = vector.shape_cast %16 : vector<1x128x128xf32> to vector<128x128xf32>
    %cst_20 = arith.constant dense<0.000000e+00> : vector<64x128xf32>
    %18 = tpu.matmul %5, %17, %cst_20 {dimension_numbers = #tpu.dot_dimension_numbers<[1], [0], [0], [1], [0, 0, 1, 1], [], []>} : vector<64x128xf32>, vector<128x128xf32>, vector<64x128xf32> -> vector<64x128xf32>
    %c2_21 = arith.constant 2 : index
    %c0_22 = arith.constant 0 : index
    %c0_23 = arith.constant 0 : index
    %19 = vector.load %arg5[%c2_21, %c0_22, %c0_23] : memref<3x128x128xf32, #tpu.memory_space<vmem>>, vector<1x128x128xf32>
    %20 = vector.shape_cast %19 : vector<1x128x128xf32> to vector<128x128xf32>
    %cst_24 = arith.constant dense<0.000000e+00> : vector<64x128xf32>
    %21 = tpu.matmul %5, %20, %cst_24 {dimension_numbers = #tpu.dot_dimension_numbers<[1], [0], [0], [1], [0, 0, 1, 1], [], []>} : vector<64x128xf32>, vector<128x128xf32>, vector<64x128xf32> -> vector<64x128xf32>
    %c0_25 = arith.constant 0 : index
    %c0_26 = arith.constant 0 : index
    %c0_27 = arith.constant 0 : index
    %22 = vector.load %arg7[%c0_25, %c0_26, %c0_27] : memref<9x64x1xf32, #tpu.memory_space<vmem>>, vector<1x64x1xf32>
    %23 = vector.shape_cast %22 : vector<1x64x1xf32> to vector<64x1xf32>
    %24 = vector.broadcast %23 : vector<64x1xf32> to vector<64x128xf32>
    %25 = arith.addf %9, %24 : vector<64x128xf32>
    %c1_28 = arith.constant 1 : index
    %c0_29 = arith.constant 0 : index
    %c0_30 = arith.constant 0 : index
    %26 = vector.load %arg7[%c1_28, %c0_29, %c0_30] : memref<9x64x1xf32, #tpu.memory_space<vmem>>, vector<1x64x1xf32>
    %27 = vector.shape_cast %26 : vector<1x64x1xf32> to vector<64x1xf32>
    %28 = vector.broadcast %27 : vector<64x1xf32> to vector<64x128xf32>
    %29 = arith.addf %12, %28 : vector<64x128xf32>
    %30 = arith.maximumf %25, %29 : vector<64x128xf32>
    %c2_31 = arith.constant 2 : index
    %c0_32 = arith.constant 0 : index
    %c0_33 = arith.constant 0 : index
    %31 = vector.load %arg7[%c2_31, %c0_32, %c0_33] : memref<9x64x1xf32, #tpu.memory_space<vmem>>, vector<1x64x1xf32>
    %32 = vector.shape_cast %31 : vector<1x64x1xf32> to vector<64x1xf32>
    %33 = vector.broadcast %32 : vector<64x1xf32> to vector<64x128xf32>
    %34 = arith.addf %15, %33 : vector<64x128xf32>
    %35 = arith.maximumf %30, %34 : vector<64x128xf32>
    %c1_34 = arith.constant 1 : index
    %c0_35 = arith.constant 0 : index
    %c0_36 = arith.constant 0 : index
    %36 = vector.load %arg6[%c1_34, %c0_35, %c0_36] : memref<3x64x64xf32, #tpu.memory_space<vmem>>, vector<1x64x64xf32>
    %37 = vector.shape_cast %36 : vector<1x64x64xf32> to vector<64x64xf32>
    %cst_37 = arith.constant dense<0.000000e+00> : vector<64x128xf32>
    %38 = tpu.matmul %37, %9, %cst_37 {dimension_numbers = #tpu.dot_dimension_numbers<[1], [0], [0], [1], [0, 0, 1, 1], [], []>} : vector<64x64xf32>, vector<64x128xf32>, vector<64x128xf32> -> vector<64x128xf32>
    %c3 = arith.constant 3 : index
    %c0_38 = arith.constant 0 : index
    %c0_39 = arith.constant 0 : index
    %39 = vector.load %arg7[%c3, %c0_38, %c0_39] : memref<9x64x1xf32, #tpu.memory_space<vmem>>, vector<1x64x1xf32>
    %40 = vector.shape_cast %39 : vector<1x64x1xf32> to vector<64x1xf32>
    %41 = vector.broadcast %40 : vector<64x1xf32> to vector<64x128xf32>
    %42 = arith.addf %38, %41 : vector<64x128xf32>
    %43 = arith.maximumf %35, %42 : vector<64x128xf32>
    %c1_40 = arith.constant 1 : index
    %c0_41 = arith.constant 0 : index
    %c0_42 = arith.constant 0 : index
    %44 = vector.load %arg6[%c1_40, %c0_41, %c0_42] : memref<3x64x64xf32, #tpu.memory_space<vmem>>, vector<1x64x64xf32>
    %45 = vector.shape_cast %44 : vector<1x64x64xf32> to vector<64x64xf32>
    %cst_43 = arith.constant dense<0.000000e+00> : vector<64x128xf32>
    %46 = tpu.matmul %45, %12, %cst_43 {dimension_numbers = #tpu.dot_dimension_numbers<[1], [0], [0], [1], [0, 0, 1, 1], [], []>} : vector<64x64xf32>, vector<64x128xf32>, vector<64x128xf32> -> vector<64x128xf32>
    %c4 = arith.constant 4 : index
    %c0_44 = arith.constant 0 : index
    %c0_45 = arith.constant 0 : index
    %47 = vector.load %arg7[%c4, %c0_44, %c0_45] : memref<9x64x1xf32, #tpu.memory_space<vmem>>, vector<1x64x1xf32>
    %48 = vector.shape_cast %47 : vector<1x64x1xf32> to vector<64x1xf32>
    %49 = vector.broadcast %48 : vector<64x1xf32> to vector<64x128xf32>
    %50 = arith.addf %46, %49 : vector<64x128xf32>
    %51 = arith.maximumf %43, %50 : vector<64x128xf32>
    %c1_46 = arith.constant 1 : index
    %c0_47 = arith.constant 0 : index
    %c0_48 = arith.constant 0 : index
    %52 = vector.load %arg6[%c1_46, %c0_47, %c0_48] : memref<3x64x64xf32, #tpu.memory_space<vmem>>, vector<1x64x64xf32>
    %53 = vector.shape_cast %52 : vector<1x64x64xf32> to vector<64x64xf32>
    %cst_49 = arith.constant dense<0.000000e+00> : vector<64x128xf32>
    %54 = tpu.matmul %53, %15, %cst_49 {dimension_numbers = #tpu.dot_dimension_numbers<[1], [0], [0], [1], [0, 0, 1, 1], [], []>} : vector<64x64xf32>, vector<64x128xf32>, vector<64x128xf32> -> vector<64x128xf32>
    %c5 = arith.constant 5 : index
    %c0_50 = arith.constant 0 : index
    %c0_51 = arith.constant 0 : index
    %55 = vector.load %arg7[%c5, %c0_50, %c0_51] : memref<9x64x1xf32, #tpu.memory_space<vmem>>, vector<1x64x1xf32>
    %56 = vector.shape_cast %55 : vector<1x64x1xf32> to vector<64x1xf32>
    %57 = vector.broadcast %56 : vector<64x1xf32> to vector<64x128xf32>
    %58 = arith.addf %54, %57 : vector<64x128xf32>
    %59 = arith.maximumf %51, %58 : vector<64x128xf32>
    %c2_52 = arith.constant 2 : index
    %c0_53 = arith.constant 0 : index
    %c0_54 = arith.constant 0 : index
    %60 = vector.load %arg6[%c2_52, %c0_53, %c0_54] : memref<3x64x64xf32, #tpu.memory_space<vmem>>, vector<1x64x64xf32>
    %61 = vector.shape_cast %60 : vector<1x64x64xf32> to vector<64x64xf32>
    %cst_55 = arith.constant dense<0.000000e+00> : vector<64x128xf32>
    %62 = tpu.matmul %61, %9, %cst_55 {dimension_numbers = #tpu.dot_dimension_numbers<[1], [0], [0], [1], [0, 0, 1, 1], [], []>} : vector<64x64xf32>, vector<64x128xf32>, vector<64x128xf32> -> vector<64x128xf32>
    %c6 = arith.constant 6 : index
    %c0_56 = arith.constant 0 : index
    %c0_57 = arith.constant 0 : index
    %63 = vector.load %arg7[%c6, %c0_56, %c0_57] : memref<9x64x1xf32, #tpu.memory_space<vmem>>, vector<1x64x1xf32>
    %64 = vector.shape_cast %63 : vector<1x64x1xf32> to vector<64x1xf32>
    %65 = vector.broadcast %64 : vector<64x1xf32> to vector<64x128xf32>
    %66 = arith.addf %62, %65 : vector<64x128xf32>
    %67 = arith.maximumf %59, %66 : vector<64x128xf32>
    %c2_58 = arith.constant 2 : index
    %c0_59 = arith.constant 0 : index
    %c0_60 = arith.constant 0 : index
    %68 = vector.load %arg6[%c2_58, %c0_59, %c0_60] : memref<3x64x64xf32, #tpu.memory_space<vmem>>, vector<1x64x64xf32>
    %69 = vector.shape_cast %68 : vector<1x64x64xf32> to vector<64x64xf32>
    %cst_61 = arith.constant dense<0.000000e+00> : vector<64x128xf32>
    %70 = tpu.matmul %69, %12, %cst_61 {dimension_numbers = #tpu.dot_dimension_numbers<[1], [0], [0], [1], [0, 0, 1, 1], [], []>} : vector<64x64xf32>, vector<64x128xf32>, vector<64x128xf32> -> vector<64x128xf32>
    %c7 = arith.constant 7 : index
    %c0_62 = arith.constant 0 : index
    %c0_63 = arith.constant 0 : index
    %71 = vector.load %arg7[%c7, %c0_62, %c0_63] : memref<9x64x1xf32, #tpu.memory_space<vmem>>, vector<1x64x1xf32>
    %72 = vector.shape_cast %71 : vector<1x64x1xf32> to vector<64x1xf32>
    %73 = vector.broadcast %72 : vector<64x1xf32> to vector<64x128xf32>
    %74 = arith.addf %70, %73 : vector<64x128xf32>
    %75 = arith.maximumf %67, %74 : vector<64x128xf32>
    %c2_64 = arith.constant 2 : index
    %c0_65 = arith.constant 0 : index
    %c0_66 = arith.constant 0 : index
    %76 = vector.load %arg6[%c2_64, %c0_65, %c0_66] : memref<3x64x64xf32, #tpu.memory_space<vmem>>, vector<1x64x64xf32>
    %77 = vector.shape_cast %76 : vector<1x64x64xf32> to vector<64x64xf32>
    %cst_67 = arith.constant dense<0.000000e+00> : vector<64x128xf32>
    %78 = tpu.matmul %77, %15, %cst_67 {dimension_numbers = #tpu.dot_dimension_numbers<[1], [0], [0], [1], [0, 0, 1, 1], [], []>} : vector<64x64xf32>, vector<64x128xf32>, vector<64x128xf32> -> vector<64x128xf32>
    %c8 = arith.constant 8 : index
    %c0_68 = arith.constant 0 : index
    %c0_69 = arith.constant 0 : index
    %79 = vector.load %arg7[%c8, %c0_68, %c0_69] : memref<9x64x1xf32, #tpu.memory_space<vmem>>, vector<1x64x1xf32>
    %80 = vector.shape_cast %79 : vector<1x64x1xf32> to vector<64x1xf32>
    %81 = vector.broadcast %80 : vector<64x1xf32> to vector<64x128xf32>
    %82 = arith.addf %78, %81 : vector<64x128xf32>
    %83 = arith.maximumf %75, %82 : vector<64x128xf32>
    %cst_70 = arith.constant 0.000000e+00 : f32
    %84 = vector.broadcast %cst_70 : f32 to vector<64x128xf32>
    %cst_71 = arith.constant 0.000000e+00 : f32
    %85 = vector.broadcast %cst_71 : f32 to vector<64x128xf32>
    %c0_72 = arith.constant 0 : index
    %c0_73 = arith.constant 0 : index
    %c0_74 = arith.constant 0 : index
    %86 = vector.load %arg7[%c0_72, %c0_73, %c0_74] : memref<9x64x1xf32, #tpu.memory_space<vmem>>, vector<1x64x1xf32>
    %87 = vector.shape_cast %86 : vector<1x64x1xf32> to vector<64x1xf32>
    %88 = vector.broadcast %87 : vector<64x1xf32> to vector<64x128xf32>
    %89 = arith.addf %9, %88 : vector<64x128xf32>
    %90 = arith.subf %89, %83 : vector<64x128xf32>
    %91 = math.exp %90 : vector<64x128xf32>
    %92 = arith.addf %84, %91 : vector<64x128xf32>
    %93 = arith.mulf %91, %5 : vector<64x128xf32>
    %94 = arith.addf %85, %93 : vector<64x128xf32>
    %c1_75 = arith.constant 1 : index
    %c0_76 = arith.constant 0 : index
    %c0_77 = arith.constant 0 : index
    %95 = vector.load %arg7[%c1_75, %c0_76, %c0_77] : memref<9x64x1xf32, #tpu.memory_space<vmem>>, vector<1x64x1xf32>
    %96 = vector.shape_cast %95 : vector<1x64x1xf32> to vector<64x1xf32>
    %97 = vector.broadcast %96 : vector<64x1xf32> to vector<64x128xf32>
    %98 = arith.addf %12, %97 : vector<64x128xf32>
    %99 = arith.subf %98, %83 : vector<64x128xf32>
    %100 = math.exp %99 : vector<64x128xf32>
    %101 = arith.addf %92, %100 : vector<64x128xf32>
    %102 = arith.mulf %100, %18 : vector<64x128xf32>
    %103 = arith.addf %94, %102 : vector<64x128xf32>
    %c2_78 = arith.constant 2 : index
    %c0_79 = arith.constant 0 : index
    %c0_80 = arith.constant 0 : index
    %104 = vector.load %arg7[%c2_78, %c0_79, %c0_80] : memref<9x64x1xf32, #tpu.memory_space<vmem>>, vector<1x64x1xf32>
    %105 = vector.shape_cast %104 : vector<1x64x1xf32> to vector<64x1xf32>
    %106 = vector.broadcast %105 : vector<64x1xf32> to vector<64x128xf32>
    %107 = arith.addf %15, %106 : vector<64x128xf32>
    %108 = arith.subf %107, %83 : vector<64x128xf32>
    %109 = math.exp %108 : vector<64x128xf32>
    %110 = arith.addf %101, %109 : vector<64x128xf32>
    %111 = arith.mulf %109, %21 : vector<64x128xf32>
    %112 = arith.addf %103, %111 : vector<64x128xf32>
    %c1_81 = arith.constant 1 : index
    %c0_82 = arith.constant 0 : index
    %c0_83 = arith.constant 0 : index
    %113 = vector.load %arg6[%c1_81, %c0_82, %c0_83] : memref<3x64x64xf32, #tpu.memory_space<vmem>>, vector<1x64x64xf32>
    %114 = vector.shape_cast %113 : vector<1x64x64xf32> to vector<64x64xf32>
    %cst_84 = arith.constant dense<0.000000e+00> : vector<64x128xf32>
    %115 = tpu.matmul %114, %9, %cst_84 {dimension_numbers = #tpu.dot_dimension_numbers<[1], [0], [0], [1], [0, 0, 1, 1], [], []>} : vector<64x64xf32>, vector<64x128xf32>, vector<64x128xf32> -> vector<64x128xf32>
    %c3_85 = arith.constant 3 : index
    %c0_86 = arith.constant 0 : index
    %c0_87 = arith.constant 0 : index
    %116 = vector.load %arg7[%c3_85, %c0_86, %c0_87] : memref<9x64x1xf32, #tpu.memory_space<vmem>>, vector<1x64x1xf32>
    %117 = vector.shape_cast %116 : vector<1x64x1xf32> to vector<64x1xf32>
    %118 = vector.broadcast %117 : vector<64x1xf32> to vector<64x128xf32>
    %119 = arith.addf %115, %118 : vector<64x128xf32>
    %120 = arith.subf %119, %83 : vector<64x128xf32>
    %121 = math.exp %120 : vector<64x128xf32>
    %122 = arith.addf %110, %121 : vector<64x128xf32>
    %c1_88 = arith.constant 1 : index
    %c0_89 = arith.constant 0 : index
    %c0_90 = arith.constant 0 : index
    %123 = vector.load %arg6[%c1_88, %c0_89, %c0_90] : memref<3x64x64xf32, #tpu.memory_space<vmem>>, vector<1x64x64xf32>
    %124 = vector.shape_cast %123 : vector<1x64x64xf32> to vector<64x64xf32>
    %cst_91 = arith.constant dense<0.000000e+00> : vector<64x128xf32>
    %125 = tpu.matmul %124, %5, %cst_91 {dimension_numbers = #tpu.dot_dimension_numbers<[1], [0], [0], [1], [0, 0, 1, 1], [], []>} : vector<64x64xf32>, vector<64x128xf32>, vector<64x128xf32> -> vector<64x128xf32>
    %126 = arith.mulf %121, %125 : vector<64x128xf32>
    %127 = arith.addf %112, %126 : vector<64x128xf32>
    %c1_92 = arith.constant 1 : index
    %c0_93 = arith.constant 0 : index
    %c0_94 = arith.constant 0 : index
    %128 = vector.load %arg6[%c1_92, %c0_93, %c0_94] : memref<3x64x64xf32, #tpu.memory_space<vmem>>, vector<1x64x64xf32>
    %129 = vector.shape_cast %128 : vector<1x64x64xf32> to vector<64x64xf32>
    %cst_95 = arith.constant dense<0.000000e+00> : vector<64x128xf32>
    %130 = tpu.matmul %129, %12, %cst_95 {dimension_numbers = #tpu.dot_dimension_numbers<[1], [0], [0], [1], [0, 0, 1, 1], [], []>} : vector<64x64xf32>, vector<64x128xf32>, vector<64x128xf32> -> vector<64x128xf32>
    %c4_96 = arith.constant 4 : index
    %c0_97 = arith.constant 0 : index
    %c0_98 = arith.constant 0 : index
    %131 = vector.load %arg7[%c4_96, %c0_97, %c0_98] : memref<9x64x1xf32, #tpu.memory_space<vmem>>, vector<1x64x1xf32>
    %132 = vector.shape_cast %131 : vector<1x64x1xf32> to vector<64x1xf32>
    %133 = vector.broadcast %132 : vector<64x1xf32> to vector<64x128xf32>
    %134 = arith.addf %130, %133 : vector<64x128xf32>
    %135 = arith.subf %134, %83 : vector<64x128xf32>
    %136 = math.exp %135 : vector<64x128xf32>
    %137 = arith.addf %122, %136 : vector<64x128xf32>
    %c1_99 = arith.constant 1 : index
    %c0_100 = arith.constant 0 : index
    %c0_101 = arith.constant 0 : index
    %138 = vector.load %arg6[%c1_99, %c0_100, %c0_101] : memref<3x64x64xf32, #tpu.memory_space<vmem>>, vector<1x64x64xf32>
    %139 = vector.shape_cast %138 : vector<1x64x64xf32> to vector<64x64xf32>
    %cst_102 = arith.constant dense<0.000000e+00> : vector<64x128xf32>
    %140 = tpu.matmul %139, %18, %cst_102 {dimension_numbers = #tpu.dot_dimension_numbers<[1], [0], [0], [1], [0, 0, 1, 1], [], []>} : vector<64x64xf32>, vector<64x128xf32>, vector<64x128xf32> -> vector<64x128xf32>
    %141 = arith.mulf %136, %140 : vector<64x128xf32>
    %142 = arith.addf %127, %141 : vector<64x128xf32>
    %c1_103 = arith.constant 1 : index
    %c0_104 = arith.constant 0 : index
    %c0_105 = arith.constant 0 : index
    %143 = vector.load %arg6[%c1_103, %c0_104, %c0_105] : memref<3x64x64xf32, #tpu.memory_space<vmem>>, vector<1x64x64xf32>
    %144 = vector.shape_cast %143 : vector<1x64x64xf32> to vector<64x64xf32>
    %cst_106 = arith.constant dense<0.000000e+00> : vector<64x128xf32>
    %145 = tpu.matmul %144, %15, %cst_106 {dimension_numbers = #tpu.dot_dimension_numbers<[1], [0], [0], [1], [0, 0, 1, 1], [], []>} : vector<64x64xf32>, vector<64x128xf32>, vector<64x128xf32> -> vector<64x128xf32>
    %c5_107 = arith.constant 5 : index
    %c0_108 = arith.constant 0 : index
    %c0_109 = arith.constant 0 : index
    %146 = vector.load %arg7[%c5_107, %c0_108, %c0_109] : memref<9x64x1xf32, #tpu.memory_space<vmem>>, vector<1x64x1xf32>
    %147 = vector.shape_cast %146 : vector<1x64x1xf32> to vector<64x1xf32>
    %148 = vector.broadcast %147 : vector<64x1xf32> to vector<64x128xf32>
    %149 = arith.addf %145, %148 : vector<64x128xf32>
    %150 = arith.subf %149, %83 : vector<64x128xf32>
    %151 = math.exp %150 : vector<64x128xf32>
    %152 = arith.addf %137, %151 : vector<64x128xf32>
    %c1_110 = arith.constant 1 : index
    %c0_111 = arith.constant 0 : index
    %c0_112 = arith.constant 0 : index
    %153 = vector.load %arg6[%c1_110, %c0_111, %c0_112] : memref<3x64x64xf32, #tpu.memory_space<vmem>>, vector<1x64x64xf32>
    %154 = vector.shape_cast %153 : vector<1x64x64xf32> to vector<64x64xf32>
    %cst_113 = arith.constant dense<0.000000e+00> : vector<64x128xf32>
    %155 = tpu.matmul %154, %21, %cst_113 {dimension_numbers = #tpu.dot_dimension_numbers<[1], [0], [0], [1], [0, 0, 1, 1], [], []>} : vector<64x64xf32>, vector<64x128xf32>, vector<64x128xf32> -> vector<64x128xf32>
    %156 = arith.mulf %151, %155 : vector<64x128xf32>
    %157 = arith.addf %142, %156 : vector<64x128xf32>
    %c2_114 = arith.constant 2 : index
    %c0_115 = arith.constant 0 : index
    %c0_116 = arith.constant 0 : index
    %158 = vector.load %arg6[%c2_114, %c0_115, %c0_116] : memref<3x64x64xf32, #tpu.memory_space<vmem>>, vector<1x64x64xf32>
    %159 = vector.shape_cast %158 : vector<1x64x64xf32> to vector<64x64xf32>
    %cst_117 = arith.constant dense<0.000000e+00> : vector<64x128xf32>
    %160 = tpu.matmul %159, %9, %cst_117 {dimension_numbers = #tpu.dot_dimension_numbers<[1], [0], [0], [1], [0, 0, 1, 1], [], []>} : vector<64x64xf32>, vector<64x128xf32>, vector<64x128xf32> -> vector<64x128xf32>
    %c6_118 = arith.constant 6 : index
    %c0_119 = arith.constant 0 : index
    %c0_120 = arith.constant 0 : index
    %161 = vector.load %arg7[%c6_118, %c0_119, %c0_120] : memref<9x64x1xf32, #tpu.memory_space<vmem>>, vector<1x64x1xf32>
    %162 = vector.shape_cast %161 : vector<1x64x1xf32> to vector<64x1xf32>
    %163 = vector.broadcast %162 : vector<64x1xf32> to vector<64x128xf32>
    %164 = arith.addf %160, %163 : vector<64x128xf32>
    %165 = arith.subf %164, %83 : vector<64x128xf32>
    %166 = math.exp %165 : vector<64x128xf32>
    %167 = arith.addf %152, %166 : vector<64x128xf32>
    %c2_121 = arith.constant 2 : index
    %c0_122 = arith.constant 0 : index
    %c0_123 = arith.constant 0 : index
    %168 = vector.load %arg6[%c2_121, %c0_122, %c0_123] : memref<3x64x64xf32, #tpu.memory_space<vmem>>, vector<1x64x64xf32>
    %169 = vector.shape_cast %168 : vector<1x64x64xf32> to vector<64x64xf32>
    %cst_124 = arith.constant dense<0.000000e+00> : vector<64x128xf32>
    %170 = tpu.matmul %169, %5, %cst_124 {dimension_numbers = #tpu.dot_dimension_numbers<[1], [0], [0], [1], [0, 0, 1, 1], [], []>} : vector<64x64xf32>, vector<64x128xf32>, vector<64x128xf32> -> vector<64x128xf32>
    %171 = arith.mulf %166, %170 : vector<64x128xf32>
    %172 = arith.addf %157, %171 : vector<64x128xf32>
    %c2_125 = arith.constant 2 : index
    %c0_126 = arith.constant 0 : index
    %c0_127 = arith.constant 0 : index
    %173 = vector.load %arg6[%c2_125, %c0_126, %c0_127] : memref<3x64x64xf32, #tpu.memory_space<vmem>>, vector<1x64x64xf32>
    %174 = vector.shape_cast %173 : vector<1x64x64xf32> to vector<64x64xf32>
    %cst_128 = arith.constant dense<0.000000e+00> : vector<64x128xf32>
    %175 = tpu.matmul %174, %12, %cst_128 {dimension_numbers = #tpu.dot_dimension_numbers<[1], [0], [0], [1], [0, 0, 1, 1], [], []>} : vector<64x64xf32>, vector<64x128xf32>, vector<64x128xf32> -> vector<64x128xf32>
    %c7_129 = arith.constant 7 : index
    %c0_130 = arith.constant 0 : index
    %c0_131 = arith.constant 0 : index
    %176 = vector.load %arg7[%c7_129, %c0_130, %c0_131] : memref<9x64x1xf32, #tpu.memory_space<vmem>>, vector<1x64x1xf32>
    %177 = vector.shape_cast %176 : vector<1x64x1xf32> to vector<64x1xf32>
    %178 = vector.broadcast %177 : vector<64x1xf32> to vector<64x128xf32>
    %179 = arith.addf %175, %178 : vector<64x128xf32>
    %180 = arith.subf %179, %83 : vector<64x128xf32>
    %181 = math.exp %180 : vector<64x128xf32>
    %182 = arith.addf %167, %181 : vector<64x128xf32>
    %c2_132 = arith.constant 2 : index
    %c0_133 = arith.constant 0 : index
    %c0_134 = arith.constant 0 : index
    %183 = vector.load %arg6[%c2_132, %c0_133, %c0_134] : memref<3x64x64xf32, #tpu.memory_space<vmem>>, vector<1x64x64xf32>
    %184 = vector.shape_cast %183 : vector<1x64x64xf32> to vector<64x64xf32>
    %cst_135 = arith.constant dense<0.000000e+00> : vector<64x128xf32>
    %185 = tpu.matmul %184, %18, %cst_135 {dimension_numbers = #tpu.dot_dimension_numbers<[1], [0], [0], [1], [0, 0, 1, 1], [], []>} : vector<64x64xf32>, vector<64x128xf32>, vector<64x128xf32> -> vector<64x128xf32>
    %186 = arith.mulf %181, %185 : vector<64x128xf32>
    %187 = arith.addf %172, %186 : vector<64x128xf32>
    %c2_136 = arith.constant 2 : index
    %c0_137 = arith.constant 0 : index
    %c0_138 = arith.constant 0 : index
    %188 = vector.load %arg6[%c2_136, %c0_137, %c0_138] : memref<3x64x64xf32, #tpu.memory_space<vmem>>, vector<1x64x64xf32>
    %189 = vector.shape_cast %188 : vector<1x64x64xf32> to vector<64x64xf32>
    %cst_139 = arith.constant dense<0.000000e+00> : vector<64x128xf32>
    %190 = tpu.matmul %189, %15, %cst_139 {dimension_numbers = #tpu.dot_dimension_numbers<[1], [0], [0], [1], [0, 0, 1, 1], [], []>} : vector<64x64xf32>, vector<64x128xf32>, vector<64x128xf32> -> vector<64x128xf32>
    %c8_140 = arith.constant 8 : index
    %c0_141 = arith.constant 0 : index
    %c0_142 = arith.constant 0 : index
    %191 = vector.load %arg7[%c8_140, %c0_141, %c0_142] : memref<9x64x1xf32, #tpu.memory_space<vmem>>, vector<1x64x1xf32>
    %192 = vector.shape_cast %191 : vector<1x64x1xf32> to vector<64x1xf32>
    %193 = vector.broadcast %192 : vector<64x1xf32> to vector<64x128xf32>
    %194 = arith.addf %190, %193 : vector<64x128xf32>
    %195 = arith.subf %194, %83 : vector<64x128xf32>
    %196 = math.exp %195 : vector<64x128xf32>
    %197 = arith.addf %182, %196 : vector<64x128xf32>
    %c2_143 = arith.constant 2 : index
    %c0_144 = arith.constant 0 : index
    %c0_145 = arith.constant 0 : index
    %198 = vector.load %arg6[%c2_143, %c0_144, %c0_145] : memref<3x64x64xf32, #tpu.memory_space<vmem>>, vector<1x64x64xf32>
    %199 = vector.shape_cast %198 : vector<1x64x64xf32> to vector<64x64xf32>
    %cst_146 = arith.constant dense<0.000000e+00> : vector<64x128xf32>
    %200 = tpu.matmul %199, %21, %cst_146 {dimension_numbers = #tpu.dot_dimension_numbers<[1], [0], [0], [1], [0, 0, 1, 1], [], []>} : vector<64x64xf32>, vector<64x128xf32>, vector<64x128xf32> -> vector<64x128xf32>
    %201 = arith.mulf %196, %200 : vector<64x128xf32>
    %202 = arith.addf %187, %201 : vector<64x128xf32>
    %203 = tpu.reciprocal %197 {approx = true} : vector<64x128xf32> -> vector<64x128xf32>
    %204 = arith.mulf %202, %203 : vector<64x128xf32>
    %c0_147 = arith.constant 0 : index
    %c0_148 = arith.constant 0 : index
    %c0_149 = arith.constant 0 : index
    %205 = vector.load %arg8[%c0_147, %c0_148, %c0_149] : memref<1x64x128xf32, #tpu.memory_space<vmem>>, vector<1x64x128xf32>
    %206 = vector.shape_cast %205 : vector<1x64x128xf32> to vector<64x128xf32>
    %207 = vector.shape_cast %204 : vector<64x128xf32> to vector<1x64x128xf32>
    tpu.vector_store %arg8[%c0_147, %c0_148, %c0_149], %207 {strides = array<i32>} : memref<1x64x128xf32, #tpu.memory_space<vmem>>, vector<1x64x128xf32>,
    return
  }
  func.func @transform_0(%arg0: i32) -> (i32, i32, i32) {
    %c0_i32 = arith.constant 0 : i32
    %c0_i32_0 = arith.constant 0 : i32
    %c0_i32_1 = arith.constant 0 : i32
    return %arg0, %c0_i32, %c0_i32_0 : i32, i32, i32
  }
  func.func @transform_1(%arg0: i32) -> (i32, i32, i32) {
    %c0_i32 = arith.constant 0 : i32
    %c0_i32_0 = arith.constant 0 : i32
    %c0_i32_1 = arith.constant 0 : i32
    return %arg0, %c0_i32, %c0_i32_0 : i32, i32, i32
  }
  func.func @transform_2(%arg0: i32) -> (i32, i32, i32) {
    %c0_i32 = arith.constant 0 : i32
    %c0_i32_0 = arith.constant 0 : i32
    %c0_i32_1 = arith.constant 0 : i32
    return %arg0, %c0_i32, %c0_i32_0 : i32, i32, i32
  }
  func.func @transform_3(%arg0: i32) -> (i32, i32, i32) {
    %c0_i32 = arith.constant 0 : i32
    %c0_i32_0 = arith.constant 0 : i32
    %c0_i32_1 = arith.constant 0 : i32
    %c0_i32_2 = arith.constant 0 : i32
    return %c0_i32, %c0_i32_0, %c0_i32_1 : i32, i32, i32
  }
  func.func @transform_4(%arg0: i32) -> (i32, i32, i32) {
    %c0_i32 = arith.constant 0 : i32
    %c0_i32_0 = arith.constant 0 : i32
    %c0_i32_1 = arith.constant 0 : i32
    %c0_i32_2 = arith.constant 0 : i32
    return %c0_i32, %c0_i32_0, %c0_i32_1 : i32, i32, i32
  }
  func.func @transform_5(%arg0: i32) -> (i32, i32, i32) {
    %c0_i32 = arith.constant 0 : i32
    %c0_i32_0 = arith.constant 0 : i32
    %c0_i32_1 = arith.constant 0 : i32
    %c0_i32_2 = arith.constant 0 : i32
    return %c0_i32, %c0_i32_0, %c0_i32_1 : i32, i32, i32
  }
  func.func @transform_6(%arg0: i32) -> (i32, i32, i32) {
    %c0_i32 = arith.constant 0 : i32
    %c0_i32_0 = arith.constant 0 : i32
    %c0_i32_1 = arith.constant 0 : i32
    %c0_i32_2 = arith.constant 0 : i32
    return %c0_i32, %c0_i32_0, %c0_i32_1 : i32, i32, i32
  }
  func.func @transform_7(%arg0: i32) -> (i32, i32, i32) {
    %c0_i32 = arith.constant 0 : i32
    %c0_i32_0 = arith.constant 0 : i32
    %c0_i32_1 = arith.constant 0 : i32
    return %arg0, %c0_i32, %c0_i32_0 : i32, i32, i32
  }
}

module attributes {stable_mosaic.version = 11 : i64} {
  func.func @_linear_kernel(%arg0: i32, %arg1: memref<256x32xf32, #tpu.memory_space<vmem>>, %arg2: memref<32x32xf32, #tpu.memory_space<vmem>>, %arg3: memref<1x32xf32, #tpu.memory_space<vmem>>, %arg4: memref<256x32xf32, #tpu.memory_space<vmem>>) attributes {dimension_semantics = [#tpu.dimension_semantics<parallel>], iteration_bounds = array<i64: 2>, scalar_prefetch = 0 : i64, scratch_operands = 0 : i64, tpu.core_type = #tpu.core_type<tc>, window_params = [{transform_indices = @transform_0, window_bounds = array<i64: 256, 32>}, {pipeline_mode = #tpu.pipeline_mode<synchronous>, transform_indices = @transform_1, window_bounds = array<i64: 32, 32>}, {pipeline_mode = #tpu.pipeline_mode<synchronous>, transform_indices = @transform_2, window_bounds = array<i64: 1, 32>}, {transform_indices = @transform_3, window_bounds = array<i64: 256, 32>}]} {
    %c0 = arith.constant 0 : index
    %c0_0 = arith.constant 0 : index
    %0 = vector.load %arg1[%c0, %c0_0] : memref<256x32xf32, #tpu.memory_space<vmem>>, vector<256x32xf32>
    %c0_1 = arith.constant 0 : index
    %c0_2 = arith.constant 0 : index
    %1 = vector.load %arg2[%c0_1, %c0_2] : memref<32x32xf32, #tpu.memory_space<vmem>>, vector<32x32xf32>
    %cst = arith.constant dense<0.000000e+00> : vector<256x32xf32>
    %2 = tpu.matmul %0, %1, %cst {dimension_numbers = #tpu.dot_dimension_numbers<[1], [0], [0], [1], [0, 0, 1, 1], [], []>} : vector<256x32xf32>, vector<32x32xf32>, vector<256x32xf32> -> vector<256x32xf32>
    %c0_3 = arith.constant 0 : index
    %c0_4 = arith.constant 0 : index
    %3 = vector.load %arg3[%c0_3, %c0_4] : memref<1x32xf32, #tpu.memory_space<vmem>>, vector<1x32xf32>
    %4 = vector.broadcast %3 : vector<1x32xf32> to vector<256x32xf32>
    %5 = arith.addf %2, %4 : vector<256x32xf32>
    %c0_5 = arith.constant 0 : index
    %c0_6 = arith.constant 0 : index
    %6 = vector.load %arg4[%c0_5, %c0_6] : memref<256x32xf32, #tpu.memory_space<vmem>>, vector<256x32xf32>
    tpu.vector_store %arg4[%c0_5, %c0_6], %5 {strides = array<i32>} : memref<256x32xf32, #tpu.memory_space<vmem>>, vector<256x32xf32>,
    return
  }
  func.func @transform_0(%arg0: i32) -> (i32, i32) {
    %c0_i32 = arith.constant 0 : i32
    %c0_i32_0 = arith.constant 0 : i32
    return %arg0, %c0_i32 : i32, i32
  }
  func.func @transform_1(%arg0: i32) -> (i32, i32) {
    %c0_i32 = arith.constant 0 : i32
    %c0_i32_0 = arith.constant 0 : i32
    %c0_i32_1 = arith.constant 0 : i32
    return %c0_i32, %c0_i32_0 : i32, i32
  }
  func.func @transform_2(%arg0: i32) -> (i32, i32) {
    %c0_i32 = arith.constant 0 : i32
    %c0_i32_0 = arith.constant 0 : i32
    %c0_i32_1 = arith.constant 0 : i32
    return %c0_i32, %c0_i32_0 : i32, i32
  }
  func.func @transform_3(%arg0: i32) -> (i32, i32) {
    %c0_i32 = arith.constant 0 : i32
    %c0_i32_0 = arith.constant 0 : i32
    return %arg0, %c0_i32 : i32, i32
  }
}

</mosaic_0001>

<bundles_post_ra>
// kernel: nat2d_forward.3
= control target key start
LH: loop header
LB: loop body
LE: loop exit
PB: predicated region body
PF: predicated region fallthrough
CT: control target
= control target key end

     0   :  { %8 = vsyncpa [#allocation3], 0  ;;  %s1155_s0 = inlined_call_operand.hbm [shape: f32[512,32], index: 0, kind: input, shape index: {}]   ;;  %s1156_s1 = inlined_call_operand.hbm [shape: f32[32,96], index: 1, kind: input, shape index: {}]   ;;  %s1157_s2 = inlined_call_operand.hbm [shape: f32[1,96], index: 2, kind: input, shape index: {}]   ;;  %s1158_s3 = inlined_call_operand.vmem [shape: f32[512,96], index: 3, kind: output, shape index: {}]  }
   0x1   :  { %10 = vsyncpa [#allocation3 + $0x1], 0 }
   0x2   :  { %11 = vsyncpa [#allocation5], 0  ;;  %s874_s12 = smov 0   ;;  %s876_s13 = smov 0  }
   0x3   :  { %s878_s14 = smov 0   ;;  %s880_s15 = smov 0  }
   0x4 LB: > { %s595_s16 = sadd.s32 4294967295, %s848_s15   ;;  %p37_p0 = scmp.ne.s32.totalorder %s840_s13, %s836_s12  ;;  %s848_s15 = sphi %s880_s15, %s1166_s15   ;;  %s844_s14 = sphi %s878_s14, %s1165_s14   ;;  %s840_s13 = sphi %s876_s13, %s1164_s13   ;;  %s836_s12 = sphi %s874_s12, %s1163_s12  }
   0x5   : > { %p896_p1 = scmp.eq.s32.totalorder %s595_s16, 0  ;;  %p597_p2 = scmp.ge.s32.totalorder %s848_s15, 1 }
   0x6   : > { %p116_p3 = scmp.lt.s32.totalorder %s848_s15, 3  ;;  %s127_s21 = sshll.u32 %s1156_s1, 4  ;;  %s128_s21 = int_to_ptr.hbm [resolvable:$true] %s127_s21 }
   0x7   : > { %p904_p4 = por %p896_p1, %p37_p0  ;;  %s850_s23 = smov [#allocation4]  }
   0x8   : > { %p911_p5 = pnand %p597_p2, %p116_p3  ;;  %s129_s24 = sshll.u32 %s850_s23, 4  ;;  %s130_s24 = int_to_ptr.vmem [resolvable:$true] %s129_s24 }
   0x9   : > { %s142_s27 = sshll.u32 %s1157_s2, 4  ;;  %s851_s28 = smov 128   ;;  %s143_s27 = int_to_ptr.hbm [resolvable:$true] %s142_s27 }
   0xa   : > { %p667_p6 = pneg %p911_p5  ;;  %s852_s29 = smov 8  }
   0xb   : > { %s853_s30 = smov [#allocation6]   ;;  %s926_s5 = sadd.s32 1, %s848_s15  }
   0xc   : > { %p668_p7 = pnand %p667_p6, %p896_p1  ;;  %s144_s4 = sshll.u32 %s853_s30, 4  ;;  %s145_s4 = int_to_ptr.vmem [resolvable:$true] %s144_s4 }
   0xd   : > { %s24_s6 = sadd.s32 1, %s844_s14  ;;  %s21_s7 = ssub.s32 %s848_s15, %s926_s5 }
   0xe   : > { %670 = dma.hbm_to_vmem [thread:$0]  (!%p668_p7), %s128_s21, 512, %s130_s24, [#allocation5], %s851_s28, %s851_s28, %s852_s29  }
   0xf   : > { %673 = dma.hbm_to_vmem [thread:$0]  (!%p668_p7), %s143_s27, 16, %s145_s4, [#allocation5]  }
  0x10   : > { %p31_p8 = scmp.ne.s32.totalorder %s844_s14, %s840_s13  ;;  %p22_p9 = scmp.eq.s32.totalorder %s21_s7, 0 }
  0x11   : > { %p32_p10 = scmp.eq.s32.totalorder %s848_s15, 0  ;;  %s155_s8 = sand.u32 1, %s844_s14  }
  0x12   : > { %s936_s9 = scalar_select %p22_p9, %s844_s14, %s24_s6  }
  0x13   : > { %p33_p11 = por %p32_p10, %p31_p8  ;;  %p680_p12 = scmp.lt.s32.totalorder %s848_s15, 2 }
  0x14   : > { %s601_s10 = sshll.u32 %s155_s8, 8  ;;  %s644_s11 = sshll.u32 %s848_s15, 8 }
  0x15   : > { %s164_s20 = scalar_lea.hbm %s1155_s0, %s644_s11  ;;  %s159_s23 = scalar_lea.vmem [#allocation2], %s601_s10 }
  0x16   : > { %s165_s21 = sshll.u32 %s164_s20, 4  ;;  %s167_s24 = sshll.u32 %s159_s23, 4  ;;  %s166_s21 = int_to_ptr.hbm [resolvable:$true] %s165_s21  ;;  %s168_s24 = int_to_ptr.vmem [resolvable:$true] %s167_s24 }
  0x17   : > { %p943_p13 = pnand %p680_p12, %p33_p11  ;;  %s156_s26 = scalar_lea.sflag [#allocation3], %s155_s8 }
  0x18   : > { %s780_s27 = sshra.s32 %s166_s21, 4  ;;  %s787_s7 = scalar_lea.hbm %s1155_s0, 512  ;;  %s781_s27 = int_to_ptr.hbm [resolvable:$true] %s780_s27 }
  0x19   : > { %s782_s30 = scalar_lea.hbm %s781_s27, 256  ;;  %p784_p2 = pneg %p943_p13 }
  0x1a   : > { %p783_p0 = scmp.ne.s32.totalorder %s781_s27, %s782_s30  ;;  %p788_p7 = scmp.lt.s32.totalorder %s781_s27, %s1155_s0 }
  0x1b   : > { %p789_p8 = scmp.lt.s32.totalorder %s787_s7, %s782_s30 }
  0x1c   : > { %p785_p3 = pnand %p784_p2, %p783_p0 }
  0x1d   : > { %p790_p9 = por %p789_p8, %p788_p7 }
  0x1e   : > { %p786_p6 = pneg %p785_p3 }
  0x20   : > { %p791_p10 = pnand %p790_p9, %p786_p6 }
  0x22   : > { %794 = shalt.err (!%p791_p10)
}
  0x23   : > { %677 = dma.hbm_to_vmem [thread:$0]  (!%p943_p13), %s166_s21, 4096, %s168_s24, %s156_s26, %s851_s28, %s851_s28, %s852_s29  }
  0x24   : > { %179 = sbr.rel (%p911_p5) target bundleno = 244 (0xf4), region = 32  ;;  %s181_s8 = sand.u32 (!%p911_p5), 1, %s840_s13  }
  0x25   : > { %s605_s12 = sshll.u32 (!%p911_p5), %s181_s8, 8  ;;  %s182_s19 = scalar_lea.sflag (!%p911_p5), [#allocation3], %s181_s8 }
  0x26   : > { %s963_s20 = scalar_lea.vmem (!%p911_p5), [#allocation2], %s605_s12 }
  0x29   : > { %827 = dma.done.wait (%p904_p4), %s182_s19, 4096  }
  0x2a   : > { %829 = vsyncadd (%p904_p4), %s182_s19, 4294963200 }
  0x2b   : > { %831 = dma.done.wait (%p896_p1), [#allocation5], 528  }
  0x2c   : > { %833 = vsyncadd (%p896_p1), [#allocation5], 4294966768  ;;  %v261_v0 = vld [vmem:[#allocation4 + $0x18] sm:$0xff]  ;;  %v260_v1 = vld [vmem:[#allocation4 + $0x10] sm:$0xff]  ;;  %vm266_vm0 = vcmask 261120   ;;  %s608_s17 = sshll.u32 %s595_s16, 5 }
  0x2d   : > { %646 = vmatpush.msra.mxu2 %v261_v0  ;;  %647 = vmatpush.msra.mxu3 %v261_v0  ;;  %v259_v2 = vld [vmem:[#allocation4 + $0x8] sm:$0xff]  ;;  %v258_v3 = vld [vmem:[#allocation4] sm:$0xff]  ;;  %v244_v12 = vld [vmem:[%s963_s20 + $0x90] sm:$0xff]  ;;  %p221_p1 = scmp.lt.s32.totalorder %s608_s17, 63  ;;  %vm476_vm1 = vcmask 785408  }
  0x2e   : > { %375 = vmatpush.msra.mxu0 %v261_v0  ;;  %645 = vmatpush.msra.mxu1 %v261_v0  ;;  %v242_v4 = vld [vmem:[%s963_s20 + $0x80] sm:$0xff]  ;;  %v243_v8 = vld [vmem:[%s963_s20 + $0x88] sm:$0xff]  ;;  %v252_v13 = vld [vmem:[%s963_s20 + $0xd0] sm:$0xff] }
  0x2f   : > { %649 = vmatpush.msra.mxu2 %v260_v1  ;;  %650 = vmatpush.msra.mxu3 %v260_v1  ;;  %v250_v5 = vld [vmem:[%s963_s20 + $0xc0] sm:$0xff]  ;;  %v251_v9 = vld [vmem:[%s963_s20 + $0xc8] sm:$0xff]  ;;  %v228_v14 = vld [vmem:[%s963_s20 + $0x10] sm:$0xff]  ;;  %s1168_s17 = smov (!%p221_p1, %s608_s17), 63 }
  0x30   : > { %376 = vmatpush.msra.mxu0 %v260_v1  ;;  %648 = vmatpush.msra.mxu1 %v260_v1  ;;  %v226_v6 = vld [vmem:[%s963_s20] sm:$0xff]  ;;  %v227_v10 = vld [vmem:[%s963_s20 + $0x8] sm:$0xff]  ;;  %v236_v15 = vld [vmem:[%s963_s20 + $0x50] sm:$0xff]  ;;  %s609_s18 = sshll.u32 %s1168_s17, 3 }
  0x31   : > { %652 = vmatpush.msra.mxu2 %v259_v2  ;;  %653 = vmatpush.msra.mxu3 %v259_v2  ;;  %v234_v7 = vld [vmem:[%s963_s20 + $0x40] sm:$0xff]  ;;  %v235_v11 = vld [vmem:[%s963_s20 + $0x48] sm:$0xff]  ;;  %v245_v16 = vld [vmem:[%s963_s20 + $0x98] sm:$0xff]  ;;  %s1044_s29 = scalar_lea.vmem %s1158_s3, %s609_s18 }
  0x32   : > { %377 = vmatpush.msra.mxu0 %v259_v2  ;;  %651 = vmatpush.msra.mxu1 %v259_v2  ;;  %v253_v17 = vld [vmem:[%s963_s20 + $0xd8] sm:$0xff]  ;;  %v246_v20 = vld [vmem:[%s963_s20 + $0xa0] sm:$0xff]  ;;  %v247_v24 = vld [vmem:[%s963_s20 + $0xa8] sm:$0xff] }
  0x33   : > { %655 = vmatpush.msra.mxu2 %v258_v3  ;;  %656 = vmatpush.msra.mxu3 %v258_v3  ;;  %v229_v18 = vld [vmem:[%s963_s20 + $0x18] sm:$0xff]  ;;  %v254_v21 = vld [vmem:[%s963_s20 + $0xe0] sm:$0xff]  ;;  %v255_v25 = vld [vmem:[%s963_s20 + $0xe8] sm:$0xff] }
  0x34   : > { %626 = vmatmul.msk.f32.vlgmr.msra.gmra.mxu2 %vm266_vm0, %v242_v4  ;;  %634 = vmatmul.msk.f32.vlgmr.msra.gmra.mxu3 %vm266_vm0, %v250_v5  ;;  %v237_v19 = vld [vmem:[%s963_s20 + $0x58] sm:$0xff]  ;;  %v230_v22 = vld [vmem:[%s963_s20 + $0x20] sm:$0xff]  ;;  %v231_v26 = vld [vmem:[%s963_s20 + $0x28] sm:$0xff] }
  0x35   : > { %378 = vmatpush.msra.mxu0 %v258_v3  ;;  %654 = vmatpush.msra.mxu1 %v258_v3  ;;  %v238_v23 = vld [vmem:[%s963_s20 + $0x60] sm:$0xff]  ;;  %v239_v27 = vld [vmem:[%s963_s20 + $0x68] sm:$0xff]  ;;  %v248_v28 = vld [vmem:[%s963_s20 + $0xb0] sm:$0xff] }
  0x36   : > { %610 = vmatmul.msk.f32.vlgmr.msra.gmra.mxu0 %vm266_vm0, %v226_v6  ;;  %618 = vmatmul.msk.f32.vlgmr.msra.gmra.mxu1 %vm266_vm0, %v234_v7  ;;  %v256_v29 = vld [vmem:[%s963_s20 + $0xf0] sm:$0xff]  ;;  %v249_v32 = vld [vmem:[%s963_s20 + $0xb8] sm:$0xff]  ;;  %v1039_v36 = vld [vmem:[#allocation6] ss:$0 sm:$0xff] }
  0x37   : > { %v232_v30 = vld [vmem:[%s963_s20 + $0x30] sm:$0xff]  ;;  %v257_v33 = vld [vmem:[%s963_s20 + $0xf8] sm:$0xff] }
  0x38   : > { %v240_v31 = vld [vmem:[%s963_s20 + $0x70] sm:$0xff]  ;;  %v233_v34 = vld [vmem:[%s963_s20 + $0x38] sm:$0xff] }
  0x39   : > { %v241_v35 = vld [vmem:[%s963_s20 + $0x78] sm:$0xff] }
  0x3c   : > { %627 = vmatmul.msk.f32.gmra.mxu2 %vm266_vm0, %v243_v8  ;;  %635 = vmatmul.msk.f32.gmra.mxu3 %vm266_vm0, %v251_v9 }
  0x3e   : > { %611 = vmatmul.msk.f32.gmra.mxu0 %vm266_vm0, %v227_v10  ;;  %619 = vmatmul.msk.f32.gmra.mxu1 %vm266_vm0, %v235_v11 }
  0x44   : > { %628 = vmatmul.msk.f32.gmra.mxu2 %vm266_vm0, %v244_v12  ;;  %636 = vmatmul.msk.f32.gmra.mxu3 %vm266_vm0, %v252_v13 }
  0x46   : > { %612 = vmatmul.msk.f32.gmra.mxu0 %vm266_vm0, %v228_v14  ;;  %620 = vmatmul.msk.f32.gmra.mxu1 %vm266_vm0, %v236_v15 }
  0x4c   : > { %629 = vmatmul.msk.f32.gmra.mxu2 %vm266_vm0, %v245_v16  ;;  %637 = vmatmul.msk.f32.gmra.mxu3 %vm266_vm0, %v253_v17 }
  0x4e   : > { %613 = vmatmul.msk.f32.gmra.mxu0 %vm266_vm0, %v229_v18  ;;  %621 = vmatmul.msk.f32.gmra.mxu1 %vm266_vm0, %v237_v19 }
  0x54   : > { %630 = vmatmul.msk.f32.gmra.mxu2 %vm266_vm0, %v246_v20  ;;  %638 = vmatmul.msk.f32.gmra.mxu3 %vm266_vm0, %v254_v21 }
  0x56   : > { %614 = vmatmul.msk.f32.gmra.mxu0 %vm266_vm0, %v230_v22  ;;  %622 = vmatmul.msk.f32.gmra.mxu1 %vm266_vm0, %v238_v23 }
  0x5c   : > { %631 = vmatmul.msk.f32.gmra.mxu2 %vm266_vm0, %v247_v24  ;;  %639 = vmatmul.msk.f32.gmra.mxu3 %vm266_vm0, %v255_v25 }
  0x5e   : > { %615 = vmatmul.msk.f32.gmra.mxu0 %vm266_vm0, %v231_v26  ;;  %623 = vmatmul.msk.f32.gmra.mxu1 %vm266_vm0, %v239_v27 }
  0x64   : > { %632 = vmatmul.msk.f32.gmra.mxu2 %vm266_vm0, %v248_v28  ;;  %640 = vmatmul.msk.f32.gmra.mxu3 %vm266_vm0, %v256_v29 }
  0x66   : > { %616 = vmatmul.msk.f32.gmra.mxu0 %vm266_vm0, %v232_v30  ;;  %624 = vmatmul.msk.f32.gmra.mxu1 %vm266_vm0, %v240_v31 }
  0x6c   : > { %633 = vmatmul.msk.f32.gmra.mxu2 %vm266_vm0, %v249_v32  ;;  %641 = vmatmul.msk.f32.gmra.mxu3 %vm266_vm0, %v257_v33 }
  0x6e   : > { %617 = vmatmul.msk.f32.gmra.mxu0 %vm266_vm0, %v233_v34  ;;  %625 = vmatmul.msk.f32.gmra.mxu1 %vm266_vm0, %v241_v35 }
  0xb3   : > { %v380_v37 = vpop.f32.mrf.mxu0  ;;  %v404_v38 = vpop.f32.mrf.mxu1 }
  0xb4   : > { %v381_v39 = vadd.f32 %v1039_v36, %v380_v37  ;;  %v405_v40 = vadd.f32 %v1039_v36, %v404_v38 }
  0xb6   : > { %477 = vst.msk [vmem:[%s1044_s29] sm:$0xff] %vm476_vm1, %v381_v39 }
  0xb7   : > { %485 = vst.msk [vmem:[%s1044_s29 + $0x40] sm:$0xff] %vm476_vm1, %v405_v40  ;;  %v428_v41 = vpop.f32.mrf.mxu2  ;;  %v452_v42 = vpop.f32.mrf.mxu3 }
  0xb8   : > { %v429_v43 = vadd.f32 %v1039_v36, %v428_v41  ;;  %v453_v44 = vadd.f32 %v1039_v36, %v452_v42 }
  0xba   : > { %493 = vst.msk [vmem:[%s1044_s29 + $0x80] sm:$0xff] %vm476_vm1, %v429_v43 }
  0xbb   : > { %501 = vst.msk [vmem:[%s1044_s29 + $0xc0] sm:$0xff] %vm476_vm1, %v453_v44  ;;  %v383_v45 = vpop.f32.mrf.mxu0  ;;  %v407_v46 = vpop.f32.mrf.mxu1 }
  0xbc   : > { %v384_v47 = vadd.f32 %v1039_v36, %v383_v45  ;;  %v408_v48 = vadd.f32 %v1039_v36, %v407_v46 }
  0xbe   : > { %478 = vst.msk [vmem:[%s1044_s29 + $0x8] sm:$0xff] %vm476_vm1, %v384_v47 }
  0xbf   : > { %486 = vst.msk [vmem:[%s1044_s29 + $0x48] sm:$0xff] %vm476_vm1, %v408_v48  ;;  %v431_v49 = vpop.f32.mrf.mxu2  ;;  %v455_v50 = vpop.f32.mrf.mxu3 }
  0xc0   : > { %v432_v51 = vadd.f32 %v1039_v36, %v431_v49  ;;  %v456_v52 = vadd.f32 %v1039_v36, %v455_v50 }
  0xc2   : > { %494 = vst.msk [vmem:[%s1044_s29 + $0x88] sm:$0xff] %vm476_vm1, %v432_v51 }
  0xc3   : > { %502 = vst.msk [vmem:[%s1044_s29 + $0xc8] sm:$0xff] %vm476_vm1, %v456_v52  ;;  %v386_v53 = vpop.f32.mrf.mxu0  ;;  %v410_v54 = vpop.f32.mrf.mxu1 }
  0xc4   : > { %v387_v55 = vadd.f32 %v1039_v36, %v386_v53  ;;  %v411_v56 = vadd.f32 %v1039_v36, %v410_v54 }
  0xc6   : > { %479 = vst.msk [vmem:[%s1044_s29 + $0x10] sm:$0xff] %vm476_vm1, %v387_v55 }
  0xc7   : > { %487 = vst.msk [vmem:[%s1044_s29 + $0x50] sm:$0xff] %vm476_vm1, %v411_v56  ;;  %v434_v57 = vpop.f32.mrf.mxu2  ;;  %v458_v58 = vpop.f32.mrf.mxu3 }
  0xc8   : > { %v435_v59 = vadd.f32 %v1039_v36, %v434_v57  ;;  %v459_v60 = vadd.f32 %v1039_v36, %v458_v58 }
  0xca   : > { %495 = vst.msk [vmem:[%s1044_s29 + $0x90] sm:$0xff] %vm476_vm1, %v435_v59 }
  0xcb   : > { %503 = vst.msk [vmem:[%s1044_s29 + $0xd0] sm:$0xff] %vm476_vm1, %v459_v60  ;;  %v389_v61 = vpop.f32.mrf.mxu0  ;;  %v413_v62 = vpop.f32.mrf.mxu1 }
  0xcc   : > { %v390_v63 = vadd.f32 %v1039_v36, %v389_v61  ;;  %v414_v0 = vadd.f32 %v1039_v36, %v413_v62 }
  0xce   : > { %480 = vst.msk [vmem:[%s1044_s29 + $0x18] sm:$0xff] %vm476_vm1, %v390_v63 }
  0xcf   : > { %488 = vst.msk [vmem:[%s1044_s29 + $0x58] sm:$0xff] %vm476_vm1, %v414_v0  ;;  %v437_v1 = vpop.f32.mrf.mxu2  ;;  %v461_v2 = vpop.f32.mrf.mxu3 }
  0xd0   : > { %v438_v3 = vadd.f32 %v1039_v36, %v437_v1  ;;  %v462_v4 = vadd.f32 %v1039_v36, %v461_v2 }
  0xd2   : > { %496 = vst.msk [vmem:[%s1044_s29 + $0x98] sm:$0xff] %vm476_vm1, %v438_v3 }
  0xd3   : > { %504 = vst.msk [vmem:[%s1044_s29 + $0xd8] sm:$0xff] %vm476_vm1, %v462_v4  ;;  %v392_v5 = vpop.f32.mrf.mxu0  ;;  %v416_v6 = vpop.f32.mrf.mxu1 }
  0xd4   : > { %v393_v7 = vadd.f32 %v1039_v36, %v392_v5  ;;  %v417_v8 = vadd.f32 %v1039_v36, %v416_v6 }
  0xd6   : > { %481 = vst.msk [vmem:[%s1044_s29 + $0x20] sm:$0xff] %vm476_vm1, %v393_v7 }
  0xd7   : > { %489 = vst.msk [vmem:[%s1044_s29 + $0x60] sm:$0xff] %vm476_vm1, %v417_v8  ;;  %v440_v9 = vpop.f32.mrf.mxu2  ;;  %v464_v10 = vpop.f32.mrf.mxu3 }
  0xd8   : > { %v441_v11 = vadd.f32 %v1039_v36, %v440_v9  ;;  %v465_v12 = vadd.f32 %v1039_v36, %v464_v10 }
  0xda   : > { %497 = vst.msk [vmem:[%s1044_s29 + $0xa0] sm:$0xff] %vm476_vm1, %v441_v11 }
  0xdb   : > { %505 = vst.msk [vmem:[%s1044_s29 + $0xe0] sm:$0xff] %vm476_vm1, %v465_v12  ;;  %v395_v13 = vpop.f32.mrf.mxu0  ;;  %v419_v14 = vpop.f32.mrf.mxu1 }
  0xdc   : > { %v396_v15 = vadd.f32 %v1039_v36, %v395_v13  ;;  %v420_v16 = vadd.f32 %v1039_v36, %v419_v14 }
  0xde   : > { %482 = vst.msk [vmem:[%s1044_s29 + $0x28] sm:$0xff] %vm476_vm1, %v396_v15 }
  0xdf   : > { %490 = vst.msk [vmem:[%s1044_s29 + $0x68] sm:$0xff] %vm476_vm1, %v420_v16  ;;  %v443_v17 = vpop.f32.mrf.mxu2  ;;  %v467_v18 = vpop.f32.mrf.mxu3 }
  0xe0   : > { %v444_v19 = vadd.f32 %v1039_v36, %v443_v17  ;;  %v468_v20 = vadd.f32 %v1039_v36, %v467_v18 }
  0xe2   : > { %498 = vst.msk [vmem:[%s1044_s29 + $0xa8] sm:$0xff] %vm476_vm1, %v444_v19 }
  0xe3   : > { %506 = vst.msk [vmem:[%s1044_s29 + $0xe8] sm:$0xff] %vm476_vm1, %v468_v20  ;;  %v398_v21 = vpop.f32.mrf.mxu0  ;;  %v422_v22 = vpop.f32.mrf.mxu1 }
  0xe4   : > { %v399_v23 = vadd.f32 %v1039_v36, %v398_v21  ;;  %v423_v24 = vadd.f32 %v1039_v36, %v422_v22 }
  0xe6   : > { %483 = vst.msk [vmem:[%s1044_s29 + $0x30] sm:$0xff] %vm476_vm1, %v399_v23 }
  0xe7   : > { %491 = vst.msk [vmem:[%s1044_s29 + $0x70] sm:$0xff] %vm476_vm1, %v423_v24  ;;  %v446_v25 = vpop.f32.mrf.mxu2  ;;  %v470_v26 = vpop.f32.mrf.mxu3 }
  0xe8   : > { %v447_v27 = vadd.f32 %v1039_v36, %v446_v25  ;;  %v471_v28 = vadd.f32 %v1039_v36, %v470_v26 }
  0xea   : > { %499 = vst.msk [vmem:[%s1044_s29 + $0xb0] sm:$0xff] %vm476_vm1, %v447_v27 }
  0xeb   : > { %507 = vst.msk [vmem:[%s1044_s29 + $0xf0] sm:$0xff] %vm476_vm1, %v471_v28  ;;  %v401_v29 = vpop.f32.mrf.mxu0  ;;  %v425_v30 = vpop.f32.mrf.mxu1 }
  0xec   : > { %v402_v31 = vadd.f32 %v1039_v36, %v401_v29  ;;  %v426_v32 = vadd.f32 %v1039_v36, %v425_v30 }
  0xee   : > { %484 = vst.msk [vmem:[%s1044_s29 + $0x38] sm:$0xff] %vm476_vm1, %v402_v31 }
  0xef   : > { %492 = vst.msk [vmem:[%s1044_s29 + $0x78] sm:$0xff] %vm476_vm1, %v426_v32  ;;  %v449_v33 = vpop.f32.mrf.mxu2  ;;  %v473_v34 = vpop.f32.mrf.mxu3 }
  0xf0   : > { %v450_v35 = vadd.f32 %v1039_v36, %v449_v33  ;;  %v474_v37 = vadd.f32 %v1039_v36, %v473_v34 }
  0xf2   : > { %500 = vst.msk [vmem:[%s1044_s29 + $0xb8] sm:$0xff] %vm476_vm1, %v450_v35 }
  0xf3   : > { %508 = vst.msk [vmem:[%s1044_s29 + $0xf8] sm:$0xff] %vm476_vm1, %v474_v37 }
  0xf4 PF: > { %p14_p4 = scmp.ge.s32.totalorder %s926_s5, 4   ;;  %s1163_s12 = smov %s840_s13 }
  0xf5   : > { %s1164_s13 = smov %s844_s14  ;;  %s1165_s14 = smov %s936_s9 }
  0xf6   : > { %s1166_s15 = smov %s926_s5  ;;  %16 = sbr.rel (!%p14_p4) target bundleno = 4 (0x4), region = 80 }
  0xfb   :  { %531 = vsyncpa [#allocation3], 1 }
  0xfc   :  { %533 = vsyncpa [#allocation3 + $0x1], 1 }
  0xfd   :  { %534 = vsyncpa [#allocation5], 1 }

// kernel: squeeze.3
= control target key start
LH: loop header
LB: loop body
LE: loop exit
PB: predicated region body
PF: predicated region fallthrough
CT: control target
= control target key end

     0   :  { %vm1028_vm0 = vcmask 1047556   ;;  %s2746_s15 = smov 48   ;;  %s2747_s18 = smov 32   ;;  %vm1030_vm1 = vcmask 130048   ;;  %vm1319_vm2 = vcmask 523648   ;;  %vm1670_vm3 = vcmask 392448   ;;  %s4278_s0 = inlined_call_operand.vmem [shape: f32[1,2,4,16,16,8], index: 0, kind: input, shape index: {}]   ;;  %s4279_s1 = inlined_call_operand.vmem [shape: f32[2,64,128], index: 1, kind: output, shape index: {}]  }
   0x1   :  { %v2612_v0 = vld [vmem:[%s4278_s0 + $0x1c] sm:$0xf]  ;;  %v2613_v1 = vld [vmem:[%s4278_s0 + $0x18] sm:$0xf]  ;;  %v2614_v2 = vld [vmem:[%s4278_s0 + $0x14] sm:$0xf] }
   0x2   :  { %999 = vst [vmem:[#allocation0 + $0x38] sm:$0xf] %v2612_v0  ;;  %v2615_v3 = vld [vmem:[%s4278_s0 + $0x10] sm:$0xf]  ;;  %v2616_v4 = vld [vmem:[%s4278_s0 + $0xc] sm:$0xf] }
   0x3   :  { %1003 = vst [vmem:[#allocation0 + $0x30] sm:$0xf] %v2613_v1  ;;  %v2617_v5 = vld [vmem:[%s4278_s0 + $0x8] sm:$0xf]  ;;  %v2618_v6 = vld [vmem:[%s4278_s0 + $0x4] sm:$0xf] }
   0x4   :  { %1007 = vst [vmem:[#allocation0 + $0x28] sm:$0xf] %v2614_v2  ;;  %v1024_v7 = vld [vmem:[%s4278_s0] sm:$0xf]  ;;  %v2548_v8 = vld [vmem:[%s4278_s0 + $0x11c] sm:$0xf] }
   0x5   :  { %1011 = vst [vmem:[#allocation0 + $0x20] sm:$0xf] %v2615_v3  ;;  %v2549_v9 = vld [vmem:[%s4278_s0 + $0x118] sm:$0xf]  ;;  %v2550_v10 = vld [vmem:[%s4278_s0 + $0x114] sm:$0xf] }
   0x6   :  { %1015 = vst [vmem:[#allocation0 + $0x18] sm:$0xf] %v2616_v4  ;;  %v2551_v11 = vld [vmem:[%s4278_s0 + $0x110] sm:$0xf]  ;;  %v2552_v12 = vld [vmem:[%s4278_s0 + $0x10c] sm:$0xf] }
   0x7   :  { %1019 = vst [vmem:[#allocation0 + $0x10] sm:$0xf] %v2617_v5  ;;  %v2553_v13 = vld [vmem:[%s4278_s0 + $0x108] sm:$0xf]  ;;  %v2554_v14 = vld [vmem:[%s4278_s0 + $0x104] sm:$0xf] }
   0x8   :  { %1023 = vst [vmem:[#allocation0 + $0x8] sm:$0xf] %v2618_v6  ;;  %v2555_v15 = vld [vmem:[%s4278_s0 + $0x100] sm:$0xf]  ;;  %v2580_v17 = vld [vmem:[%s4278_s0 + $0x9c] sm:$0xf] }
   0x9   :  { %1025 = vst [vmem:[#allocation0] sm:$0xf] %v1024_v7  ;;  %v2581_v18 = vld [vmem:[%s4278_s0 + $0x98] sm:$0xf]  ;;  %v2582_v21 = vld [vmem:[%s4278_s0 + $0x94] sm:$0xf] }
   0xa   :  { %743 = vst [vmem:[#allocation0 + $0x238] sm:$0xf] %v2548_v8  ;;  %v2583_v22 = vld [vmem:[%s4278_s0 + $0x90] sm:$0xf]  ;;  %v2584_v23 = vld [vmem:[%s4278_s0 + $0x8c] sm:$0xf] }
   0xb   :  { %747 = vst [vmem:[#allocation0 + $0x230] sm:$0xf] %v2549_v9  ;;  %v2585_v24 = vld [vmem:[%s4278_s0 + $0x88] sm:$0xf]  ;;  %v2586_v25 = vld [vmem:[%s4278_s0 + $0x84] sm:$0xf] }
   0xc   :  { %751 = vst [vmem:[#allocation0 + $0x228] sm:$0xf] %v2550_v10  ;;  %v1314_v16 = vld [vmem:[#allocation0 + $0x3] ss:$8 sm:$0xf0]   ;;  %s2748_s22 = smov 16  }
   0xd   :  { %755 = vst [vmem:[#allocation0 + $0x220] sm:$0xf] %v2551_v11  ;;  %v2587_v26 = vld [vmem:[%s4278_s0 + $0x80] sm:$0xf]  ;;  %v2516_v28 = vld [vmem:[%s4278_s0 + $0x19c] sm:$0xf] }
   0xe   :  { %759 = vst [vmem:[#allocation0 + $0x218] sm:$0xf] %v2552_v12  ;;  %v2517_v29 = vld [vmem:[%s4278_s0 + $0x198] sm:$0xf]  ;;  %v2518_v32 = vld [vmem:[%s4278_s0 + $0x194] sm:$0xf] }
   0xf   :  { %763 = vst [vmem:[#allocation0 + $0x210] sm:$0xf] %v2553_v13  ;;  %v2519_v33 = vld [vmem:[%s4278_s0 + $0x190] sm:$0xf]  ;;  %v2520_v34 = vld [vmem:[%s4278_s0 + $0x18c] sm:$0xf] }
  0x10   :  { %v1312_v19 = vld [vmem:[#allocation0 + $0x3] ss:$8 sm:$0xf]   ;;  %767 = vst [vmem:[#allocation0 + $0x208] sm:$0xf] %v2554_v14  ;;  %vm2021_vm4 = vcmask 261248  }
  0x11   :  { %v1316_v20 = vsel %vm1028_vm0, %v1314_v16, %v1312_v19  ;;  %771 = vst [vmem:[#allocation0 + $0x200] sm:$0xf] %v2555_v15  ;;  %v2521_v35 = vld [vmem:[%s4278_s0 + $0x188] sm:$0xf]  ;;  %v2522_v36 = vld [vmem:[%s4278_s0 + $0x184] sm:$0xf] }
  0x12   :  { %1317 = vrot.lane.b32.xlu0 %v1316_v20, %s2746_s15  ;;  %871 = vst [vmem:[#allocation0 + $0x138] sm:$0xf] %v2580_v17  ;;  %v2523_v37 = vld [vmem:[%s4278_s0 + $0x180] sm:$0xf]  ;;  %v2420_v39 = vld [vmem:[%s4278_s0 + $0x31c] sm:$0xf] }
  0x13   :  { %875 = vst [vmem:[#allocation0 + $0x130] sm:$0xf] %v2581_v18  ;;  %v2421_v40 = vld [vmem:[%s4278_s0 + $0x318] sm:$0xf]  ;;  %v2422_v43 = vld [vmem:[%s4278_s0 + $0x314] sm:$0xf] }
  0x14   :  { %879 = vst [vmem:[#allocation0 + $0x128] sm:$0xf] %v2582_v21  ;;  %v1335_v27 = vld [vmem:[#allocation0 + $0x203] ss:$8 sm:$0xf0]  }
  0x15   :  { %883 = vst [vmem:[#allocation0 + $0x120] sm:$0xf] %v2583_v22  ;;  %v2423_v44 = vld [vmem:[%s4278_s0 + $0x310] sm:$0xf]  ;;  %v2424_v45 = vld [vmem:[%s4278_s0 + $0x30c] sm:$0xf] }
  0x16   :  { %887 = vst [vmem:[#allocation0 + $0x118] sm:$0xf] %v2584_v23  ;;  %v2425_v46 = vld [vmem:[%s4278_s0 + $0x308] sm:$0xf]  ;;  %v2426_v47 = vld [vmem:[%s4278_s0 + $0x304] sm:$0xf] }
  0x17   :  { %891 = vst [vmem:[#allocation0 + $0x110] sm:$0xf] %v2585_v24  ;;  %v2427_v48 = vld [vmem:[%s4278_s0 + $0x300] sm:$0xf]  ;;  %v2388_v50 = vld [vmem:[%s4278_s0 + $0x39c] sm:$0xf] }
  0x18   :  { %v1333_v30 = vld [vmem:[#allocation0 + $0x203] ss:$8 sm:$0xf]   ;;  %895 = vst [vmem:[#allocation0 + $0x108] sm:$0xf] %v2586_v25 }
  0x19   :  { %v1337_v31 = vsel %vm1028_vm0, %v1335_v27, %v1333_v30  ;;  %899 = vst [vmem:[#allocation0 + $0x100] sm:$0xf] %v2587_v26  ;;  %v2389_v51 = vld [vmem:[%s4278_s0 + $0x398] sm:$0xf]  ;;  %v2390_v54 = vld [vmem:[%s4278_s0 + $0x394] sm:$0xf] }
  0x1a   :  { %1338 = vrot.lane.b32.xlu1 %v1337_v31, %s2746_s15  ;;  %615 = vst [vmem:[#allocation0 + $0x338] sm:$0xf] %v2516_v28  ;;  %v2391_v55 = vld [vmem:[%s4278_s0 + $0x390] sm:$0xf]  ;;  %v2392_v56 = vld [vmem:[%s4278_s0 + $0x38c] sm:$0xf] }
  0x1b   :  { %619 = vst [vmem:[#allocation0 + $0x330] sm:$0xf] %v2517_v29  ;;  %v2393_v57 = vld [vmem:[%s4278_s0 + $0x388] sm:$0xf]  ;;  %v2394_v58 = vld [vmem:[%s4278_s0 + $0x384] sm:$0xf] }
  0x1c   :  { %623 = vst [vmem:[#allocation0 + $0x328] sm:$0xf] %v2518_v32  ;;  %v1324_v38 = vld [vmem:[#allocation0 + $0x103] ss:$8 sm:$0xf0]  }
  0x1d   :  { %627 = vst [vmem:[#allocation0 + $0x320] sm:$0xf] %v2519_v33  ;;  %v2395_v59 = vld [vmem:[%s4278_s0 + $0x380] sm:$0xf]  ;;  %v2484_v61 = vld [vmem:[%s4278_s0 + $0x21c] sm:$0xf] }
  0x1e   :  { %631 = vst [vmem:[#allocation0 + $0x318] sm:$0xf] %v2520_v34  ;;  %v2485_v62 = vld [vmem:[%s4278_s0 + $0x218] sm:$0xf]  ;;  %v2486_v1 = vld [vmem:[%s4278_s0 + $0x214] sm:$0xf] }
  0x1f   :  { %635 = vst [vmem:[#allocation0 + $0x310] sm:$0xf] %v2521_v35  ;;  %v2487_v2 = vld [vmem:[%s4278_s0 + $0x210] sm:$0xf]  ;;  %v2488_v3 = vld [vmem:[%s4278_s0 + $0x20c] sm:$0xf] }
  0x20   :  { %v1322_v41 = vld [vmem:[#allocation0 + $0x103] ss:$8 sm:$0xf]   ;;  %639 = vst [vmem:[#allocation0 + $0x308] sm:$0xf] %v2522_v36 }
  0x21   :  { %v1326_v42 = vsel %vm1028_vm0, %v1324_v38, %v1322_v41  ;;  %643 = vst [vmem:[#allocation0 + $0x300] sm:$0xf] %v2523_v37  ;;  %v2489_v4 = vld [vmem:[%s4278_s0 + $0x208] sm:$0xf]  ;;  %v2490_v5 = vld [vmem:[%s4278_s0 + $0x204] sm:$0xf] }
  0x22   :  { %1327 = vrot.lane.b32.xlu0 %v1326_v42, %s2746_s15  ;;  %231 = vst [vmem:[#allocation0 + $0x638] sm:$0xf] %v2420_v39  ;;  %v2491_v6 = vld [vmem:[%s4278_s0 + $0x200] sm:$0xf]  ;;  %v2572_v8 = vld [vmem:[%s4278_s0 + $0xbc] sm:$0xf] }
  0x23   :  { %235 = vst [vmem:[#allocation0 + $0x630] sm:$0xf] %v2421_v40  ;;  %v2573_v9 = vld [vmem:[%s4278_s0 + $0xb8] sm:$0xf]  ;;  %v2574_v12 = vld [vmem:[%s4278_s0 + $0xb4] sm:$0xf] }
  0x24   :  { %239 = vst [vmem:[#allocation0 + $0x628] sm:$0xf] %v2422_v43  ;;  %v1346_v49 = vld [vmem:[#allocation0 + $0x303] ss:$8 sm:$0xf0]  }
  0x25   :  { %243 = vst [vmem:[#allocation0 + $0x620] sm:$0xf] %v2423_v44  ;;  %v2575_v13 = vld [vmem:[%s4278_s0 + $0xb0] sm:$0xf]  ;;  %v2576_v14 = vld [vmem:[%s4278_s0 + $0xac] sm:$0xf] }
  0x26   :  { %247 = vst [vmem:[#allocation0 + $0x618] sm:$0xf] %v2424_v45  ;;  %v2577_v15 = vld [vmem:[%s4278_s0 + $0xa8] sm:$0xf]  ;;  %v2578_v16 = vld [vmem:[%s4278_s0 + $0xa4] sm:$0xf] }
  0x27   :  { %251 = vst [vmem:[#allocation0 + $0x610] sm:$0xf] %v2425_v46  ;;  %v2579_v17 = vld [vmem:[%s4278_s0 + $0xa0] sm:$0xf]  ;;  %v2540_v19 = vld [vmem:[%s4278_s0 + $0x13c] sm:$0xf] }
  0x28   :  { %v1344_v52 = vld [vmem:[#allocation0 + $0x303] ss:$8 sm:$0xf]   ;;  %255 = vst [vmem:[#allocation0 + $0x608] sm:$0xf] %v2426_v47 }
  0x29   :  { %v1348_v53 = vsel %vm1028_vm0, %v1346_v49, %v1344_v52  ;;  %259 = vst [vmem:[#allocation0 + $0x600] sm:$0xf] %v2427_v48  ;;  %v2541_v20 = vld [vmem:[%s4278_s0 + $0x138] sm:$0xf]  ;;  %v2542_v23 = vld [vmem:[%s4278_s0 + $0x134] sm:$0xf] }
  0x2a   :  { %1349 = vrot.lane.b32.xlu1 %v1348_v53, %s2746_s15  ;;  %103 = vst [vmem:[#allocation0 + $0x738] sm:$0xf] %v2388_v50  ;;  %v2543_v24 = vld [vmem:[%s4278_s0 + $0x130] sm:$0xf]  ;;  %v2544_v25 = vld [vmem:[%s4278_s0 + $0x12c] sm:$0xf] }
  0x2b   :  { %107 = vst [vmem:[#allocation0 + $0x730] sm:$0xf] %v2389_v51  ;;  %v2545_v26 = vld [vmem:[%s4278_s0 + $0x128] sm:$0xf]  ;;  %v2546_v27 = vld [vmem:[%s4278_s0 + $0x124] sm:$0xf] }
  0x2c   :  { %111 = vst [vmem:[#allocation0 + $0x728] sm:$0xf] %v2390_v54  ;;  %v1379_v60 = vld [vmem:[#allocation0 + $0x603] ss:$8 sm:$0xf0]  }
  0x2d   :  { %115 = vst [vmem:[#allocation0 + $0x720] sm:$0xf] %v2391_v55  ;;  %v2547_v28 = vld [vmem:[%s4278_s0 + $0x120] sm:$0xf]  ;;  %v2452_v30 = vld [vmem:[%s4278_s0 + $0x29c] sm:$0xf] }
  0x2e   :  { %119 = vst [vmem:[#allocation0 + $0x718] sm:$0xf] %v2392_v56  ;;  %v2453_v31 = vld [vmem:[%s4278_s0 + $0x298] sm:$0xf]  ;;  %v2454_v34 = vld [vmem:[%s4278_s0 + $0x294] sm:$0xf] }
  0x2f   :  { %123 = vst [vmem:[#allocation0 + $0x710] sm:$0xf] %v2393_v57  ;;  %v2455_v35 = vld [vmem:[%s4278_s0 + $0x290] sm:$0xf]  ;;  %v2456_v36 = vld [vmem:[%s4278_s0 + $0x28c] sm:$0xf] }
  0x30   :  { %v1377_v63 = vld [vmem:[#allocation0 + $0x603] ss:$8 sm:$0xf]   ;;  %127 = vst [vmem:[#allocation0 + $0x708] sm:$0xf] %v2394_v58 }
  0x31   :  { %v1381_v0 = vsel %vm1028_vm0, %v1379_v60, %v1377_v63  ;;  %131 = vst [vmem:[#allocation0 + $0x700] sm:$0xf] %v2395_v59  ;;  %v2457_v37 = vld [vmem:[%s4278_s0 + $0x288] sm:$0xf]  ;;  %v2458_v38 = vld [vmem:[%s4278_s0 + $0x284] sm:$0xf] }
  0x32   :  { %1382 = vrot.lane.b32.xlu0 %v1381_v0, %s2746_s15  ;;  %487 = vst [vmem:[#allocation0 + $0x438] sm:$0xf] %v2484_v61  ;;  %v2459_v39 = vld [vmem:[%s4278_s0 + $0x280] sm:$0xf]  ;;  %v2476_v41 = vld [vmem:[%s4278_s0 + $0x23c] sm:$0xf] }
  0x33   :  { %491 = vst [vmem:[#allocation0 + $0x430] sm:$0xf] %v2485_v62  ;;  %v2477_v42 = vld [vmem:[%s4278_s0 + $0x238] sm:$0xf]  ;;  %v2478_v45 = vld [vmem:[%s4278_s0 + $0x234] sm:$0xf] }
  0x34   :  { %495 = vst [vmem:[#allocation0 + $0x428] sm:$0xf] %v2486_v1  ;;  %v1390_v7 = vld [vmem:[#allocation0 + $0x703] ss:$8 sm:$0xf0]  }
  0x35   :  { %499 = vst [vmem:[#allocation0 + $0x420] sm:$0xf] %v2487_v2  ;;  %v2479_v46 = vld [vmem:[%s4278_s0 + $0x230] sm:$0xf]  ;;  %v2480_v47 = vld [vmem:[%s4278_s0 + $0x22c] sm:$0xf] }
  0x36   :  { %503 = vst [vmem:[#allocation0 + $0x418] sm:$0xf] %v2488_v3  ;;  %v2481_v48 = vld [vmem:[%s4278_s0 + $0x228] sm:$0xf]  ;;  %v2482_v49 = vld [vmem:[%s4278_s0 + $0x224] sm:$0xf] }
  0x37   :  { %507 = vst [vmem:[#allocation0 + $0x410] sm:$0xf] %v2489_v4  ;;  %v2483_v50 = vld [vmem:[%s4278_s0 + $0x220] sm:$0xf]  ;;  %v2444_v52 = vld [vmem:[%s4278_s0 + $0x2bc] sm:$0xf] }
  0x38   :  { %v1388_v10 = vld [vmem:[#allocation0 + $0x703] ss:$8 sm:$0xf]   ;;  %511 = vst [vmem:[#allocation0 + $0x408] sm:$0xf] %v2490_v5 }
  0x39   :  { %v1392_v11 = vsel %vm1028_vm0, %v1390_v7, %v1388_v10  ;;  %515 = vst [vmem:[#allocation0 + $0x400] sm:$0xf] %v2491_v6  ;;  %v2445_v53 = vld [vmem:[%s4278_s0 + $0x2b8] sm:$0xf]  ;;  %v2446_v56 = vld [vmem:[%s4278_s0 + $0x2b4] sm:$0xf] }
  0x3a   :  { %1393 = vrot.lane.b32.xlu1 %v1392_v11, %s2746_s15  ;;  %839 = vst [vmem:[#allocation0 + $0x178] sm:$0xf] %v2572_v8  ;;  %v2447_v57 = vld [vmem:[%s4278_s0 + $0x2b0] sm:$0xf]  ;;  %v2448_v58 = vld [vmem:[%s4278_s0 + $0x2ac] sm:$0xf] }
  0x3b   :  { %843 = vst [vmem:[#allocation0 + $0x170] sm:$0xf] %v2573_v9  ;;  %v2449_v59 = vld [vmem:[%s4278_s0 + $0x2a8] sm:$0xf]  ;;  %v2450_v60 = vld [vmem:[%s4278_s0 + $0x2a4] sm:$0xf] }
  0x3c   :  { %847 = vst [vmem:[#allocation0 + $0x168] sm:$0xf] %v2574_v12  ;;  %v1357_v18 = vld [vmem:[#allocation0 + $0x403] ss:$8 sm:$0xf0]  }
  0x3d   :  { %851 = vst [vmem:[#allocation0 + $0x160] sm:$0xf] %v2575_v13  ;;  %v2451_v61 = vld [vmem:[%s4278_s0 + $0x2a0] sm:$0xf]  ;;  %v2604_v63 = vld [vmem:[%s4278_s0 + $0x3c] sm:$0xf] }
  0x3e   :  { %855 = vst [vmem:[#allocation0 + $0x158] sm:$0xf] %v2576_v14  ;;  %v2605_v0 = vld [vmem:[%s4278_s0 + $0x38] sm:$0xf]  ;;  %v2606_v3 = vld [vmem:[%s4278_s0 + $0x34] sm:$0xf] }
  0x3f   :  { %859 = vst [vmem:[#allocation0 + $0x150] sm:$0xf] %v2577_v15  ;;  %v2607_v4 = vld [vmem:[%s4278_s0 + $0x30] sm:$0xf]  ;;  %v2608_v5 = vld [vmem:[%s4278_s0 + $0x2c] sm:$0xf] }
  0x40   :  { %v1355_v21 = vld [vmem:[#allocation0 + $0x403] ss:$8 sm:$0xf]   ;;  %863 = vst [vmem:[#allocation0 + $0x148] sm:$0xf] %v2578_v16 }
  0x41   :  { %v1359_v22 = vsel %vm1028_vm0, %v1357_v18, %v1355_v21  ;;  %867 = vst [vmem:[#allocation0 + $0x140] sm:$0xf] %v2579_v17  ;;  %v2609_v6 = vld [vmem:[%s4278_s0 + $0x28] sm:$0xf]  ;;  %v2610_v7 = vld [vmem:[%s4278_s0 + $0x24] sm:$0xf] }
  0x42   :  { %1360 = vrot.lane.b32.xlu2 %v1359_v22, %s2746_s15  ;;  %711 = vst [vmem:[#allocation0 + $0x278] sm:$0xf] %v2540_v19  ;;  %v2611_v8 = vld [vmem:[%s4278_s0 + $0x20] sm:$0xf]  ;;  %v2596_v10 = vld [vmem:[%s4278_s0 + $0x5c] sm:$0xf] }
  0x43   :  { %715 = vst [vmem:[#allocation0 + $0x270] sm:$0xf] %v2541_v20  ;;  %v2597_v11 = vld [vmem:[%s4278_s0 + $0x58] sm:$0xf]  ;;  %v2598_v14 = vld [vmem:[%s4278_s0 + $0x54] sm:$0xf] }
  0x44   :  { %719 = vst [vmem:[#allocation0 + $0x268] sm:$0xf] %v2542_v23  ;;  %v1412_v29 = vld [vmem:[#allocation0 + $0x143] ss:$8 sm:$0xf0]  }
  0x45   :  { %723 = vst [vmem:[#allocation0 + $0x260] sm:$0xf] %v2543_v24  ;;  %v2599_v15 = vld [vmem:[%s4278_s0 + $0x50] sm:$0xf]  ;;  %v2600_v16 = vld [vmem:[%s4278_s0 + $0x4c] sm:$0xf] }
  0x46   :  { %727 = vst [vmem:[#allocation0 + $0x258] sm:$0xf] %v2544_v25  ;;  %v2601_v17 = vld [vmem:[%s4278_s0 + $0x48] sm:$0xf]  ;;  %v2602_v18 = vld [vmem:[%s4278_s0 + $0x44] sm:$0xf] }
  0x47   :  { %731 = vst [vmem:[#allocation0 + $0x250] sm:$0xf] %v2545_v26  ;;  %v2603_v19 = vld [vmem:[%s4278_s0 + $0x40] sm:$0xf]  ;;  %v2380_v21 = vld [vmem:[%s4278_s0 + $0x3bc] sm:$0xf] }
  0x48   :  { %v1410_v32 = vld [vmem:[#allocation0 + $0x143] ss:$8 sm:$0xf]   ;;  %735 = vst [vmem:[#allocation0 + $0x248] sm:$0xf] %v2546_v27 }
  0x49   :  { %v1414_v33 = vsel %vm1028_vm0, %v1412_v29, %v1410_v32  ;;  %739 = vst [vmem:[#allocation0 + $0x240] sm:$0xf] %v2547_v28  ;;  %v2381_v22 = vld [vmem:[%s4278_s0 + $0x3b8] sm:$0xf]  ;;  %v2382_v25 = vld [vmem:[%s4278_s0 + $0x3b4] sm:$0xf] }
  0x4a   :  { %1415 = vrot.lane.b32.xlu0 %v1414_v33, %s2746_s15  ;;  %359 = vst [vmem:[#allocation0 + $0x538] sm:$0xf] %v2452_v30  ;;  %v2383_v26 = vld [vmem:[%s4278_s0 + $0x3b0] sm:$0xf]  ;;  %v2384_v27 = vld [vmem:[%s4278_s0 + $0x3ac] sm:$0xf] }
  0x4b   :  { %363 = vst [vmem:[#allocation0 + $0x530] sm:$0xf] %v2453_v31  ;;  %v2385_v28 = vld [vmem:[%s4278_s0 + $0x3a8] sm:$0xf]  ;;  %v2386_v29 = vld [vmem:[%s4278_s0 + $0x3a4] sm:$0xf] }
  0x4c   :  { %367 = vst [vmem:[#allocation0 + $0x528] sm:$0xf] %v2454_v34  ;;  %v1423_v40 = vld [vmem:[#allocation0 + $0x243] ss:$8 sm:$0xf0]  }
  0x4d   :  { %371 = vst [vmem:[#allocation0 + $0x520] sm:$0xf] %v2455_v35  ;;  %v2387_v30 = vld [vmem:[%s4278_s0 + $0x3a0] sm:$0xf]  ;;  %v2508_v32 = vld [vmem:[%s4278_s0 + $0x1bc] sm:$0xf] }
  0x4e   :  { %375 = vst [vmem:[#allocation0 + $0x518] sm:$0xf] %v2456_v36  ;;  %v2509_v33 = vld [vmem:[%s4278_s0 + $0x1b8] sm:$0xf]  ;;  %v2510_v36 = vld [vmem:[%s4278_s0 + $0x1b4] sm:$0xf] }
  0x4f   :  { %379 = vst [vmem:[#allocation0 + $0x510] sm:$0xf] %v2457_v37  ;;  %v2511_v37 = vld [vmem:[%s4278_s0 + $0x1b0] sm:$0xf] }
  0x50   :  { %v1421_v43 = vld [vmem:[#allocation0 + $0x243] ss:$8 sm:$0xf]   ;;  %383 = vst [vmem:[#allocation0 + $0x508] sm:$0xf] %v2458_v38 }
  0x51   :  { %v1425_v44 = vsel %vm1028_vm0, %v1423_v40, %v1421_v43  ;;  %387 = vst [vmem:[#allocation0 + $0x500] sm:$0xf] %v2459_v39  ;;  %v2512_v38 = vld [vmem:[%s4278_s0 + $0x1ac] sm:$0xf]  ;;  %v2513_v39 = vld [vmem:[%s4278_s0 + $0x1a8] sm:$0xf] }
  0x52   :  { %1426 = vrot.lane.b32.xlu1 %v1425_v44, %s2746_s15  ;;  %455 = vst [vmem:[#allocation0 + $0x478] sm:$0xf] %v2476_v41  ;;  %v2514_v40 = vld [vmem:[%s4278_s0 + $0x1a4] sm:$0xf]  ;;  %v2515_v41 = vld [vmem:[%s4278_s0 + $0x1a0] sm:$0xf] }
  0x53   :  { %459 = vst [vmem:[#allocation0 + $0x470] sm:$0xf] %v2477_v42  ;;  %v2500_v43 = vld [vmem:[%s4278_s0 + $0x1dc] sm:$0xf]  ;;  %v2501_v44 = vld [vmem:[%s4278_s0 + $0x1d8] sm:$0xf] }
  0x54   :  { %463 = vst [vmem:[#allocation0 + $0x468] sm:$0xf] %v2478_v45  ;;  %v1368_v51 = vld [vmem:[#allocation0 + $0x503] ss:$8 sm:$0xf0]  }
  0x55   :  { %467 = vst [vmem:[#allocation0 + $0x460] sm:$0xf] %v2479_v46 }
  0x56   :  { %471 = vst [vmem:[#allocation0 + $0x458] sm:$0xf] %v2480_v47  ;;  %v2502_v47 = vld [vmem:[%s4278_s0 + $0x1d4] sm:$0xf] }
  0x57   :  { %475 = vst [vmem:[#allocation0 + $0x450] sm:$0xf] %v2481_v48  ;;  %v2503_v48 = vld [vmem:[%s4278_s0 + $0x1d0] sm:$0xf] }
  0x58   :  { %v1366_v54 = vld [vmem:[#allocation0 + $0x503] ss:$8 sm:$0xf]   ;;  %479 = vst [vmem:[#allocation0 + $0x448] sm:$0xf] %v2482_v49 }
  0x59   :  { %v1370_v55 = vsel %vm1028_vm0, %v1368_v51, %v1366_v54  ;;  %483 = vst [vmem:[#allocation0 + $0x440] sm:$0xf] %v2483_v50  ;;  %v2504_v49 = vld [vmem:[%s4278_s0 + $0x1cc] sm:$0xf]  ;;  %v2505_v50 = vld [vmem:[%s4278_s0 + $0x1c8] sm:$0xf] }
  0x5a   :  { %1371 = vrot.lane.b32.xlu2 %v1370_v55, %s2746_s15  ;;  %327 = vst [vmem:[#allocation0 + $0x578] sm:$0xf] %v2444_v52  ;;  %v2506_v51 = vld [vmem:[%s4278_s0 + $0x1c4] sm:$0xf]  ;;  %v2507_v52 = vld [vmem:[%s4278_s0 + $0x1c0] sm:$0xf] }
  0x5b   :  { %331 = vst [vmem:[#allocation0 + $0x570] sm:$0xf] %v2445_v53  ;;  %v2532_v54 = vld [vmem:[%s4278_s0 + $0x15c] sm:$0xf]  ;;  %v2533_v55 = vld [vmem:[%s4278_s0 + $0x158] sm:$0xf] }
  0x5c   :  { %335 = vst [vmem:[#allocation0 + $0x568] sm:$0xf] %v2446_v56  ;;  %v1445_v62 = vld [vmem:[#allocation0 + $0x443] ss:$8 sm:$0xf0]  }
  0x5d   :  { %339 = vst [vmem:[#allocation0 + $0x560] sm:$0xf] %v2447_v57 }
  0x5e   :  { %343 = vst [vmem:[#allocation0 + $0x558] sm:$0xf] %v2448_v58  ;;  %v2534_v58 = vld [vmem:[%s4278_s0 + $0x154] sm:$0xf] }
  0x5f   :  { %347 = vst [vmem:[#allocation0 + $0x550] sm:$0xf] %v2449_v59  ;;  %v2535_v59 = vld [vmem:[%s4278_s0 + $0x150] sm:$0xf] }
  0x60   :  { %v1443_v1 = vld [vmem:[#allocation0 + $0x443] ss:$8 sm:$0xf]   ;;  %351 = vst [vmem:[#allocation0 + $0x548] sm:$0xf] %v2450_v60 }
  0x61   :  { %v1447_v2 = vsel %vm1028_vm0, %v1445_v62, %v1443_v1  ;;  %355 = vst [vmem:[#allocation0 + $0x540] sm:$0xf] %v2451_v61  ;;  %v2536_v60 = vld [vmem:[%s4278_s0 + $0x14c] sm:$0xf]  ;;  %v2537_v61 = vld [vmem:[%s4278_s0 + $0x148] sm:$0xf] }
  0x62   :  { %1448 = vrot.lane.b32.xlu0 %v1447_v2, %s2746_s15  ;;  %967 = vst [vmem:[#allocation0 + $0x78] sm:$0xf] %v2604_v63  ;;  %v2538_v62 = vld [vmem:[%s4278_s0 + $0x144] sm:$0xf]  ;;  %v2539_v63 = vld [vmem:[%s4278_s0 + $0x140] sm:$0xf] }
  0x63   :  { %971 = vst [vmem:[#allocation0 + $0x70] sm:$0xf] %v2605_v0  ;;  %v2412_v1 = vld [vmem:[%s4278_s0 + $0x33c] sm:$0xf]  ;;  %v2413_v2 = vld [vmem:[%s4278_s0 + $0x338] sm:$0xf] }
  0x64   :  { %975 = vst [vmem:[#allocation0 + $0x68] sm:$0xf] %v2606_v3  ;;  %v1456_v9 = vld [vmem:[#allocation0 + $0x543] ss:$8 sm:$0xf0]  }
  0x65   :  { %979 = vst [vmem:[#allocation0 + $0x60] sm:$0xf] %v2607_v4 }
  0x66   :  { %983 = vst [vmem:[#allocation0 + $0x58] sm:$0xf] %v2608_v5  ;;  %v2414_v5 = vld [vmem:[%s4278_s0 + $0x334] sm:$0xf] }
  0x67   :  { %987 = vst [vmem:[#allocation0 + $0x50] sm:$0xf] %v2609_v6  ;;  %v2415_v6 = vld [vmem:[%s4278_s0 + $0x330] sm:$0xf] }
  0x68   :  { %v1454_v12 = vld [vmem:[#allocation0 + $0x543] ss:$8 sm:$0xf]   ;;  %991 = vst [vmem:[#allocation0 + $0x48] sm:$0xf] %v2610_v7 }
  0x69   :  { %v1458_v13 = vsel %vm1028_vm0, %v1456_v9, %v1454_v12  ;;  %995 = vst [vmem:[#allocation0 + $0x40] sm:$0xf] %v2611_v8  ;;  %v2416_v7 = vld [vmem:[%s4278_s0 + $0x32c] sm:$0xf]  ;;  %v2417_v8 = vld [vmem:[%s4278_s0 + $0x328] sm:$0xf] }
  0x6a   :  { %1459 = vrot.lane.b32.xlu1 %v1458_v13, %s2746_s15  ;;  %935 = vst [vmem:[#allocation0 + $0xb8] sm:$0xf] %v2596_v10  ;;  %v2418_v9 = vld [vmem:[%s4278_s0 + $0x324] sm:$0xf]  ;;  %v2419_v10 = vld [vmem:[%s4278_s0 + $0x320] sm:$0xf] }
  0x6b   :  { %939 = vst [vmem:[#allocation0 + $0xb0] sm:$0xf] %v2597_v11  ;;  %v2404_v12 = vld [vmem:[%s4278_s0 + $0x35c] sm:$0xf]  ;;  %v2405_v13 = vld [vmem:[%s4278_s0 + $0x358] sm:$0xf] }
  0x6c   :  { %943 = vst [vmem:[#allocation0 + $0xa8] sm:$0xf] %v2598_v14  ;;  %v1401_v20 = vld [vmem:[#allocation0 + $0x43] ss:$8 sm:$0xf0]  }
  0x6d   :  { %947 = vst [vmem:[#allocation0 + $0xa0] sm:$0xf] %v2599_v15 }
  0x6e   :  { %951 = vst [vmem:[#allocation0 + $0x98] sm:$0xf] %v2600_v16  ;;  %v2406_v16 = vld [vmem:[%s4278_s0 + $0x354] sm:$0xf] }
  0x6f   :  { %955 = vst [vmem:[#allocation0 + $0x90] sm:$0xf] %v2601_v17  ;;  %v2407_v17 = vld [vmem:[%s4278_s0 + $0x350] sm:$0xf] }
  0x70   :  { %v1399_v23 = vld [vmem:[#allocation0 + $0x43] ss:$8 sm:$0xf]   ;;  %959 = vst [vmem:[#allocation0 + $0x88] sm:$0xf] %v2602_v18 }
  0x71   :  { %v1403_v24 = vsel %vm1028_vm0, %v1401_v20, %v1399_v23  ;;  %963 = vst [vmem:[#allocation0 + $0x80] sm:$0xf] %v2603_v19  ;;  %v2408_v18 = vld [vmem:[%s4278_s0 + $0x34c] sm:$0xf]  ;;  %v2409_v19 = vld [vmem:[%s4278_s0 + $0x348] sm:$0xf] }
  0x72   :  { %1404 = vrot.lane.b32.xlu2 %v1403_v24, %s2746_s15  ;;  %71 = vst [vmem:[#allocation0 + $0x778] sm:$0xf] %v2380_v21  ;;  %v2410_v20 = vld [vmem:[%s4278_s0 + $0x344] sm:$0xf]  ;;  %v2411_v21 = vld [vmem:[%s4278_s0 + $0x340] sm:$0xf] }
  0x73   :  { %75 = vst [vmem:[#allocation0 + $0x770] sm:$0xf] %v2381_v22  ;;  %v2436_v23 = vld [vmem:[%s4278_s0 + $0x2dc] sm:$0xf]  ;;  %v2437_v24 = vld [vmem:[%s4278_s0 + $0x2d8] sm:$0xf] }
  0x74   :  { %79 = vst [vmem:[#allocation0 + $0x768] sm:$0xf] %v2382_v25  ;;  %v1489_v31 = vld [vmem:[#allocation0 + $0x83] ss:$8 sm:$0xf0]  }
  0x75   :  { %83 = vst [vmem:[#allocation0 + $0x760] sm:$0xf] %v2383_v26 }
  0x76   :  { %87 = vst [vmem:[#allocation0 + $0x758] sm:$0xf] %v2384_v27  ;;  %v2438_v27 = vld [vmem:[%s4278_s0 + $0x2d4] sm:$0xf] }
  0x77   :  { %91 = vst [vmem:[#allocation0 + $0x750] sm:$0xf] %v2385_v28  ;;  %v2439_v28 = vld [vmem:[%s4278_s0 + $0x2d0] sm:$0xf] }
  0x78   :  { %v1487_v34 = vld [vmem:[#allocation0 + $0x83] ss:$8 sm:$0xf]   ;;  %95 = vst [vmem:[#allocation0 + $0x748] sm:$0xf] %v2386_v29 }
  0x79   :  { %v1491_v35 = vsel %vm1028_vm0, %v1489_v31, %v1487_v34  ;;  %99 = vst [vmem:[#allocation0 + $0x740] sm:$0xf] %v2387_v30  ;;  %v2440_v29 = vld [vmem:[%s4278_s0 + $0x2cc] sm:$0xf]  ;;  %v2441_v30 = vld [vmem:[%s4278_s0 + $0x2c8] sm:$0xf] }
  0x7a   :  { %1492 = vrot.lane.b32.xlu1 %v1491_v35, %s2746_s15  ;;  %583 = vst [vmem:[#allocation0 + $0x378] sm:$0xf] %v2508_v32  ;;  %v2442_v31 = vld [vmem:[%s4278_s0 + $0x2c4] sm:$0xf]  ;;  %v2443_v32 = vld [vmem:[%s4278_s0 + $0x2c0] sm:$0xf] }
  0x7b   :  { %587 = vst [vmem:[#allocation0 + $0x370] sm:$0xf] %v2509_v33  ;;  %v2564_v34 = vld [vmem:[%s4278_s0 + $0xdc] sm:$0xf]  ;;  %v2565_v35 = vld [vmem:[%s4278_s0 + $0xd8] sm:$0xf] }
  0x7c   :  { %591 = vst [vmem:[#allocation0 + $0x368] sm:$0xf] %v2510_v36  ;;  %v1478_v42 = vld [vmem:[#allocation0 + $0x743] ss:$8 sm:$0xf0]  }
  0x7d   :  { %595 = vst [vmem:[#allocation0 + $0x360] sm:$0xf] %v2511_v37 }
  0x7e   :  { %599 = vst [vmem:[#allocation0 + $0x358] sm:$0xf] %v2512_v38  ;;  %v2566_v38 = vld [vmem:[%s4278_s0 + $0xd4] sm:$0xf] }
  0x7f   :  { %603 = vst [vmem:[#allocation0 + $0x350] sm:$0xf] %v2513_v39  ;;  %v2567_v39 = vld [vmem:[%s4278_s0 + $0xd0] sm:$0xf] }
  0x80   :  { %v1476_v45 = vld [vmem:[#allocation0 + $0x743] ss:$8 sm:$0xf]   ;;  %607 = vst [vmem:[#allocation0 + $0x348] sm:$0xf] %v2514_v40 }
  0x81   :  { %v1480_v46 = vsel %vm1028_vm0, %v1478_v42, %v1476_v45  ;;  %611 = vst [vmem:[#allocation0 + $0x340] sm:$0xf] %v2515_v41  ;;  %v2568_v40 = vld [vmem:[%s4278_s0 + $0xcc] sm:$0xf]  ;;  %v2569_v41 = vld [vmem:[%s4278_s0 + $0xc8] sm:$0xf] }
  0x82   :  { %1481 = vrot.lane.b32.xlu0 %v1480_v46, %s2746_s15  ;;  %551 = vst [vmem:[#allocation0 + $0x3b8] sm:$0xf] %v2500_v43  ;;  %v2570_v42 = vld [vmem:[%s4278_s0 + $0xc4] sm:$0xf]  ;;  %v2571_v43 = vld [vmem:[%s4278_s0 + $0xc0] sm:$0xf] }
  0x83   :  { %555 = vst [vmem:[#allocation0 + $0x3b0] sm:$0xf] %v2501_v44  ;;  %v2556_v45 = vld [vmem:[%s4278_s0 + $0xfc] sm:$0xf]  ;;  %v2557_v46 = vld [vmem:[%s4278_s0 + $0xf8] sm:$0xf] }
  0x84   :  { %559 = vst [vmem:[#allocation0 + $0x3a8] sm:$0xf] %v2502_v47  ;;  %v1434_v53 = vld [vmem:[#allocation0 + $0x343] ss:$8 sm:$0xf0]  }
  0x85   :  { %563 = vst [vmem:[#allocation0 + $0x3a0] sm:$0xf] %v2503_v48 }
  0x86   :  { %567 = vst [vmem:[#allocation0 + $0x398] sm:$0xf] %v2504_v49  ;;  %v2558_v49 = vld [vmem:[%s4278_s0 + $0xf4] sm:$0xf] }
  0x87   :  { %571 = vst [vmem:[#allocation0 + $0x390] sm:$0xf] %v2505_v50  ;;  %v2559_v50 = vld [vmem:[%s4278_s0 + $0xf0] sm:$0xf] }
  0x88   :  { %v1432_v56 = vld [vmem:[#allocation0 + $0x343] ss:$8 sm:$0xf]   ;;  %575 = vst [vmem:[#allocation0 + $0x388] sm:$0xf] %v2506_v51 }
  0x89   :  { %v1436_v57 = vsel %vm1028_vm0, %v1434_v53, %v1432_v56  ;;  %579 = vst [vmem:[#allocation0 + $0x380] sm:$0xf] %v2507_v52  ;;  %v2560_v51 = vld [vmem:[%s4278_s0 + $0xec] sm:$0xf]  ;;  %v2561_v52 = vld [vmem:[%s4278_s0 + $0xe8] sm:$0xf] }
  0x8a   :  { %1437 = vrot.lane.b32.xlu2 %v1436_v57, %s2746_s15  ;;  %679 = vst [vmem:[#allocation0 + $0x2b8] sm:$0xf] %v2532_v54  ;;  %v2562_v53 = vld [vmem:[%s4278_s0 + $0xe4] sm:$0xf]  ;;  %v2563_v54 = vld [vmem:[%s4278_s0 + $0xe0] sm:$0xf] }
  0x8b   :  { %683 = vst [vmem:[#allocation0 + $0x2b0] sm:$0xf] %v2533_v55  ;;  %v2588_v56 = vld [vmem:[%s4278_s0 + $0x7c] sm:$0xf]  ;;  %v2589_v57 = vld [vmem:[%s4278_s0 + $0x78] sm:$0xf] }
  0x8c   :  { %687 = vst [vmem:[#allocation0 + $0x2a8] sm:$0xf] %v2534_v58  ;;  %v1522_v0 = vld [vmem:[#allocation0 + $0x383] ss:$8 sm:$0xf0]  }
  0x8d   :  { %691 = vst [vmem:[#allocation0 + $0x2a0] sm:$0xf] %v2535_v59 }
  0x8e   :  { %695 = vst [vmem:[#allocation0 + $0x298] sm:$0xf] %v2536_v60  ;;  %v2590_v60 = vld [vmem:[%s4278_s0 + $0x74] sm:$0xf] }
  0x8f   :  { %699 = vst [vmem:[#allocation0 + $0x290] sm:$0xf] %v2537_v61  ;;  %v2591_v61 = vld [vmem:[%s4278_s0 + $0x70] sm:$0xf] }
  0x90   :  { %v1520_v3 = vld [vmem:[#allocation0 + $0x383] ss:$8 sm:$0xf]   ;;  %703 = vst [vmem:[#allocation0 + $0x288] sm:$0xf] %v2538_v62 }
  0x91   :  { %v1524_v4 = vsel %vm1028_vm0, %v1522_v0, %v1520_v3  ;;  %707 = vst [vmem:[#allocation0 + $0x280] sm:$0xf] %v2539_v63  ;;  %v2592_v62 = vld [vmem:[%s4278_s0 + $0x6c] sm:$0xf]  ;;  %v2593_v63 = vld [vmem:[%s4278_s0 + $0x68] sm:$0xf] }
  0x92   :  { %1525 = vrot.lane.b32.xlu1 %v1524_v4, %s2746_s15  ;;  %199 = vst [vmem:[#allocation0 + $0x678] sm:$0xf] %v2412_v1  ;;  %v2594_v0 = vld [vmem:[%s4278_s0 + $0x64] sm:$0xf]  ;;  %v2595_v1 = vld [vmem:[%s4278_s0 + $0x60] sm:$0xf] }
  0x93   :  { %203 = vst [vmem:[#allocation0 + $0x670] sm:$0xf] %v2413_v2  ;;  %v2468_v3 = vld [vmem:[%s4278_s0 + $0x25c] sm:$0xf]  ;;  %v2469_v4 = vld [vmem:[%s4278_s0 + $0x258] sm:$0xf] }
  0x94   :  { %207 = vst [vmem:[#allocation0 + $0x668] sm:$0xf] %v2414_v5  ;;  %v1511_v11 = vld [vmem:[#allocation0 + $0x283] ss:$8 sm:$0xf0]  }
  0x95   :  { %211 = vst [vmem:[#allocation0 + $0x660] sm:$0xf] %v2415_v6 }
  0x96   :  { %215 = vst [vmem:[#allocation0 + $0x658] sm:$0xf] %v2416_v7  ;;  %v2470_v7 = vld [vmem:[%s4278_s0 + $0x254] sm:$0xf] }
  0x97   :  { %219 = vst [vmem:[#allocation0 + $0x650] sm:$0xf] %v2417_v8  ;;  %v2471_v8 = vld [vmem:[%s4278_s0 + $0x250] sm:$0xf] }
  0x98   :  { %v1509_v14 = vld [vmem:[#allocation0 + $0x283] ss:$8 sm:$0xf]   ;;  %223 = vst [vmem:[#allocation0 + $0x648] sm:$0xf] %v2418_v9 }
  0x99   :  { %v1513_v15 = vsel %vm1028_vm0, %v1511_v11, %v1509_v14  ;;  %227 = vst [vmem:[#allocation0 + $0x640] sm:$0xf] %v2419_v10  ;;  %v2472_v9 = vld [vmem:[%s4278_s0 + $0x24c] sm:$0xf]  ;;  %v2473_v10 = vld [vmem:[%s4278_s0 + $0x248] sm:$0xf] }
  0x9a   :  { %1514 = vrot.lane.b32.xlu0 %v1513_v15, %s2746_s15  ;;  %167 = vst [vmem:[#allocation0 + $0x6b8] sm:$0xf] %v2404_v12  ;;  %v2474_v11 = vld [vmem:[%s4278_s0 + $0x244] sm:$0xf]  ;;  %v2475_v12 = vld [vmem:[%s4278_s0 + $0x240] sm:$0xf] }
  0x9b   :  { %171 = vst [vmem:[#allocation0 + $0x6b0] sm:$0xf] %v2405_v13  ;;  %v2460_v14 = vld [vmem:[%s4278_s0 + $0x27c] sm:$0xf]  ;;  %v2461_v15 = vld [vmem:[%s4278_s0 + $0x278] sm:$0xf] }
  0x9c   :  { %175 = vst [vmem:[#allocation0 + $0x6a8] sm:$0xf] %v2406_v16  ;;  %v1467_v22 = vld [vmem:[#allocation0 + $0x643] ss:$8 sm:$0xf0]  }
  0x9d   :  { %179 = vst [vmem:[#allocation0 + $0x6a0] sm:$0xf] %v2407_v17 }
  0x9e   :  { %183 = vst [vmem:[#allocation0 + $0x698] sm:$0xf] %v2408_v18  ;;  %v2462_v18 = vld [vmem:[%s4278_s0 + $0x274] sm:$0xf] }
  0x9f   :  { %187 = vst [vmem:[#allocation0 + $0x690] sm:$0xf] %v2409_v19  ;;  %v2463_v19 = vld [vmem:[%s4278_s0 + $0x270] sm:$0xf] }
  0xa0   :  { %v1465_v25 = vld [vmem:[#allocation0 + $0x643] ss:$8 sm:$0xf]   ;;  %191 = vst [vmem:[#allocation0 + $0x688] sm:$0xf] %v2410_v20 }
  0xa1   :  { %v1469_v26 = vsel %vm1028_vm0, %v1467_v22, %v1465_v25  ;;  %195 = vst [vmem:[#allocation0 + $0x680] sm:$0xf] %v2411_v21  ;;  %v2464_v20 = vld [vmem:[%s4278_s0 + $0x26c] sm:$0xf]  ;;  %v2465_v21 = vld [vmem:[%s4278_s0 + $0x268] sm:$0xf] }
  0xa2   :  { %1470 = vrot.lane.b32.xlu2 %v1469_v26, %s2746_s15  ;;  %295 = vst [vmem:[#allocation0 + $0x5b8] sm:$0xf] %v2436_v23  ;;  %v2466_v22 = vld [vmem:[%s4278_s0 + $0x264] sm:$0xf]  ;;  %v2467_v23 = vld [vmem:[%s4278_s0 + $0x260] sm:$0xf] }
  0xa3   :  { %299 = vst [vmem:[#allocation0 + $0x5b0] sm:$0xf] %v2437_v24  ;;  %v2492_v25 = vld [vmem:[%s4278_s0 + $0x1fc] sm:$0xf]  ;;  %v2493_v26 = vld [vmem:[%s4278_s0 + $0x1f8] sm:$0xf] }
  0xa4   :  { %303 = vst [vmem:[#allocation0 + $0x5a8] sm:$0xf] %v2438_v27  ;;  %v1555_v33 = vld [vmem:[#allocation0 + $0x683] ss:$8 sm:$0xf0]  }
  0xa5   :  { %307 = vst [vmem:[#allocation0 + $0x5a0] sm:$0xf] %v2439_v28 }
  0xa6   :  { %311 = vst [vmem:[#allocation0 + $0x598] sm:$0xf] %v2440_v29  ;;  %v2494_v29 = vld [vmem:[%s4278_s0 + $0x1f4] sm:$0xf] }
  0xa7   :  { %315 = vst [vmem:[#allocation0 + $0x590] sm:$0xf] %v2441_v30  ;;  %v2495_v30 = vld [vmem:[%s4278_s0 + $0x1f0] sm:$0xf] }
  0xa8   :  { %v1553_v36 = vld [vmem:[#allocation0 + $0x683] ss:$8 sm:$0xf]   ;;  %319 = vst [vmem:[#allocation0 + $0x588] sm:$0xf] %v2442_v31 }
  0xa9   :  { %v1557_v37 = vsel %vm1028_vm0, %v1555_v33, %v1553_v36  ;;  %323 = vst [vmem:[#allocation0 + $0x580] sm:$0xf] %v2443_v32  ;;  %v2496_v31 = vld [vmem:[%s4278_s0 + $0x1ec] sm:$0xf]  ;;  %v2497_v32 = vld [vmem:[%s4278_s0 + $0x1e8] sm:$0xf] }
  0xaa   :  { %1558 = vrot.lane.b32.xlu1 %v1557_v37, %s2746_s15  ;;  %807 = vst [vmem:[#allocation0 + $0x1b8] sm:$0xf] %v2564_v34  ;;  %v2498_v33 = vld [vmem:[%s4278_s0 + $0x1e4] sm:$0xf]  ;;  %v2499_v34 = vld [vmem:[%s4278_s0 + $0x1e0] sm:$0xf] }
  0xab   :  { %811 = vst [vmem:[#allocation0 + $0x1b0] sm:$0xf] %v2565_v35  ;;  %v2396_v36 = vld [vmem:[%s4278_s0 + $0x37c] sm:$0xf]  ;;  %v2397_v37 = vld [vmem:[%s4278_s0 + $0x378] sm:$0xf] }
  0xac   :  { %815 = vst [vmem:[#allocation0 + $0x1a8] sm:$0xf] %v2566_v38  ;;  %v1544_v44 = vld [vmem:[#allocation0 + $0x583] ss:$8 sm:$0xf0]  }
  0xad   :  { %819 = vst [vmem:[#allocation0 + $0x1a0] sm:$0xf] %v2567_v39 }
  0xae   :  { %823 = vst [vmem:[#allocation0 + $0x198] sm:$0xf] %v2568_v40  ;;  %v2398_v40 = vld [vmem:[%s4278_s0 + $0x374] sm:$0xf] }
  0xaf   :  { %827 = vst [vmem:[#allocation0 + $0x190] sm:$0xf] %v2569_v41  ;;  %v2399_v41 = vld [vmem:[%s4278_s0 + $0x370] sm:$0xf] }
  0xb0   :  { %v1542_v47 = vld [vmem:[#allocation0 + $0x583] ss:$8 sm:$0xf]   ;;  %831 = vst [vmem:[#allocation0 + $0x188] sm:$0xf] %v2570_v42 }
  0xb1   :  { %v1546_v48 = vsel %vm1028_vm0, %v1544_v44, %v1542_v47  ;;  %835 = vst [vmem:[#allocation0 + $0x180] sm:$0xf] %v2571_v43  ;;  %v2400_v42 = vld [vmem:[%s4278_s0 + $0x36c] sm:$0xf]  ;;  %v2401_v43 = vld [vmem:[%s4278_s0 + $0x368] sm:$0xf] }
  0xb2   :  { %1547 = vrot.lane.b32.xlu0 %v1546_v48, %s2746_s15  ;;  %775 = vst [vmem:[#allocation0 + $0x1f8] sm:$0xf] %v2556_v45  ;;  %v2402_v44 = vld [vmem:[%s4278_s0 + $0x364] sm:$0xf]  ;;  %v2403_v45 = vld [vmem:[%s4278_s0 + $0x360] sm:$0xf] }
  0xb3   :  { %779 = vst [vmem:[#allocation0 + $0x1f0] sm:$0xf] %v2557_v46  ;;  %v2372_v47 = vld [vmem:[%s4278_s0 + $0x3dc] sm:$0xf]  ;;  %v2373_v48 = vld [vmem:[%s4278_s0 + $0x3d8] sm:$0xf] }
  0xb4   :  { %783 = vst [vmem:[#allocation0 + $0x1e8] sm:$0xf] %v2558_v49  ;;  %v1500_v55 = vld [vmem:[#allocation0 + $0x183] ss:$8 sm:$0xf0]  }
  0xb5   :  { %787 = vst [vmem:[#allocation0 + $0x1e0] sm:$0xf] %v2559_v50 }
  0xb6   :  { %791 = vst [vmem:[#allocation0 + $0x1d8] sm:$0xf] %v2560_v51  ;;  %v2374_v51 = vld [vmem:[%s4278_s0 + $0x3d4] sm:$0xf] }
  0xb7   :  { %795 = vst [vmem:[#allocation0 + $0x1d0] sm:$0xf] %v2561_v52  ;;  %v2375_v52 = vld [vmem:[%s4278_s0 + $0x3d0] sm:$0xf] }
  0xb8   :  { %v1498_v58 = vld [vmem:[#allocation0 + $0x183] ss:$8 sm:$0xf]   ;;  %799 = vst [vmem:[#allocation0 + $0x1c8] sm:$0xf] %v2562_v53 }
  0xb9   :  { %v1502_v59 = vsel %vm1028_vm0, %v1500_v55, %v1498_v58  ;;  %803 = vst [vmem:[#allocation0 + $0x1c0] sm:$0xf] %v2563_v54  ;;  %v2376_v53 = vld [vmem:[%s4278_s0 + $0x3cc] sm:$0xf]  ;;  %v2377_v54 = vld [vmem:[%s4278_s0 + $0x3c8] sm:$0xf] }
  0xba   :  { %1503 = vrot.lane.b32.xlu2 %v1502_v59, %s2746_s15  ;;  %903 = vst [vmem:[#allocation0 + $0xf8] sm:$0xf] %v2588_v56  ;;  %v2378_v55 = vld [vmem:[%s4278_s0 + $0x3c4] sm:$0xf]  ;;  %v2379_v56 = vld [vmem:[%s4278_s0 + $0x3c0] sm:$0xf] }
  0xbb   :  { %907 = vst [vmem:[#allocation0 + $0xf0] sm:$0xf] %v2589_v57  ;;  %v2364_v58 = vld [vmem:[%s4278_s0 + $0x3fc] sm:$0xf]  ;;  %v2365_v59 = vld [vmem:[%s4278_s0 + $0x3f8] sm:$0xf] }
  0xbc   :  { %911 = vst [vmem:[#allocation0 + $0xe8] sm:$0xf] %v2590_v60  ;;  %v1588_v2 = vld [vmem:[#allocation0 + $0x1c3] ss:$8 sm:$0xf0]  }
  0xbd   :  { %915 = vst [vmem:[#allocation0 + $0xe0] sm:$0xf] %v2591_v61 }
  0xbe   :  { %919 = vst [vmem:[#allocation0 + $0xd8] sm:$0xf] %v2592_v62  ;;  %v2366_v62 = vld [vmem:[%s4278_s0 + $0x3f4] sm:$0xf] }
  0xbf   :  { %923 = vst [vmem:[#allocation0 + $0xd0] sm:$0xf] %v2593_v63  ;;  %v2367_v63 = vld [vmem:[%s4278_s0 + $0x3f0] sm:$0xf] }
  0xc0   :  { %v1586_v5 = vld [vmem:[#allocation0 + $0x1c3] ss:$8 sm:$0xf]   ;;  %927 = vst [vmem:[#allocation0 + $0xc8] sm:$0xf] %v2594_v0 }
  0xc1   :  { %v1590_v6 = vsel %vm1028_vm0, %v1588_v2, %v1586_v5  ;;  %931 = vst [vmem:[#allocation0 + $0xc0] sm:$0xf] %v2595_v1  ;;  %v2368_v0 = vld [vmem:[%s4278_s0 + $0x3ec] sm:$0xf]  ;;  %v2369_v1 = vld [vmem:[%s4278_s0 + $0x3e8] sm:$0xf] }
  0xc2   :  { %1591 = vrot.lane.b32.xlu1 %v1590_v6, %s2746_s15  ;;  %423 = vst [vmem:[#allocation0 + $0x4b8] sm:$0xf] %v2468_v3  ;;  %v1673_v2 = vld [vmem:[#allocation0 + $0x102] ss:$8 sm:$0xf]  }
  0xc3   :  { %427 = vst [vmem:[#allocation0 + $0x4b0] sm:$0xf] %v2469_v4  ;;  %v1675_v3 = vld [vmem:[#allocation0 + $0x102] ss:$8 sm:$0xf0]  }
  0xc4   :  { %431 = vst [vmem:[#allocation0 + $0x4a8] sm:$0xf] %v2470_v7  ;;  %v1577_v13 = vld [vmem:[#allocation0 + $0xc3] ss:$8 sm:$0xf0]   ;;  %v1677_v7 = vsel %vm1028_vm0, %v1675_v3, %v1673_v2 }
  0xc5   :  { %435 = vst [vmem:[#allocation0 + $0x4a0] sm:$0xf] %v2471_v8  ;;  %v2370_v4 = vld [vmem:[%s4278_s0 + $0x3e4] sm:$0xf]  ;;  %v2371_v5 = vld [vmem:[%s4278_s0 + $0x3e0] sm:$0xf] }
  0xc6   :  { %439 = vst [vmem:[#allocation0 + $0x498] sm:$0xf] %v2472_v9  ;;  %v2524_v8 = vld [vmem:[%s4278_s0 + $0x17c] sm:$0xf]  ;;  %v2525_v9 = vld [vmem:[%s4278_s0 + $0x178] sm:$0xf] }
  0xc7   :  { %443 = vst [vmem:[#allocation0 + $0x490] sm:$0xf] %v2473_v10  ;;  %v1665_v2 = vld [vmem:[#allocation0 + $0x2] ss:$8 sm:$0xf0]  }
  0xc8   :  { %v1575_v16 = vld [vmem:[#allocation0 + $0xc3] ss:$8 sm:$0xf]   ;;  %447 = vst [vmem:[#allocation0 + $0x488] sm:$0xf] %v2474_v11 }
  0xc9   :  { %v1579_v17 = vsel %vm1028_vm0, %v1577_v13, %v1575_v16  ;;  %451 = vst [vmem:[#allocation0 + $0x480] sm:$0xf] %v2475_v12  ;;  %v2526_v12 = vld [vmem:[%s4278_s0 + $0x174] sm:$0xf]  ;;  %v2527_v13 = vld [vmem:[%s4278_s0 + $0x170] sm:$0xf] }
  0xca   :  { %1580 = vrot.lane.b32.xlu0 %v1579_v17, %s2746_s15  ;;  %391 = vst [vmem:[#allocation0 + $0x4f8] sm:$0xf] %v2460_v14  ;;  %v2528_v14 = vld [vmem:[%s4278_s0 + $0x16c] sm:$0xf] }
  0xcb   :  { %395 = vst [vmem:[#allocation0 + $0x4f0] sm:$0xf] %v2461_v15  ;;  %v2529_v15 = vld [vmem:[%s4278_s0 + $0x168] sm:$0xf] }
  0xcc   :  { %399 = vst [vmem:[#allocation0 + $0x4e8] sm:$0xf] %v2462_v18  ;;  %v1533_v24 = vld [vmem:[#allocation0 + $0x483] ss:$8 sm:$0xf0]  }
  0xcd   :  { %403 = vst [vmem:[#allocation0 + $0x4e0] sm:$0xf] %v2463_v19  ;;  %v1706_v16 = vld [vmem:[#allocation0 + $0x402] ss:$8 sm:$0xf]  }
  0xce   :  { %407 = vst [vmem:[#allocation0 + $0x4d8] sm:$0xf] %v2464_v20  ;;  %v1708_v17 = vld [vmem:[#allocation0 + $0x402] ss:$8 sm:$0xf0]  }
  0xcf   :  { %411 = vst [vmem:[#allocation0 + $0x4d0] sm:$0xf] %v2465_v21  ;;  %v2530_v18 = vld [vmem:[%s4278_s0 + $0x164] sm:$0xf]  ;;  %v2531_v19 = vld [vmem:[%s4278_s0 + $0x160] sm:$0xf]  ;;  %v1710_v21 = vsel %vm1028_vm0, %v1708_v17, %v1706_v16 }
  0xd0   :  { %v1531_v27 = vld [vmem:[#allocation0 + $0x483] ss:$8 sm:$0xf]   ;;  %415 = vst [vmem:[#allocation0 + $0x4c8] sm:$0xf] %v2466_v22 }
  0xd1   :  { %v1535_v28 = vsel %vm1028_vm0, %v1533_v24, %v1531_v27  ;;  %419 = vst [vmem:[#allocation0 + $0x4c0] sm:$0xf] %v2467_v23  ;;  %v2428_v22 = vld [vmem:[%s4278_s0 + $0x2fc] sm:$0xf]  ;;  %v2429_v23 = vld [vmem:[%s4278_s0 + $0x2f8] sm:$0xf] }
  0xd2   :  { %1536 = vrot.lane.b32.xlu2 %v1535_v28, %s2746_s15  ;;  %519 = vst [vmem:[#allocation0 + $0x3f8] sm:$0xf] %v2492_v25  ;;  %v2431_v27 = vld [vmem:[%s4278_s0 + $0x2f0] sm:$0xf] }
  0xd3   :  { %523 = vst [vmem:[#allocation0 + $0x3f0] sm:$0xf] %v2493_v26  ;;  %v2430_v26 = vld [vmem:[%s4278_s0 + $0x2f4] sm:$0xf] }
  0xd4   :  { %527 = vst [vmem:[#allocation0 + $0x3e8] sm:$0xf] %v2494_v29  ;;  %v1621_v35 = vld [vmem:[#allocation0 + $0x4c3] ss:$8 sm:$0xf0]  }
  0xd5   :  { %531 = vst [vmem:[#allocation0 + $0x3e0] sm:$0xf] %v2495_v30  ;;  %v1684_v28 = vld [vmem:[#allocation0 + $0x202] ss:$8 sm:$0xf]  }
  0xd6   :  { %535 = vst [vmem:[#allocation0 + $0x3d8] sm:$0xf] %v2496_v31  ;;  %v1686_v29 = vld [vmem:[#allocation0 + $0x202] ss:$8 sm:$0xf0]  }
  0xd7   :  { %539 = vst [vmem:[#allocation0 + $0x3d0] sm:$0xf] %v2497_v32  ;;  %v2432_v30 = vld [vmem:[%s4278_s0 + $0x2ec] sm:$0xf]  ;;  %v2433_v31 = vld [vmem:[%s4278_s0 + $0x2e8] sm:$0xf]  ;;  %v1318_v32 = vpop.permute.xlu0 %1317  }
  0xd8   :  { %v1619_v38 = vld [vmem:[#allocation0 + $0x4c3] ss:$8 sm:$0xf]   ;;  %543 = vst [vmem:[#allocation0 + $0x3c8] sm:$0xf] %v2498_v33  ;;  %v1339_v33 = vpop.permute.xlu1 %1338  }
  0xd9   :  { %v1623_v39 = vsel %vm1028_vm0, %v1621_v35, %v1619_v38  ;;  %547 = vst [vmem:[#allocation0 + $0x3c0] sm:$0xf] %v2499_v34  ;;  %v2434_v34 = vld [vmem:[%s4278_s0 + $0x2e4] sm:$0xf] }
  0xda   :  { %1624 = vrot.lane.b32.xlu1 %v1623_v39, %s2746_s15  ;;  %135 = vst [vmem:[#allocation0 + $0x6f8] sm:$0xf] %v2396_v36  ;;  %v1739_v35 = vld [vmem:[#allocation0 + $0x702] ss:$8 sm:$0xf]   ;;  %v1361_v36 = vpop.permute.xlu2 %1360  }
  0xdb   :  { %139 = vst [vmem:[#allocation0 + $0x6f0] sm:$0xf] %v2397_v37  ;;  %v2435_v37 = vld [vmem:[%s4278_s0 + $0x2e0] sm:$0xf] }
  0xdc   :  { %143 = vst [vmem:[#allocation0 + $0x6e8] sm:$0xf] %v2398_v40  ;;  %v1610_v46 = vld [vmem:[#allocation0 + $0x3c3] ss:$8 sm:$0xf0]  }
  0xdd   :  { %147 = vst [vmem:[#allocation0 + $0x6e0] sm:$0xf] %v2399_v41  ;;  %v1741_v38 = vld [vmem:[#allocation0 + $0x702] ss:$8 sm:$0xf0]   ;;  %v1688_v41 = vsel %vm1028_vm0, %v1686_v29, %v1684_v28 }
  0xde   :  { %151 = vst [vmem:[#allocation0 + $0x6d8] sm:$0xf] %v2400_v42  ;;  %v1026_v40 = vld [vmem:[#allocation0] ss:$8 sm:$0xf]  }
  0xdf   :  { %155 = vst [vmem:[#allocation0 + $0x6d0] sm:$0xf] %v2401_v43  ;;  %v1027_v42 = vld [vmem:[#allocation0] ss:$8 sm:$0xf0]  }
  0xe0   :  { %v1608_v49 = vld [vmem:[#allocation0 + $0x3c3] ss:$8 sm:$0xf]   ;;  %159 = vst [vmem:[#allocation0 + $0x6c8] sm:$0xf] %v2402_v44  ;;  %v1743_v44 = vsel %vm1028_vm0, %v1741_v38, %v1739_v35 }
  0xe1   :  { %v1612_v50 = vsel %vm1028_vm0, %v1610_v46, %v1608_v49  ;;  %163 = vst [vmem:[#allocation0 + $0x6c0] sm:$0xf] %v2403_v45  ;;  %v1029_v45 = vsel %vm1028_vm0, %v1027_v42, %v1026_v40  ;;  %v1719_v49 = vld [vmem:[#allocation0 + $0x502] ss:$8 sm:$0xf0]  }
  0xe2   :  { %1613 = vrot.lane.b32.xlu0 %v1612_v50, %s2746_s15  ;;  %39 = vst [vmem:[#allocation0 + $0x7b8] sm:$0xf] %v2372_v47  ;;  %v1096_v47 = vld [vmem:[#allocation0 + $0x200] ss:$8 sm:$0xf]  }
  0xe3   :  { %43 = vst [vmem:[#allocation0 + $0x7b0] sm:$0xf] %v2373_v48  ;;  %v1717_v48 = vld [vmem:[#allocation0 + $0x502] ss:$8 sm:$0xf]  }
  0xe4   :  { %47 = vst [vmem:[#allocation0 + $0x7a8] sm:$0xf] %v2374_v51  ;;  %v1643_v57 = vld [vmem:[#allocation0 + $0x6c3] ss:$8 sm:$0xf0]   ;;  %v1328_v51 = vpop.permute.xlu0 %1327  }
  0xe5   :  { %51 = vst [vmem:[#allocation0 + $0x7a0] sm:$0xf] %v2375_v52  ;;  %v1098_v50 = vld [vmem:[#allocation0 + $0x200] ss:$8 sm:$0xf0]   ;;  %v1350_v52 = vpop.permute.xlu1 %1349  }
  0xe6   :  { %55 = vst [vmem:[#allocation0 + $0x798] sm:$0xf] %v2376_v53  ;;  %v1772_v53 = vld [vmem:[#allocation0 + $0x242] ss:$8 sm:$0xf]  }
  0xe7   :  { %59 = vst [vmem:[#allocation0 + $0x790] sm:$0xf] %v2377_v54  ;;  %v1100_v54 = vsel %vm1028_vm0, %v1098_v50, %v1096_v47  ;;  %v1750_v3 = vld [vmem:[#allocation0 + $0x42] ss:$8 sm:$0xf]  }
  0xe8   :  { %v1641_v60 = vld [vmem:[#allocation0 + $0x6c3] ss:$8 sm:$0xf]   ;;  %63 = vst [vmem:[#allocation0 + $0x788] sm:$0xf] %v2378_v55 }
  0xe9   :  { %v1645_v61 = vsel %vm1028_vm0, %v1643_v57, %v1641_v60  ;;  %67 = vst [vmem:[#allocation0 + $0x780] sm:$0xf] %v2379_v56  ;;  %v1168_v55 = vld [vmem:[#allocation0 + $0x400] ss:$8 sm:$0xf]   ;;  %v1372_v56 = vpop.permute.xlu2 %1371  }
  0xea   :  { %1646 = vrot.lane.b32.xlu0 %v1645_v61, %s2746_s15  ;;  %7 = vst [vmem:[#allocation0 + $0x7f8] sm:$0xf] %v2364_v58  ;;  %v1774_v57 = vld [vmem:[#allocation0 + $0x242] ss:$8 sm:$0xf0]   ;;  %v1721_v61 = vsel %vm1028_vm0, %v1719_v49, %v1717_v48 }
  0xeb   :  { %11 = vst [vmem:[#allocation0 + $0x7f0] sm:$0xf] %v2365_v59  ;;  %v1170_v58 = vld [vmem:[#allocation0 + $0x400] ss:$8 sm:$0xf0]  }
  0xec   :  { %15 = vst [vmem:[#allocation0 + $0x7e8] sm:$0xf] %v2366_v62  ;;  %v1566_v6 = vld [vmem:[#allocation0 + $0x783] ss:$8 sm:$0xf0]   ;;  %v1172_v60 = vsel %vm1028_vm0, %v1170_v58, %v1168_v55 }
  0xed   :  { %19 = vst [vmem:[#allocation0 + $0x7e0] sm:$0xf] %v2367_v63  ;;  %v1776_v63 = vsel %vm1028_vm0, %v1774_v57, %v1772_v53  ;;  %v1206_v17 = vld [vmem:[#allocation0 + $0x500] ss:$8 sm:$0xf0]  }
  0xee   :  { %23 = vst [vmem:[#allocation0 + $0x7d8] sm:$0xf] %v2368_v0  ;;  %v1838_v28 = vld [vmem:[#allocation0 + $0x82] ss:$8 sm:$0xf]  }
  0xef   :  { %27 = vst [vmem:[#allocation0 + $0x7d0] sm:$0xf] %v2369_v1  ;;  %v1663_v1 = vld [vmem:[#allocation0 + $0x2] ss:$8 sm:$0xf]  }
  0xf0   :  { %v1564_v10 = vld [vmem:[#allocation0 + $0x783] ss:$8 sm:$0xf]   ;;  %31 = vst [vmem:[#allocation0 + $0x7c8] sm:$0xf] %v2370_v4 }
  0xf1   :  { %v1568_v11 = vsel %vm1028_vm0, %v1566_v6, %v1564_v10  ;;  %35 = vst [vmem:[#allocation0 + $0x7c0] sm:$0xf] %v2371_v5  ;;  %v1752_v4 = vld [vmem:[#allocation0 + $0x42] ss:$8 sm:$0xf0]   ;;  %v1383_v6 = vpop.permute.xlu0 %1382  }
  0xf2   :  { %1569 = vrot.lane.b32.xlu2 %v1568_v11, %s2746_s15  ;;  %1678 = vrot.lane.b32.xlu0 %v1677_v7, %s2747_s18  ;;  %647 = vst [vmem:[#allocation0 + $0x2f8] sm:$0xf] %v2524_v8  ;;  %v1060_v5 = vld [vmem:[#allocation0 + $0x100] ss:$8 sm:$0xf]   ;;  %v1394_v7 = vpop.permute.xlu1 %1393  }
  0xf3   :  { %651 = vst [vmem:[#allocation0 + $0x2f0] sm:$0xf] %v2525_v9  ;;  %v1805_v8 = vld [vmem:[#allocation0 + $0x542] ss:$8 sm:$0xf]  }
  0xf4   :  { %655 = vst [vmem:[#allocation0 + $0x2e8] sm:$0xf] %v2526_v12  ;;  %v1654_v20 = vld [vmem:[#allocation0 + $0x7c3] ss:$8 sm:$0xf0]   ;;  %v1405_v12 = vpop.permute.xlu2 %1404  }
  0xf5   :  { %659 = vst [vmem:[#allocation0 + $0x2e0] sm:$0xf] %v2527_v13  ;;  %v1807_v9 = vld [vmem:[#allocation0 + $0x542] ss:$8 sm:$0xf0]  }
  0xf6   :  { %663 = vst [vmem:[#allocation0 + $0x2d8] sm:$0xf] %v2528_v14  ;;  %v1062_v10 = vld [vmem:[#allocation0 + $0x100] ss:$8 sm:$0xf0]  }
  0xf7   :  { %667 = vst [vmem:[#allocation0 + $0x2d0] sm:$0xf] %v2529_v15  ;;  %v1132_v11 = vld [vmem:[#allocation0 + $0x300] ss:$8 sm:$0xf]   ;;  %v1064_v13 = vsel %vm1028_vm0, %v1062_v10, %v1060_v5 }
  0xf8   :  { %v1652_v24 = vld [vmem:[#allocation0 + $0x7c3] ss:$8 sm:$0xf]   ;;  %671 = vst [vmem:[#allocation0 + $0x2c8] sm:$0xf] %v2530_v18 }
  0xf9   :  { %v1656_v25 = vsel %vm1028_vm0, %v1654_v20, %v1652_v24  ;;  %675 = vst [vmem:[#allocation0 + $0x2c0] sm:$0xf] %v2531_v19  ;;  %v1134_v14 = vld [vmem:[#allocation0 + $0x300] ss:$8 sm:$0xf0]   ;;  %v1667_v19 = vsel %vm1028_vm0, %v1665_v2, %v1663_v1  ;;  %v1754_v20 = vsel %vm1028_vm0, %v1752_v4, %v1750_v3 }
  0xfa   :  { %1657 = vrot.lane.b32.xlu1 %v1656_v25, %s2746_s15  ;;  %1711 = vrot.lane.b32.xlu0 %v1710_v21, %s2747_s18  ;;  %263 = vst [vmem:[#allocation0 + $0x5f8] sm:$0xf] %v2428_v22  ;;  %v1204_v15 = vld [vmem:[#allocation0 + $0x500] ss:$8 sm:$0xf]   ;;  %v1136_v16 = vsel %vm1028_vm0, %v1134_v14, %v1132_v11  ;;  %v1809_v21 = vsel %vm1028_vm0, %v1807_v9, %v1805_v8 }
  0xfb   :  { %267 = vst [vmem:[#allocation0 + $0x5f0] sm:$0xf] %v2429_v23  ;;  %v1208_v18 = vsel %vm1028_vm0, %v1206_v17, %v1204_v15  ;;  %v1695_v22 = vld [vmem:[#allocation0 + $0x302] ss:$8 sm:$0xf]  }
  0xfc   :  { %271 = vst [vmem:[#allocation0 + $0x5e8] sm:$0xf] %v2430_v26  ;;  %v1599_v39 = vld [vmem:[#allocation0 + $0x2c3] ss:$8 sm:$0xf0]   ;;  %v1416_v26 = vpop.permute.xlu0 %1415  }
  0xfd   :  { %275 = vst [vmem:[#allocation0 + $0x5e0] sm:$0xf] %v2431_v27  ;;  %v1697_v23 = vld [vmem:[#allocation0 + $0x302] ss:$8 sm:$0xf0]   ;;  %v1427_v27 = vpop.permute.xlu1 %1426  }
  0xfe   :  { %279 = vst [vmem:[#allocation0 + $0x5d8] sm:$0xf] %v2432_v30  ;;  %v1783_v24 = vld [vmem:[#allocation0 + $0x342] ss:$8 sm:$0xf]  }
  0xff   :  { %283 = vst [vmem:[#allocation0 + $0x5d0] sm:$0xf] %v2433_v31  ;;  %v1785_v25 = vld [vmem:[#allocation0 + $0x342] ss:$8 sm:$0xf0]   ;;  %v1438_v31 = vpop.permute.xlu2 %1437  }
 0x100   :  { %v1597_v43 = vld [vmem:[#allocation0 + $0x2c3] ss:$8 sm:$0xf]   ;;  %287 = vst [vmem:[#allocation0 + $0x5c8] sm:$0xf] %v2434_v34  ;;  %v1787_v40 = vsel %vm1028_vm0, %v1785_v25, %v1783_v24 }
 0x101   :  { %v1601_v46 = vsel %vm1028_vm0, %v1599_v39, %v1597_v43  ;;  %291 = vst [vmem:[#allocation0 + $0x5c0] sm:$0xf] %v2435_v37  ;;  %v1840_v29 = vld [vmem:[#allocation0 + $0x82] ss:$8 sm:$0xf0]   ;;  %v1699_v39 = vsel %vm1028_vm0, %v1697_v23, %v1695_v22 }
 0x102   :  { %1602 = vrot.lane.b32.xlu2 %v1601_v46, %s2746_s15  ;;  %1689 = vrot.lane.b32.xlu1 %v1688_v41, %s2747_s18  ;;  %1031 = vst.msk [vmem:[%s4279_s1] sm:$0xff] %vm1030_vm1, %v1029_v45   ;;  %v1033_v30 = vld [vmem:[#allocation0 + $0x40] ss:$8 sm:$0xf]   ;;  %v1842_v42 = vsel %vm1028_vm0, %v1840_v29, %v1838_v28 }
 0x103   :  { %1744 = vrot.lane.b32.xlu0 %v1743_v44, %s2747_s18  ;;  %1320 = vst.msk [vmem:[%s4279_s1] sm:$0xff] %vm1319_vm2, %v1318_v32   ;;  %v1035_v32 = vld [vmem:[#allocation0 + $0x40] ss:$8 sm:$0xf0]  }
 0x104   :  { %2626 = vst.msk [vmem:[%s4279_s1 + $0x40] sm:$0xff] %vm1030_vm1, %v1100_v54   ;;  %v1632_v59 = vld [vmem:[#allocation0 + $0x5c3] ss:$8 sm:$0xf0]   ;;  %v1037_v34 = vsel %vm1028_vm0, %v1035_v32, %v1033_v30  ;;  %v1449_v47 = vpop.permute.xlu0 %1448  }
 0x105   :  { %2651 = vst.msk [vmem:[%s4279_s1 + $0x40] sm:$0xff] %vm1319_vm2, %v1339_v33   ;;  %v1240_v33 = vld [vmem:[#allocation0 + $0x600] ss:$8 sm:$0xf]   ;;  %v3691_v48 = vpop.permute.xlu1 %1459  }
 0x106   :  { %2634 = vst.msk [vmem:[%s4279_s1 + $0x80] sm:$0xff] %vm1030_vm1, %v1172_v60   ;;  %v1242_v35 = vld [vmem:[#allocation0 + $0x600] ss:$8 sm:$0xf0]  }
 0x107   :  { %2653 = vst.msk [vmem:[%s4279_s1 + $0x80] sm:$0xff] %vm1319_vm2, %v1361_v36   ;;  %v1276_v36 = vld [vmem:[#allocation0 + $0x700] ss:$8 sm:$0xf]   ;;  %v1244_v37 = vsel %vm1028_vm0, %v1242_v35, %v1240_v33  ;;  %v1471_v50 = vpop.permute.xlu2 %1470  }
 0x108   :  { %v1630_v62 = vld [vmem:[#allocation0 + $0x5c3] ss:$8 sm:$0xf]   ;;  %2622 = vst.msk [vmem:[%s4279_s1 + $0x20] sm:$0xff] %vm1030_vm1, %v1064_v13  }
 0x109   :  { %v1634_v0 = vsel %vm1028_vm0, %v1632_v59, %v1630_v62  ;;  %2650 = vst.msk [vmem:[%s4279_s1 + $0x20] sm:$0xff] %vm1319_vm2, %v1328_v51   ;;  %v1278_v38 = vld [vmem:[#allocation0 + $0x700] ss:$8 sm:$0xf0]  }
 0x10a   :  { %1635 = vrot.lane.b32.xlu2 %v1634_v0, %s2746_s15  ;;  %1722 = vrot.lane.b32.xlu1 %v1721_v61, %s2747_s18  ;;  %2630 = vst.msk [vmem:[%s4279_s1 + $0x60] sm:$0xff] %vm1030_vm1, %v1136_v16   ;;  %v1280_v41 = vsel %vm1028_vm0, %v1278_v38, %v1276_v36  ;;  %v1728_v43 = vld [vmem:[#allocation0 + $0x602] ss:$8 sm:$0xf]  }
 0x10b   :  { %1777 = vrot.lane.b32.xlu0 %v1776_v63, %s2747_s18  ;;  %2652 = vst.msk [vmem:[%s4279_s1 + $0x60] sm:$0xff] %vm1319_vm2, %v1350_v52   ;;  %v1730_v44 = vld [vmem:[#allocation0 + $0x602] ss:$8 sm:$0xf0]  }
 0x10c   :  { %2638 = vst.msk [vmem:[%s4279_s1 + $0xa0] sm:$0xff] %vm1030_vm1, %v1208_v18   ;;  %v1816_v45 = vld [vmem:[#allocation0 + $0x642] ss:$8 sm:$0xf]   ;;  %v1732_v58 = vsel %vm1028_vm0, %v1730_v44, %v1728_v43  ;;  %v3724_v4 = vpop.permute.xlu0 %1481  }
 0x10d   :  { %2654 = vst.msk [vmem:[%s4279_s1 + $0xa0] sm:$0xff] %vm1319_vm2, %v1372_v56   ;;  %v1818_v46 = vld [vmem:[#allocation0 + $0x642] ss:$8 sm:$0xf0]   ;;  %v3722_v3 = vpop.permute.xlu1 %1492  }
 0x10e   :  { %2619 = vst.msk [vmem:[%s4279_s1 + $0x8] sm:$0xff] %vm1030_vm1, %v1037_v34   ;;  %v1871_v49 = vld [vmem:[#allocation0 + $0x382] ss:$8 sm:$0xf]   ;;  %v1820_v59 = vsel %vm1028_vm0, %v1818_v46, %v1816_v45 }
 0x10f   :  { %2657 = vst.msk [vmem:[%s4279_s1 + $0x8] sm:$0xff] %vm1319_vm2, %v1405_v12   ;;  %v1873_v51 = vld [vmem:[#allocation0 + $0x382] ss:$8 sm:$0xf0]  }
 0x110   :  { %2642 = vst.msk [vmem:[%s4279_s1 + $0xc0] sm:$0xff] %vm1030_vm1, %v1244_v37   ;;  %v1141_v52 = vld [vmem:[#allocation0 + $0x340] ss:$8 sm:$0xf]   ;;  %v1875_v62 = vsel %vm1028_vm0, %v1873_v51, %v1871_v49 }
 0x111   :  { %2655 = vst.msk [vmem:[%s4279_s1 + $0xc0] sm:$0xff] %vm1319_vm2, %v1383_v6   ;;  %v1143_v53 = vld [vmem:[#allocation0 + $0x340] ss:$8 sm:$0xf0]  }
 0x112   :  { %1668 = vrot.lane.b32.xlu2 %v1667_v19, %s2747_s18  ;;  %1755 = vrot.lane.b32.xlu1 %v1754_v20, %s2747_s18  ;;  %2646 = vst.msk [vmem:[%s4279_s1 + $0xe0] sm:$0xff] %vm1030_vm1, %v1280_v41   ;;  %v1069_v54 = vld [vmem:[#allocation0 + $0x140] ss:$8 sm:$0xf]   ;;  %v1145_v55 = vsel %vm1028_vm0, %v1143_v53, %v1141_v52 }
 0x113   :  { %1810 = vrot.lane.b32.xlu0 %v1809_v21, %s2747_s18  ;;  %2656 = vst.msk [vmem:[%s4279_s1 + $0xe0] sm:$0xff] %vm1319_vm2, %v1394_v7   ;;  %v1071_v56 = vld [vmem:[#allocation0 + $0x140] ss:$8 sm:$0xf0]  }
 0x114   :  { %v1105_v57 = vld [vmem:[#allocation0 + $0x240] ss:$8 sm:$0xf]   ;;  %2631 = vst.msk [vmem:[%s4279_s1 + $0x68] sm:$0xff] %vm1030_vm1, %v1145_v55   ;;  %v1073_v60 = vsel %vm1028_vm0, %v1071_v56, %v1069_v54  ;;  %v1504_v6 = vpop.permute.xlu2 %1503   ;;  %v3757_v25 = vpop.permute.xlu0 %1514  }
 0x115   :  { %v1107_v61 = vld [vmem:[#allocation0 + $0x240] ss:$8 sm:$0xf0]   ;;  %2660 = vst.msk [vmem:[%s4279_s1 + $0x68] sm:$0xff] %vm1319_vm2, %v1438_v31   ;;  %v3755_v24 = vpop.permute.xlu1 %1525  }
 0x116   :  { %v1109_v63 = vsel %vm1028_vm0, %v1107_v61, %v1105_v57  ;;  %2623 = vst.msk [vmem:[%s4279_s1 + $0x28] sm:$0xff] %vm1030_vm1, %v1073_v60   ;;  %v1761_v0 = vld [vmem:[#allocation0 + $0x142] ss:$8 sm:$0xf]  }
 0x117   :  { %v1763_v1 = vld [vmem:[#allocation0 + $0x142] ss:$8 sm:$0xf0]   ;;  %2658 = vst.msk [vmem:[%s4279_s1 + $0x28] sm:$0xff] %vm1319_vm2, %v1416_v26  }
 0x118   :  { %v1849_v2 = vld [vmem:[#allocation0 + $0x182] ss:$8 sm:$0xf]   ;;  %2627 = vst.msk [vmem:[%s4279_s1 + $0x48] sm:$0xff] %vm1030_vm1, %v1109_v63   ;;  %v1765_v12 = vsel %vm1028_vm0, %v1763_v1, %v1761_v0 }
 0x119   :  { %v1851_v5 = vld [vmem:[#allocation0 + $0x182] ss:$8 sm:$0xf0]   ;;  %2659 = vst.msk [vmem:[%s4279_s1 + $0x48] sm:$0xff] %vm1319_vm2, %v1427_v27  }
 0x11a   :  { %1700 = vrot.lane.b32.xlu2 %v1699_v39, %s2747_s18  ;;  %1788 = vrot.lane.b32.xlu1 %v1787_v40, %s2747_s18  ;;  %v1904_v7 = vld [vmem:[#allocation0 + $0x682] ss:$8 sm:$0xf]   ;;  %v1177_v9 = vld [vmem:[#allocation0 + $0x440] ss:$8 sm:$0xf]   ;;  %v1853_v13 = vsel %vm1028_vm0, %v1851_v5, %v1849_v2 }
 0x11b   :  { %1843 = vrot.lane.b32.xlu0 %v1842_v42, %s2747_s18  ;;  %v1906_v8 = vld [vmem:[#allocation0 + $0x682] ss:$8 sm:$0xf0]   ;;  %v1179_v10 = vld [vmem:[#allocation0 + $0x440] ss:$8 sm:$0xf0]  }
 0x11c   :  { %v1249_v11 = vld [vmem:[#allocation0 + $0x640] ss:$8 sm:$0xf]   ;;  %v1181_v14 = vsel %vm1028_vm0, %v1179_v10, %v1177_v9  ;;  %v1908_v17 = vsel %vm1028_vm0, %v1906_v8, %v1904_v7  ;;  %v1794_v21 = vld [vmem:[#allocation0 + $0x442] ss:$8 sm:$0xf]  }
 0x11d   :  { %v1251_v15 = vld [vmem:[#allocation0 + $0x640] ss:$8 sm:$0xf0]   ;;  %2635 = vst.msk [vmem:[%s4279_s1 + $0x88] sm:$0xff] %vm1030_vm1, %v1181_v14   ;;  %v1559_v45 = vpop.permute.xlu1 %1558  }
 0x11e   :  { %v1213_v16 = vld [vmem:[#allocation0 + $0x540] ss:$8 sm:$0xf]   ;;  %v1253_v18 = vsel %vm1028_vm0, %v1251_v15, %v1249_v11  ;;  %2661 = vst.msk [vmem:[%s4279_s1 + $0x88] sm:$0xff] %vm1319_vm2, %v1449_v47  }
 0x11f   :  { %v1215_v19 = vld [vmem:[#allocation0 + $0x540] ss:$8 sm:$0xf0]   ;;  %v1796_v22 = vld [vmem:[#allocation0 + $0x442] ss:$8 sm:$0xf0]  }
 0x120   :  { %v1217_v20 = vsel %vm1028_vm0, %v1215_v19, %v1213_v16  ;;  %v1882_v23 = vld [vmem:[#allocation0 + $0x482] ss:$8 sm:$0xf]   ;;  %2643 = vst.msk [vmem:[%s4279_s1 + $0xc8] sm:$0xff] %vm1030_vm1, %v1253_v18   ;;  %v1798_v31 = vsel %vm1028_vm0, %v1796_v22, %v1794_v21 }
 0x121   :  { %v1884_v26 = vld [vmem:[#allocation0 + $0x482] ss:$8 sm:$0xf0]   ;;  %2663 = vst.msk [vmem:[%s4279_s1 + $0xc8] sm:$0xff] %vm1319_vm2, %v1471_v50  }
 0x122   :  { %1733 = vrot.lane.b32.xlu2 %v1732_v58, %s2747_s18  ;;  %1821 = vrot.lane.b32.xlu1 %v1820_v59, %s2747_s18  ;;  %2639 = vst.msk [vmem:[%s4279_s1 + $0xa8] sm:$0xff] %vm1030_vm1, %v1217_v20   ;;  %v1937_v27 = vld [vmem:[#allocation0 + $0x1c2] ss:$8 sm:$0xf]   ;;  %v1886_v32 = vsel %vm1028_vm0, %v1884_v26, %v1882_v23 }
 0x123   :  { %1876 = vrot.lane.b32.xlu0 %v1875_v62, %s2747_s18  ;;  %2662 = vst.msk [vmem:[%s4279_s1 + $0xa8] sm:$0xff] %vm1319_vm2, %v3691_v48   ;;  %v1939_v29 = vld [vmem:[#allocation0 + $0x1c2] ss:$8 sm:$0xf0]  }
 0x124   :  { %v1078_v30 = vld [vmem:[#allocation0 + $0x180] ss:$8 sm:$0xf]   ;;  %v1941_v35 = vsel %vm1028_vm0, %v1939_v29, %v1937_v27  ;;  %v1827_v41 = vld [vmem:[#allocation0 + $0x742] ss:$8 sm:$0xf]   ;;  %v1548_v46 = vpop.permute.xlu0 %1547  }
 0x125   :  { %v1080_v33 = vld [vmem:[#allocation0 + $0x180] ss:$8 sm:$0xf0]   ;;  %v1829_v42 = vld [vmem:[#allocation0 + $0x742] ss:$8 sm:$0xf0]  }
 0x126   :  { %v1042_v34 = vld [vmem:[#allocation0 + $0x80] ss:$8 sm:$0xf]   ;;  %v1082_v36 = vsel %vm1028_vm0, %v1080_v33, %v1078_v30  ;;  %v1915_v43 = vld [vmem:[#allocation0 + $0x782] ss:$8 sm:$0xf]   ;;  %v1831_v50 = vsel %vm1028_vm0, %v1829_v42, %v1827_v41 }
 0x127   :  { %v1044_v37 = vld [vmem:[#allocation0 + $0x80] ss:$8 sm:$0xf0]   ;;  %2624 = vst.msk [vmem:[%s4279_s1 + $0x30] sm:$0xff] %vm1030_vm1, %v1082_v36  }
 0x128   :  { %v1285_v38 = vld [vmem:[#allocation0 + $0x740] ss:$8 sm:$0xf]   ;;  %v1046_v39 = vsel %vm1028_vm0, %v1044_v37, %v1042_v34  ;;  %2666 = vst.msk [vmem:[%s4279_s1 + $0x30] sm:$0xff] %vm1319_vm2, %v1504_v6  }
 0x129   :  { %v1287_v40 = vld [vmem:[#allocation0 + $0x740] ss:$8 sm:$0xf0]   ;;  %v1917_v47 = vld [vmem:[#allocation0 + $0x782] ss:$8 sm:$0xf0]  }
 0x12a   :  { %1766 = vrot.lane.b32.xlu2 %v1765_v12, %s2747_s18  ;;  %1854 = vrot.lane.b32.xlu1 %v1853_v13, %s2747_s18  ;;  %v1289_v44 = vsel %vm1028_vm0, %v1287_v40, %v1285_v38  ;;  %2620 = vst.msk [vmem:[%s4279_s1 + $0x10] sm:$0xff] %vm1030_vm1, %v1046_v39   ;;  %v1970_v48 = vld [vmem:[#allocation0 + $0x4c2] ss:$8 sm:$0xf]   ;;  %v1919_v51 = vsel %vm1028_vm0, %v1917_v47, %v1915_v43 }
 0x12b   :  { %1909 = vrot.lane.b32.xlu0 %v1908_v17, %s2747_s18  ;;  %2665 = vst.msk [vmem:[%s4279_s1 + $0x10] sm:$0xff] %vm1319_vm2, %v3722_v3   ;;  %v1972_v49 = vld [vmem:[#allocation0 + $0x4c2] ss:$8 sm:$0xf0]  }
 0x12c   :  { %v1537_v28 = vpop.permute.xlu2 %1536   ;;  %2647 = vst.msk [vmem:[%s4279_s1 + $0xe8] sm:$0xff] %vm1030_vm1, %v1289_v44   ;;  %v1186_v52 = vld [vmem:[#allocation0 + $0x480] ss:$8 sm:$0xf]   ;;  %v1974_v53 = vsel %vm1028_vm0, %v1972_v49, %v1970_v48 }
 0x12d   :  { %2664 = vst.msk [vmem:[%s4279_s1 + $0xe8] sm:$0xff] %vm1319_vm2, %v3724_v4   ;;  %v1188_v54 = vld [vmem:[#allocation0 + $0x480] ss:$8 sm:$0xf0]  }
 0x12e   :  { %v1150_v55 = vld [vmem:[#allocation0 + $0x380] ss:$8 sm:$0xf]   ;;  %v1190_v56 = vsel %vm1028_vm0, %v1188_v54, %v1186_v52  ;;  %v1860_v59 = vld [vmem:[#allocation0 + $0x282] ss:$8 sm:$0xf]  }
 0x12f   :  { %v1152_v57 = vld [vmem:[#allocation0 + $0x380] ss:$8 sm:$0xf0]   ;;  %v1862_v60 = vld [vmem:[#allocation0 + $0x282] ss:$8 sm:$0xf0]  }
 0x130   :  { %v1114_v58 = vld [vmem:[#allocation0 + $0x280] ss:$8 sm:$0xf]   ;;  %2636 = vst.msk [vmem:[%s4279_s1 + $0x90] sm:$0xff] %vm1030_vm1, %v1190_v56   ;;  %v1154_v61 = vsel %vm1028_vm0, %v1152_v57, %v1150_v55  ;;  %v1864_v6 = vsel %vm1028_vm0, %v1862_v60, %v1860_v59 }
 0x131   :  { %v1116_v62 = vld [vmem:[#allocation0 + $0x280] ss:$8 sm:$0xf0]   ;;  %v1948_v0 = vld [vmem:[#allocation0 + $0x2c2] ss:$8 sm:$0xf]  }
 0x132   :  { %1799 = vrot.lane.b32.xlu2 %v1798_v31, %s2747_s18  ;;  %1887 = vrot.lane.b32.xlu1 %v1886_v32, %s2747_s18  ;;  %2669 = vst.msk [vmem:[%s4279_s1 + $0x90] sm:$0xff] %vm1319_vm2, %v1537_v28   ;;  %v1118_v1 = vsel %vm1028_vm0, %v1116_v62, %v1114_v58  ;;  %v1950_v2 = vld [vmem:[#allocation0 + $0x2c2] ss:$8 sm:$0xf0]  }
 0x133   :  { %1942 = vrot.lane.b32.xlu0 %v1941_v35, %s2747_s18  ;;  %2632 = vst.msk [vmem:[%s4279_s1 + $0x70] sm:$0xff] %vm1030_vm1, %v1154_v61   ;;  %v2003_v4 = vld [vmem:[#allocation0 + $0x7c2] ss:$8 sm:$0xf]   ;;  %v1952_v7 = vsel %vm1028_vm0, %v1950_v2, %v1948_v0 }
 0x134   :  { %v1592_v63 = vpop.permute.xlu1 %1591   ;;  %2668 = vst.msk [vmem:[%s4279_s1 + $0x70] sm:$0xff] %vm1319_vm2, %v3755_v24   ;;  %v2005_v5 = vld [vmem:[#allocation0 + $0x7c2] ss:$8 sm:$0xf0]  }
 0x135   :  { %2628 = vst.msk [vmem:[%s4279_s1 + $0x50] sm:$0xff] %vm1030_vm1, %v1118_v1   ;;  %v2007_v8 = vsel %vm1028_vm0, %v2005_v5, %v2003_v4  ;;  %v1258_v9 = vld [vmem:[#allocation0 + $0x680] ss:$8 sm:$0xf]  }
 0x136   :  { %2667 = vst.msk [vmem:[%s4279_s1 + $0x50] sm:$0xff] %vm1319_vm2, %v3757_v25   ;;  %v1260_v10 = vld [vmem:[#allocation0 + $0x680] ss:$8 sm:$0xf0]  }
 0x137   :  { %v1222_v11 = vld [vmem:[#allocation0 + $0x580] ss:$8 sm:$0xf]   ;;  %v1893_v12 = vld [vmem:[#allocation0 + $0x582] ss:$8 sm:$0xf]   ;;  %v1262_v15 = vsel %vm1028_vm0, %v1260_v10, %v1258_v9 }
 0x138   :  { %v1895_v13 = vld [vmem:[#allocation0 + $0x582] ss:$8 sm:$0xf0]   ;;  %v1224_v16 = vld [vmem:[#allocation0 + $0x580] ss:$8 sm:$0xf0]  }
 0x139   :  { %v1981_v14 = vld [vmem:[#allocation0 + $0x5c2] ss:$8 sm:$0xf]   ;;  %v1294_v17 = vld [vmem:[#allocation0 + $0x780] ss:$8 sm:$0xf]   ;;  %v1226_v18 = vsel %vm1028_vm0, %v1224_v16, %v1222_v11  ;;  %v1897_v23 = vsel %vm1028_vm0, %v1895_v13, %v1893_v12 }
 0x13a   :  { %1832 = vrot.lane.b32.xlu2 %v1831_v50, %s2747_s18  ;;  %1920 = vrot.lane.b32.xlu1 %v1919_v51, %s2747_s18  ;;  %2644 = vst.msk [vmem:[%s4279_s1 + $0xd0] sm:$0xff] %vm1030_vm1, %v1262_v15   ;;  %v1296_v19 = vld [vmem:[#allocation0 + $0x780] ss:$8 sm:$0xf0]  }
 0x13b   :  { %1975 = vrot.lane.b32.xlu0 %v1974_v53, %s2747_s18  ;;  %v1983_v20 = vld [vmem:[#allocation0 + $0x5c2] ss:$8 sm:$0xf0]   ;;  %2671 = vst.msk [vmem:[%s4279_s1 + $0xd0] sm:$0xff] %vm1319_vm2, %v1559_v45   ;;  %v1298_v21 = vsel %vm1028_vm0, %v1296_v19, %v1294_v17 }
 0x13c   :  { %v1581_v3 = vpop.permute.xlu0 %1580   ;;  %2640 = vst.msk [vmem:[%s4279_s1 + $0xb0] sm:$0xff] %vm1030_vm1, %v1226_v18   ;;  %v2035_v22 = vld [vmem:[#allocation0 + $0x201] ss:$8 sm:$0xf]   ;;  %v1985_v24 = vsel %vm1028_vm0, %v1983_v20, %v1981_v14 }
 0x13d   :  { %2670 = vst.msk [vmem:[%s4279_s1 + $0xb0] sm:$0xff] %vm1319_vm2, %v1548_v46   ;;  %v2037_v25 = vld [vmem:[#allocation0 + $0x201] ss:$8 sm:$0xf0]  }
 0x13e   :  { %2648 = vst.msk [vmem:[%s4279_s1 + $0xf0] sm:$0xff] %vm1030_vm1, %v1298_v21   ;;  %v2039_v26 = vsel %vm1028_vm0, %v2037_v25, %v2035_v22  ;;  %v1087_v27 = vld [vmem:[#allocation0 + $0x1c0] ss:$8 sm:$0xf]  }
 0x13f   :  { %v1089_v28 = vld [vmem:[#allocation0 + $0x1c0] ss:$8 sm:$0xf0]   ;;  %v1926_v29 = vld [vmem:[#allocation0 + $0xc2] ss:$8 sm:$0xf]  }
 0x140   :  { %v1928_v30 = vld [vmem:[#allocation0 + $0xc2] ss:$8 sm:$0xf0]   ;;  %v2014_v31 = vld [vmem:[#allocation0 + $0x1] ss:$8 sm:$0xf]   ;;  %v1091_v33 = vsel %vm1028_vm0, %v1089_v28, %v1087_v27 }
 0x141   :  { %v2016_v32 = vld [vmem:[#allocation0 + $0x1] ss:$8 sm:$0xf0]   ;;  %v1051_v34 = vld [vmem:[#allocation0 + $0xc0] ss:$8 sm:$0xf]   ;;  %v1930_v42 = vsel %vm1028_vm0, %v1928_v30, %v1926_v29 }
 0x142   :  { %1865 = vrot.lane.b32.xlu2 %v1864_v6, %s2747_s18  ;;  %1953 = vrot.lane.b32.xlu1 %v1952_v7, %s2747_s18  ;;  %v1053_v35 = vld [vmem:[#allocation0 + $0xc0] ss:$8 sm:$0xf0]   ;;  %2625 = vst.msk [vmem:[%s4279_s1 + $0x38] sm:$0xff] %vm1030_vm1, %v1091_v33   ;;  %v2018_v43 = vsel %vm1028_vm0, %v2016_v32, %v2014_v31 }
 0x143   :  { %2008 = vrot.lane.b32.xlu0 %v2007_v8, %s2747_s18  ;;  %v1055_v36 = vsel %vm1028_vm0, %v1053_v35, %v1051_v34  ;;  %v1123_v37 = vld [vmem:[#allocation0 + $0x2c0] ss:$8 sm:$0xf]   ;;  %2674 = vst.msk [vmem:[%s4279_s1 + $0x38] sm:$0xff] %vm1319_vm2, %v1592_v63  }
 0x144   :  { %v1125_v39 = vld [vmem:[#allocation0 + $0x2c0] ss:$8 sm:$0xf0]   ;;  %2621 = vst.msk [vmem:[%s4279_s1 + $0x18] sm:$0xff] %vm1030_vm1, %v1055_v36  }
 0x145   :  { %v1127_v41 = vsel %vm1028_vm0, %v1125_v39, %v1123_v37  ;;  %2673 = vst.msk [vmem:[%s4279_s1 + $0x18] sm:$0xff] %vm1319_vm2, %v1581_v3   ;;  %v2068_v44 = vld [vmem:[#allocation0 + $0x501] ss:$8 sm:$0xf]  }
 0x146   :  { %2629 = vst.msk [vmem:[%s4279_s1 + $0x58] sm:$0xff] %vm1030_vm1, %v1127_v41   ;;  %v2070_v45 = vld [vmem:[#allocation0 + $0x501] ss:$8 sm:$0xf0]  }
 0x147   :  { %v2072_v46 = vsel %vm1028_vm0, %v2070_v45, %v2068_v44  ;;  %v1959_v47 = vld [vmem:[#allocation0 + $0x3c2] ss:$8 sm:$0xf]   ;;  %v2046_v49 = vld [vmem:[#allocation0 + $0x301] ss:$8 sm:$0xf]  }
 0x148   :  { %v1961_v48 = vld [vmem:[#allocation0 + $0x3c2] ss:$8 sm:$0xf0]   ;;  %v2048_v50 = vld [vmem:[#allocation0 + $0x301] ss:$8 sm:$0xf0]  }
 0x149   :  { %v1195_v51 = vld [vmem:[#allocation0 + $0x4c0] ss:$8 sm:$0xf]   ;;  %v1963_v61 = vsel %vm1028_vm0, %v1961_v48, %v1959_v47  ;;  %v2050_v62 = vsel %vm1028_vm0, %v2048_v50, %v2046_v49  ;;  %v2101_v63 = vld [vmem:[#allocation0 + $0x41] ss:$8 sm:$0xf]  }
 0x14a   :  { %1898 = vrot.lane.b32.xlu2 %v1897_v23, %s2747_s18  ;;  %1986 = vrot.lane.b32.xlu1 %v1985_v24, %s2747_s18  ;;  %v1197_v52 = vld [vmem:[#allocation0 + $0x4c0] ss:$8 sm:$0xf0]   ;;  %v2103_v0 = vld [vmem:[#allocation0 + $0x41] ss:$8 sm:$0xf0]  }
 0x14b   :  { %2040 = vrot.lane.b32.xlu0 %v2039_v26, %s2748_s22  ;;  %v1199_v53 = vsel %vm1028_vm0, %v1197_v52, %v1195_v51  ;;  %v1159_v54 = vld [vmem:[#allocation0 + $0x3c0] ss:$8 sm:$0xf]   ;;  %v1992_v1 = vld [vmem:[#allocation0 + $0x6c2] ss:$8 sm:$0xf]   ;;  %v2105_v4 = vsel %vm1028_vm0, %v2103_v0, %v2101_v63 }
 0x14c   :  { %v1570_v38 = vpop.permute.xlu2 %1569   ;;  %v1625_v40 = vpop.permute.xlu1 %1624   ;;  %v1161_v55 = vld [vmem:[#allocation0 + $0x3c0] ss:$8 sm:$0xf0]   ;;  %2637 = vst.msk [vmem:[%s4279_s1 + $0x98] sm:$0xff] %vm1030_vm1, %v1199_v53  }
 0x14d   :  { %2672 = vst.msk [vmem:[%s4279_s1 + $0xf0] sm:$0xff] %vm1319_vm2, %v1570_v38   ;;  %v1163_v56 = vsel %vm1028_vm0, %v1161_v55, %v1159_v54  ;;  %v1231_v58 = vld [vmem:[#allocation0 + $0x5c0] ss:$8 sm:$0xf]  }
 0x14e   :  { %2677 = vst.msk [vmem:[%s4279_s1 + $0x98] sm:$0xff] %vm1319_vm2, %v1625_v40   ;;  %v1233_v59 = vld [vmem:[#allocation0 + $0x5c0] ss:$8 sm:$0xf0]  }
 0x14f   :  { %2633 = vst.msk [vmem:[%s4279_s1 + $0x78] sm:$0xff] %vm1030_vm1, %v1163_v56   ;;  %v1235_v60 = vsel %vm1028_vm0, %v1233_v59, %v1231_v58  ;;  %v1994_v2 = vld [vmem:[#allocation0 + $0x6c2] ss:$8 sm:$0xf0]  }
 0x150   :  { %2641 = vst.msk [vmem:[%s4279_s1 + $0xb8] sm:$0xff] %vm1030_vm1, %v1235_v60   ;;  %v2079_v3 = vld [vmem:[#allocation0 + $0x601] ss:$8 sm:$0xf]   ;;  %v1996_v15 = vsel %vm1028_vm0, %v1994_v2, %v1992_v1 }
 0x151   :  { %v1267_v5 = vld [vmem:[#allocation0 + $0x6c0] ss:$8 sm:$0xf]   ;;  %v2081_v9 = vld [vmem:[#allocation0 + $0x601] ss:$8 sm:$0xf0]  }
 0x152   :  { %1931 = vrot.lane.b32.xlu2 %v1930_v42, %s2747_s18  ;;  %2019 = vrot.lane.b32.xlu1 %v2018_v43, %s2748_s22  ;;  %v1269_v6 = vld [vmem:[#allocation0 + $0x6c0] ss:$8 sm:$0xf0]   ;;  %v2134_v14 = vld [vmem:[#allocation0 + $0x341] ss:$8 sm:$0xf]   ;;  %v2083_v16 = vsel %vm1028_vm0, %v2081_v9, %v2079_v3 }
 0x153   :  { %2073 = vrot.lane.b32.xlu0 %v2072_v46, %s2748_s22  ;;  %v1303_v7 = vld [vmem:[#allocation0 + $0x7c0] ss:$8 sm:$0xf]   ;;  %v1271_v10 = vsel %vm1028_vm0, %v1269_v6, %v1267_v5  ;;  %v2136_v17 = vld [vmem:[#allocation0 + $0x341] ss:$8 sm:$0xf0]  }
 0x154   :  { %v1614_v57 = vpop.permute.xlu0 %1613   ;;  %v1305_v12 = vld [vmem:[#allocation0 + $0x7c0] ss:$8 sm:$0xf0]   ;;  %2645 = vst.msk [vmem:[%s4279_s1 + $0xd8] sm:$0xff] %vm1030_vm1, %v1271_v10   ;;  %v2138_v18 = vsel %vm1028_vm0, %v2136_v17, %v2134_v14 }
 0x155   :  { %2676 = vst.msk [vmem:[%s4279_s1 + $0x78] sm:$0xff] %vm1319_vm2, %v1614_v57   ;;  %v1307_v13 = vsel %vm1028_vm0, %v1305_v12, %v1303_v7  ;;  %v2024_v19 = vld [vmem:[#allocation0 + $0x101] ss:$8 sm:$0xf]  }
 0x156   :  { %2649 = vst.msk [vmem:[%s4279_s1 + $0xf8] sm:$0xff] %vm1030_vm1, %v1307_v13   ;;  %v2026_v20 = vld [vmem:[#allocation0 + $0x101] ss:$8 sm:$0xf0]  }
 0x157   :  { %v2112_v21 = vld [vmem:[#allocation0 + $0x141] ss:$8 sm:$0xf]   ;;  %v2028_v27 = vsel %vm1028_vm0, %v2026_v20, %v2024_v19 }
 0x158   :  { %v2114_v23 = vld [vmem:[#allocation0 + $0x141] ss:$8 sm:$0xf0]  }
 0x159   :  { %v2167_v25 = vld [vmem:[#allocation0 + $0x641] ss:$8 sm:$0xf]   ;;  %v2116_v28 = vsel %vm1028_vm0, %v2114_v23, %v2112_v21 }
 0x15a   :  { %1964 = vrot.lane.b32.xlu2 %v1963_v61, %s2747_s18  ;;  %2051 = vrot.lane.b32.xlu1 %v2050_v62, %s2748_s22  ;;  %v2169_v26 = vld [vmem:[#allocation0 + $0x641] ss:$8 sm:$0xf0]  }
 0x15b   :  { %2106 = vrot.lane.b32.xlu0 %v2105_v4, %s2748_s22  ;;  %v2171_v29 = vsel %vm1028_vm0, %v2169_v26, %v2167_v25  ;;  %v2057_v30 = vld [vmem:[#allocation0 + $0x401] ss:$8 sm:$0xf]  }
 0x15c   :  { %v1603_v8 = vpop.permute.xlu2 %1602   ;;  %v1647_v11 = vpop.permute.xlu0 %1646   ;;  %v2059_v31 = vld [vmem:[#allocation0 + $0x401] ss:$8 sm:$0xf0]  }
 0x15d   :  { %2675 = vst.msk [vmem:[%s4279_s1 + $0x58] sm:$0xff] %vm1319_vm2, %v1603_v8   ;;  %v2145_v32 = vld [vmem:[#allocation0 + $0x441] ss:$8 sm:$0xf]   ;;  %v2061_v39 = vsel %vm1028_vm0, %v2059_v31, %v2057_v30 }
 0x15e   :  { %2679 = vst.msk [vmem:[%s4279_s1 + $0xd8] sm:$0xff] %vm1319_vm2, %v1647_v11   ;;  %v2147_v35 = vld [vmem:[#allocation0 + $0x441] ss:$8 sm:$0xf0]  }
 0x15f   :  { %v2200_v36 = vld [vmem:[#allocation0 + $0x181] ss:$8 sm:$0xf]   ;;  %v2149_v40 = vsel %vm1028_vm0, %v2147_v35, %v2145_v32 }
 0x160   :  { %v2202_v38 = vld [vmem:[#allocation0 + $0x181] ss:$8 sm:$0xf0]  }
 0x161   :  { %v2204_v41 = vsel %vm1028_vm0, %v2202_v38, %v2200_v36  ;;  %v2090_v42 = vld [vmem:[#allocation0 + $0x701] ss:$8 sm:$0xf]  }
 0x162   :  { %1997 = vrot.lane.b32.xlu2 %v1996_v15, %s2747_s18  ;;  %2084 = vrot.lane.b32.xlu1 %v2083_v16, %s2748_s22  ;;  %v2092_v43 = vld [vmem:[#allocation0 + $0x701] ss:$8 sm:$0xf0]  }
 0x163   :  { %2139 = vrot.lane.b32.xlu0 %v2138_v18, %s2748_s22  ;;  %v2178_v44 = vld [vmem:[#allocation0 + $0x741] ss:$8 sm:$0xf]   ;;  %v2094_v51 = vsel %vm1028_vm0, %v2092_v43, %v2090_v42 }
 0x164   :  { %v1636_v22 = vpop.permute.xlu2 %1635   ;;  %v1679_v24 = vpop.permute.xlu0 %1678   ;;  %v2180_v47 = vld [vmem:[#allocation0 + $0x741] ss:$8 sm:$0xf0]  }
 0x165   :  { %2678 = vst.msk [vmem:[%s4279_s1 + $0xb8] sm:$0xff] %vm1319_vm2, %v1636_v22   ;;  %v2233_v48 = vld [vmem:[#allocation0 + $0x481] ss:$8 sm:$0xf]   ;;  %v2182_v52 = vsel %vm1028_vm0, %v2180_v47, %v2178_v44 }
 0x166   :  { %2681 = vst.msk [vmem:[%s4279_s1 + $0x20] sm:$0xff] %vm1670_vm3, %v1679_v24   ;;  %v2235_v50 = vld [vmem:[#allocation0 + $0x481] ss:$8 sm:$0xf0]  }
 0x167   :  { %v2237_v53 = vsel %vm1028_vm0, %v2235_v50, %v2233_v48  ;;  %v2123_v54 = vld [vmem:[#allocation0 + $0x241] ss:$8 sm:$0xf]  }
 0x168   :  { %v2125_v55 = vld [vmem:[#allocation0 + $0x241] ss:$8 sm:$0xf0]  }
 0x169   :  { %v2211_v56 = vld [vmem:[#allocation0 + $0x281] ss:$8 sm:$0xf]   ;;  %v2127_v63 = vsel %vm1028_vm0, %v2125_v55, %v2123_v54 }
 0x16a   :  { %2029 = vrot.lane.b32.xlu2 %v2028_v27, %s2748_s22  ;;  %2117 = vrot.lane.b32.xlu1 %v2116_v28, %s2748_s22  ;;  %v2213_v59 = vld [vmem:[#allocation0 + $0x281] ss:$8 sm:$0xf0]  }
 0x16b   :  { %2172 = vrot.lane.b32.xlu0 %v2171_v29, %s2748_s22  ;;  %v2266_v60 = vld [vmem:[#allocation0 + $0x781] ss:$8 sm:$0xf]   ;;  %v2215_v0 = vsel %vm1028_vm0, %v2213_v59, %v2211_v56 }
 0x16c   :  { %v1669_v33 = vpop.permute.xlu2 %1668   ;;  %v1658_v34 = vpop.permute.xlu1 %1657   ;;  %v2268_v62 = vld [vmem:[#allocation0 + $0x781] ss:$8 sm:$0xf0]  }
 0x16d   :  { %1671 = vst.msk [vmem:[%s4279_s1] sm:$0xff] %vm1670_vm3, %v1669_v33   ;;  %v1712_v37 = vpop.permute.xlu0 %1711   ;;  %v2270_v1 = vsel %vm1028_vm0, %v2268_v62, %v2266_v60  ;;  %v2156_v2 = vld [vmem:[#allocation0 + $0x541] ss:$8 sm:$0xf]  }
 0x16e   :  { %2680 = vst.msk [vmem:[%s4279_s1 + $0xf8] sm:$0xff] %vm1319_vm2, %v1658_v34   ;;  %v2158_v3 = vld [vmem:[#allocation0 + $0x541] ss:$8 sm:$0xf0]  }
 0x16f   :  { %2684 = vst.msk [vmem:[%s4279_s1 + $0x80] sm:$0xff] %vm1670_vm3, %v1712_v37   ;;  %v2244_v4 = vld [vmem:[#allocation0 + $0x581] ss:$8 sm:$0xf]   ;;  %v2160_v11 = vsel %vm1028_vm0, %v2158_v3, %v2156_v2 }
 0x170   :  { %v2246_v7 = vld [vmem:[#allocation0 + $0x581] ss:$8 sm:$0xf0]  }
 0x171   :  { %v2299_v8 = vld [vmem:[#allocation0 + $0x2c1] ss:$8 sm:$0xf]   ;;  %v2248_v12 = vsel %vm1028_vm0, %v2246_v7, %v2244_v4 }
 0x172   :  { %2062 = vrot.lane.b32.xlu2 %v2061_v39, %s2748_s22  ;;  %2150 = vrot.lane.b32.xlu1 %v2149_v40, %s2748_s22  ;;  %v2301_v10 = vld [vmem:[#allocation0 + $0x2c1] ss:$8 sm:$0xf0]  }
 0x173   :  { %2205 = vrot.lane.b32.xlu0 %v2204_v41, %s2748_s22  ;;  %v2303_v13 = vsel %vm1028_vm0, %v2301_v10, %v2299_v8  ;;  %v2189_v14 = vld [vmem:[#allocation0 + $0x81] ss:$8 sm:$0xf]  }
 0x174   :  { %v1701_v45 = vpop.permute.xlu2 %1700   ;;  %v1690_v46 = vpop.permute.xlu1 %1689   ;;  %v2191_v15 = vld [vmem:[#allocation0 + $0x81] ss:$8 sm:$0xf0]  }
 0x175   :  { %2683 = vst.msk [vmem:[%s4279_s1 + $0x60] sm:$0xff] %vm1670_vm3, %v1701_v45   ;;  %v1745_v49 = vpop.permute.xlu0 %1744   ;;  %v2277_v16 = vld [vmem:[#allocation0 + $0xc1] ss:$8 sm:$0xf]   ;;  %v2193_v23 = vsel %vm1028_vm0, %v2191_v15, %v2189_v14 }
 0x176   :  { %2682 = vst.msk [vmem:[%s4279_s1 + $0x40] sm:$0xff] %vm1670_vm3, %v1690_v46   ;;  %v2279_v19 = vld [vmem:[#allocation0 + $0xc1] ss:$8 sm:$0xf0]  }
 0x177   :  { %2687 = vst.msk [vmem:[%s4279_s1 + $0xe0] sm:$0xff] %vm1670_vm3, %v1745_v49   ;;  %v2332_v20 = vld [vmem:[#allocation0 + $0x5c1] ss:$8 sm:$0xf]   ;;  %v2281_v24 = vsel %vm1028_vm0, %v2279_v19, %v2277_v16 }
 0x178   :  { %v2334_v22 = vld [vmem:[#allocation0 + $0x5c1] ss:$8 sm:$0xf0]  }
 0x179   :  { %v2336_v25 = vsel %vm1028_vm0, %v2334_v22, %v2332_v20  ;;  %v2222_v26 = vld [vmem:[#allocation0 + $0x381] ss:$8 sm:$0xf]  }
 0x17a   :  { %2095 = vrot.lane.b32.xlu2 %v2094_v51, %s2748_s22  ;;  %2183 = vrot.lane.b32.xlu1 %v2182_v52, %s2748_s22  ;;  %v2224_v27 = vld [vmem:[#allocation0 + $0x381] ss:$8 sm:$0xf0]  }
 0x17b   :  { %2238 = vrot.lane.b32.xlu0 %v2237_v53, %s2748_s22  ;;  %v2310_v30 = vld [vmem:[#allocation0 + $0x3c1] ss:$8 sm:$0xf]   ;;  %v2226_v33 = vsel %vm1028_vm0, %v2224_v27, %v2222_v26 }
 0x17c   :  { %v1734_v57 = vpop.permute.xlu2 %1733   ;;  %v1723_v58 = vpop.permute.xlu1 %1722   ;;  %v2312_v31 = vld [vmem:[#allocation0 + $0x3c1] ss:$8 sm:$0xf0]  }
 0x17d   :  { %2686 = vst.msk [vmem:[%s4279_s1 + $0xc0] sm:$0xff] %vm1670_vm3, %v1734_v57   ;;  %v1778_v61 = vpop.permute.xlu0 %1777   ;;  %v2314_v34 = vsel %vm1028_vm0, %v2312_v31, %v2310_v30  ;;  %v2255_v35 = vld [vmem:[#allocation0 + $0x681] ss:$8 sm:$0xf]  }
 0x17e   :  { %2685 = vst.msk [vmem:[%s4279_s1 + $0xa0] sm:$0xff] %vm1670_vm3, %v1723_v58   ;;  %v2257_v36 = vld [vmem:[#allocation0 + $0x681] ss:$8 sm:$0xf0]  }
 0x17f   :  { %2690 = vst.msk [vmem:[%s4279_s1 + $0x48] sm:$0xff] %vm1670_vm3, %v1778_v61   ;;  %v2343_v39 = vld [vmem:[#allocation0 + $0x6c1] ss:$8 sm:$0xf]   ;;  %v2259_v42 = vsel %vm1028_vm0, %v2257_v36, %v2255_v35 }
 0x180   :  { %v2345_v40 = vld [vmem:[#allocation0 + $0x6c1] ss:$8 sm:$0xf0]  }
 0x181   :  { %v2347_v43 = vsel %vm1028_vm0, %v2345_v40, %v2343_v39  ;;  %v2288_v46 = vld [vmem:[#allocation0 + $0x1c1] ss:$8 sm:$0xf]  }
 0x182   :  { %2128 = vrot.lane.b32.xlu2 %v2127_v63, %s2748_s22  ;;  %2216 = vrot.lane.b32.xlu1 %v2215_v0, %s2748_s22  ;;  %v2290_v47 = vld [vmem:[#allocation0 + $0x1c1] ss:$8 sm:$0xf0]  }
 0x183   :  { %2271 = vrot.lane.b32.xlu0 %v2270_v1, %s2748_s22  ;;  %v2292_v49 = vsel %vm1028_vm0, %v2290_v47, %v2288_v46  ;;  %v2321_v52 = vld [vmem:[#allocation0 + $0x4c1] ss:$8 sm:$0xf]  }
 0x184   :  { %v1767_v5 = vpop.permute.xlu2 %1766   ;;  %v1756_v6 = vpop.permute.xlu1 %1755   ;;  %v2323_v53 = vld [vmem:[#allocation0 + $0x4c1] ss:$8 sm:$0xf0]  }
 0x185   :  { %2689 = vst.msk [vmem:[%s4279_s1 + $0x28] sm:$0xff] %vm1670_vm3, %v1767_v5   ;;  %v1811_v9 = vpop.permute.xlu0 %1810   ;;  %v2325_v55 = vsel %vm1028_vm0, %v2323_v53, %v2321_v52  ;;  %v2354_v58 = vld [vmem:[#allocation0 + $0x7c1] ss:$8 sm:$0xf]  }
 0x186   :  { %2688 = vst.msk [vmem:[%s4279_s1 + $0x8] sm:$0xff] %vm1670_vm3, %v1756_v6   ;;  %v2356_v59 = vld [vmem:[#allocation0 + $0x7c1] ss:$8 sm:$0xf0]  }
 0x187   :  { %2693 = vst.msk [vmem:[%s4279_s1 + $0xa8] sm:$0xff] %vm1670_vm3, %v1811_v9   ;;  %v2358_v61 = vsel %vm1028_vm0, %v2356_v59, %v2354_v58 }
 0x18a   :  { %2161 = vrot.lane.b32.xlu2 %v2160_v11, %s2748_s22  ;;  %2249 = vrot.lane.b32.xlu1 %v2248_v12, %s2748_s22 }
 0x18b   :  { %2304 = vrot.lane.b32.xlu0 %v2303_v13, %s2748_s22 }
 0x18c   :  { %v1800_v17 = vpop.permute.xlu2 %1799   ;;  %v1789_v18 = vpop.permute.xlu1 %1788  }
 0x18d   :  { %2692 = vst.msk [vmem:[%s4279_s1 + $0x88] sm:$0xff] %vm1670_vm3, %v1800_v17   ;;  %v1844_v21 = vpop.permute.xlu0 %1843  }
 0x18e   :  { %2691 = vst.msk [vmem:[%s4279_s1 + $0x68] sm:$0xff] %vm1670_vm3, %v1789_v18  }
 0x18f   :  { %2696 = vst.msk [vmem:[%s4279_s1 + $0x10] sm:$0xff] %vm1670_vm3, %v1844_v21  }
 0x192   :  { %2194 = vrot.lane.b32.xlu2 %v2193_v23, %s2748_s22  ;;  %2282 = vrot.lane.b32.xlu1 %v2281_v24, %s2748_s22 }
 0x193   :  { %2337 = vrot.lane.b32.xlu0 %v2336_v25, %s2748_s22 }
 0x194   :  { %v1833_v28 = vpop.permute.xlu2 %1832   ;;  %v1822_v29 = vpop.permute.xlu1 %1821  }
 0x195   :  { %2695 = vst.msk [vmem:[%s4279_s1 + $0xe8] sm:$0xff] %vm1670_vm3, %v1833_v28   ;;  %v1877_v32 = vpop.permute.xlu0 %1876  }
 0x196   :  { %2694 = vst.msk [vmem:[%s4279_s1 + $0xc8] sm:$0xff] %vm1670_vm3, %v1822_v29  }
 0x197   :  { %2699 = vst.msk [vmem:[%s4279_s1 + $0x70] sm:$0xff] %vm1670_vm3, %v1877_v32  }
 0x19a   :  { %2227 = vrot.lane.b32.xlu2 %v2226_v33, %s2748_s22  ;;  %2315 = vrot.lane.b32.xlu1 %v2314_v34, %s2748_s22 }
 0x19c   :  { %v1866_v37 = vpop.permute.xlu2 %1865   ;;  %v1855_v38 = vpop.permute.xlu1 %1854  }
 0x19d   :  { %2698 = vst.msk [vmem:[%s4279_s1 + $0x50] sm:$0xff] %vm1670_vm3, %v1866_v37   ;;  %v1910_v41 = vpop.permute.xlu0 %1909  }
 0x19e   :  { %2697 = vst.msk [vmem:[%s4279_s1 + $0x30] sm:$0xff] %vm1670_vm3, %v1855_v38  }
 0x19f   :  { %2702 = vst.msk [vmem:[%s4279_s1 + $0xd0] sm:$0xff] %vm1670_vm3, %v1910_v41  }
 0x1a2   :  { %2260 = vrot.lane.b32.xlu2 %v2259_v42, %s2748_s22  ;;  %2348 = vrot.lane.b32.xlu1 %v2347_v43, %s2748_s22 }
 0x1a4   :  { %v1899_v44 = vpop.permute.xlu2 %1898   ;;  %v1888_v45 = vpop.permute.xlu1 %1887  }
 0x1a5   :  { %2701 = vst.msk [vmem:[%s4279_s1 + $0xb0] sm:$0xff] %vm1670_vm3, %v1899_v44   ;;  %v1943_v48 = vpop.permute.xlu0 %1942  }
 0x1a6   :  { %2700 = vst.msk [vmem:[%s4279_s1 + $0x90] sm:$0xff] %vm1670_vm3, %v1888_v45  }
 0x1a7   :  { %2705 = vst.msk [vmem:[%s4279_s1 + $0x38] sm:$0xff] %vm1670_vm3, %v1943_v48  }
 0x1aa   :  { %2293 = vrot.lane.b32.xlu2 %v2292_v49, %s2748_s22 }
 0x1ac   :  { %v1932_v50 = vpop.permute.xlu2 %1931   ;;  %v1921_v51 = vpop.permute.xlu1 %1920  }
 0x1ad   :  { %2704 = vst.msk [vmem:[%s4279_s1 + $0x18] sm:$0xff] %vm1670_vm3, %v1932_v50   ;;  %v1976_v54 = vpop.permute.xlu0 %1975  }
 0x1ae   :  { %2703 = vst.msk [vmem:[%s4279_s1 + $0xf0] sm:$0xff] %vm1670_vm3, %v1921_v51  }
 0x1af   :  { %2708 = vst.msk [vmem:[%s4279_s1 + $0x98] sm:$0xff] %vm1670_vm3, %v1976_v54  }
 0x1b2   :  { %2326 = vrot.lane.b32.xlu2 %v2325_v55, %s2748_s22 }
 0x1b4   :  { %v1965_v56 = vpop.permute.xlu2 %1964   ;;  %v1954_v57 = vpop.permute.xlu1 %1953  }
 0x1b5   :  { %2707 = vst.msk [vmem:[%s4279_s1 + $0x78] sm:$0xff] %vm1670_vm3, %v1965_v56   ;;  %v2009_v60 = vpop.permute.xlu0 %2008  }
 0x1b6   :  { %2706 = vst.msk [vmem:[%s4279_s1 + $0x58] sm:$0xff] %vm1670_vm3, %v1954_v57  }
 0x1b7   :  { %2711 = vst.msk [vmem:[%s4279_s1 + $0xf8] sm:$0xff] %vm1670_vm3, %v2009_v60  }
 0x1ba   :  { %2359 = vrot.lane.b32.xlu2 %v2358_v61, %s2748_s22 }
 0x1bc   :  { %v1998_v62 = vpop.permute.xlu2 %1997   ;;  %v1987_v63 = vpop.permute.xlu1 %1986  }
 0x1bd   :  { %2710 = vst.msk [vmem:[%s4279_s1 + $0xd8] sm:$0xff] %vm1670_vm3, %v1998_v62   ;;  %v2041_v0 = vpop.permute.xlu0 %2040  }
 0x1be   :  { %2709 = vst.msk [vmem:[%s4279_s1 + $0xb8] sm:$0xff] %vm1670_vm3, %v1987_v63  }
 0x1bf   :  { %2713 = vst.msk [vmem:[%s4279_s1 + $0x40] sm:$0xff] %vm2021_vm4, %v2041_v0  }
 0x1c4   :  { %v2030_v1 = vpop.permute.xlu2 %2029   ;;  %v2020_v2 = vpop.permute.xlu1 %2019  }
 0x1c5   :  { %2712 = vst.msk [vmem:[%s4279_s1 + $0x20] sm:$0xff] %vm2021_vm4, %v2030_v1   ;;  %v2074_v3 = vpop.permute.xlu0 %2073  }
 0x1c6   :  { %2022 = vst.msk [vmem:[%s4279_s1] sm:$0xff] %vm2021_vm4, %v2020_v2  }
 0x1c7   :  { %2716 = vst.msk [vmem:[%s4279_s1 + $0xa0] sm:$0xff] %vm2021_vm4, %v2074_v3  }
 0x1cc   :  { %v2063_v4 = vpop.permute.xlu2 %2062   ;;  %v2052_v5 = vpop.permute.xlu1 %2051  }
 0x1cd   :  { %2715 = vst.msk [vmem:[%s4279_s1 + $0x80] sm:$0xff] %vm2021_vm4, %v2063_v4   ;;  %v2107_v6 = vpop.permute.xlu0 %2106  }
 0x1ce   :  { %2714 = vst.msk [vmem:[%s4279_s1 + $0x60] sm:$0xff] %vm2021_vm4, %v2052_v5  }
 0x1cf   :  { %2719 = vst.msk [vmem:[%s4279_s1 + $0x8] sm:$0xff] %vm2021_vm4, %v2107_v6  }
 0x1d4   :  { %v2096_v7 = vpop.permute.xlu2 %2095   ;;  %v2085_v8 = vpop.permute.xlu1 %2084  }
 0x1d5   :  { %2718 = vst.msk [vmem:[%s4279_s1 + $0xe0] sm:$0xff] %vm2021_vm4, %v2096_v7   ;;  %v2140_v9 = vpop.permute.xlu0 %2139  }
 0x1d6   :  { %2717 = vst.msk [vmem:[%s4279_s1 + $0xc0] sm:$0xff] %vm2021_vm4, %v2085_v8  }
 0x1d7   :  { %2722 = vst.msk [vmem:[%s4279_s1 + $0x68] sm:$0xff] %vm2021_vm4, %v2140_v9  }
 0x1dc   :  { %v2129_v10 = vpop.permute.xlu2 %2128   ;;  %v2118_v11 = vpop.permute.xlu1 %2117  }
 0x1dd   :  { %2721 = vst.msk [vmem:[%s4279_s1 + $0x48] sm:$0xff] %vm2021_vm4, %v2129_v10   ;;  %v2173_v12 = vpop.permute.xlu0 %2172  }
 0x1de   :  { %2720 = vst.msk [vmem:[%s4279_s1 + $0x28] sm:$0xff] %vm2021_vm4, %v2118_v11  }
 0x1df   :  { %2725 = vst.msk [vmem:[%s4279_s1 + $0xc8] sm:$0xff] %vm2021_vm4, %v2173_v12  }
 0x1e4   :  { %v2162_v13 = vpop.permute.xlu2 %2161   ;;  %v2151_v14 = vpop.permute.xlu1 %2150  }
 0x1e5   :  { %2724 = vst.msk [vmem:[%s4279_s1 + $0xa8] sm:$0xff] %vm2021_vm4, %v2162_v13   ;;  %v2206_v15 = vpop.permute.xlu0 %2205  }
 0x1e6   :  { %2723 = vst.msk [vmem:[%s4279_s1 + $0x88] sm:$0xff] %vm2021_vm4, %v2151_v14  }
 0x1e7   :  { %2728 = vst.msk [vmem:[%s4279_s1 + $0x30] sm:$0xff] %vm2021_vm4, %v2206_v15  }
 0x1ec   :  { %v2195_v16 = vpop.permute.xlu2 %2194   ;;  %v2184_v17 = vpop.permute.xlu1 %2183  }
 0x1ed   :  { %2727 = vst.msk [vmem:[%s4279_s1 + $0x10] sm:$0xff] %vm2021_vm4, %v2195_v16   ;;  %v2239_v18 = vpop.permute.xlu0 %2238  }
 0x1ee   :  { %2726 = vst.msk [vmem:[%s4279_s1 + $0xe8] sm:$0xff] %vm2021_vm4, %v2184_v17  }
 0x1ef   :  { %2731 = vst.msk [vmem:[%s4279_s1 + $0x90] sm:$0xff] %vm2021_vm4, %v2239_v18  }
 0x1f4   :  { %v2228_v19 = vpop.permute.xlu2 %2227   ;;  %v2217_v20 = vpop.permute.xlu1 %2216  }
 0x1f5   :  { %2730 = vst.msk [vmem:[%s4279_s1 + $0x70] sm:$0xff] %vm2021_vm4, %v2228_v19   ;;  %v2272_v21 = vpop.permute.xlu0 %2271  }
 0x1f6   :  { %2729 = vst.msk [vmem:[%s4279_s1 + $0x50] sm:$0xff] %vm2021_vm4, %v2217_v20  }
 0x1f7   :  { %2734 = vst.msk [vmem:[%s4279_s1 + $0xf0] sm:$0xff] %vm2021_vm4, %v2272_v21  }
 0x1fc   :  { %v2261_v22 = vpop.permute.xlu2 %2260   ;;  %v2250_v23 = vpop.permute.xlu1 %2249  }
 0x1fd   :  { %2733 = vst.msk [vmem:[%s4279_s1 + $0xd0] sm:$0xff] %vm2021_vm4, %v2261_v22   ;;  %v2305_v24 = vpop.permute.xlu0 %2304  }
 0x1fe   :  { %2732 = vst.msk [vmem:[%s4279_s1 + $0xb0] sm:$0xff] %vm2021_vm4, %v2250_v23  }
 0x1ff   :  { %2737 = vst.msk [vmem:[%s4279_s1 + $0x58] sm:$0xff] %vm2021_vm4, %v2305_v24  }
 0x204   :  { %v2294_v25 = vpop.permute.xlu2 %2293   ;;  %v2283_v26 = vpop.permute.xlu1 %2282  }
 0x205   :  { %2736 = vst.msk [vmem:[%s4279_s1 + $0x38] sm:$0xff] %vm2021_vm4, %v2294_v25   ;;  %v2338_v27 = vpop.permute.xlu0 %2337  }
 0x206   :  { %2735 = vst.msk [vmem:[%s4279_s1 + $0x18] sm:$0xff] %vm2021_vm4, %v2283_v26  }
 0x207   :  { %2740 = vst.msk [vmem:[%s4279_s1 + $0xb8] sm:$0xff] %vm2021_vm4, %v2338_v27  }
 0x20c   :  { %v2327_v28 = vpop.permute.xlu2 %2326   ;;  %v2316_v29 = vpop.permute.xlu1 %2315  }
 0x20d   :  { %2739 = vst.msk [vmem:[%s4279_s1 + $0x98] sm:$0xff] %vm2021_vm4, %v2327_v28  }
 0x20e   :  { %2738 = vst.msk [vmem:[%s4279_s1 + $0x78] sm:$0xff] %vm2021_vm4, %v2316_v29  }
 0x214   :  { %v2360_v30 = vpop.permute.xlu2 %2359   ;;  %v2349_v31 = vpop.permute.xlu1 %2348  }
 0x215   :  { %2742 = vst.msk [vmem:[%s4279_s1 + $0xf8] sm:$0xff] %vm2021_vm4, %v2360_v30  }
 0x216   :  { %2741 = vst.msk [vmem:[%s4279_s1 + $0xd8] sm:$0xff] %vm2021_vm4, %v2349_v31  }

// kernel: nat2d_forward.4
= control target key start
LH: loop header
LB: loop body
LE: loop exit
PB: predicated region body
PF: predicated region fallthrough
CT: control target
= control target key end

     0   :  { %s2790_s24 = smov 0   ;;  %s4614_s0 = inlined_call_operand.vmem [shape: f32[2,64,128], index: 0, kind: input, shape index: {}]   ;;  %s4615_s1 = inlined_call_operand.vmem [shape: f32[2,64,128], index: 1, kind: input, shape index: {}]   ;;  %s4616_s2 = inlined_call_operand.vmem [shape: f32[2,64,128], index: 2, kind: input, shape index: {}]   ;;  %s4617_s3 = inlined_call_operand.vmem [shape: f32[3,128,128], index: 3, kind: input, shape index: {}]   ;;  %s4618_s4 = inlined_call_operand.vmem [shape: f32[3,128,128], index: 4, kind: input, shape index: {}]   ;;  %s4619_s5 = inlined_call_operand.vmem [shape: f32[3,64,64], index: 5, kind: input, shape index: {}]   ;;  %s4620_s6 = inlined_call_operand.vmem [shape: f32[9,64,1], index: 6, kind: input, shape index: {}]   ;;  %s4621_s7 = inlined_call_operand.vmem [shape: f32[2,64,128], index: 7, kind: output, shape index: {}]  }
   0x1 LB: > { %s2262_s25 = sadd.s32 4294967295, %s2747_s24   ;;  %p2266_p0 = scmp.ge.s32.totalorder %s2747_s24, 1  ;;  %s2747_s24 = sphi %s2790_s24, %s17_s24  }
   0x2   : > { %p257_p1 = scmp.lt.s32.totalorder %s2747_s24, 3 }
   0x4   : > { %p258_p2 = pnand %p2266_p0, %p257_p1 }
   0x6   : > { %261 = sbr.rel (%p258_p2) target bundleno = 602 (0x25a), region = 48 }
   0xb   : > { %v366_v0 = vld [vmem:[%s4617_s3 + $0x78] sm:$0xff]  ;;  %v365_v3 = vld [vmem:[%s4617_s3 + $0x70] sm:$0xff]  ;;  %v364_v6 = vld [vmem:[%s4617_s3 + $0x68] sm:$0xff]  ;;  %p2863_p3 = scmp.lt.s32.totalorder %s2262_s25, 1  ;;  %v2749_v55 = vmov 0   ;;  %vm884_vm0 = vcmask 523264  }
   0xc   : > { %v2306_v1 = vld [vmem:[%s4617_s3 + $0x178] sm:$0xff]  ;;  %2521 = vmatpush.msra.mxu1 %v366_v0  ;;  %v2305_v4 = vld [vmem:[%s4617_s3 + $0x170] sm:$0xff]  ;;  %v2304_v7 = vld [vmem:[%s4617_s3 + $0x168] sm:$0xff]  ;;  %367 = vmatpush.msra.mxu0 %v366_v0 }
   0xd   : > { %v2322_v2 = vld [vmem:[%s4618_s4 + $0xf8] sm:$0xff]  ;;  %483 = vmatpush.msra.mxu2 %v2306_v1  ;;  %v2321_v5 = vld [vmem:[%s4618_s4 + $0xf0] sm:$0xff]  ;;  %v2320_v8 = vld [vmem:[%s4618_s4 + $0xe8] sm:$0xff]  ;;  %s4824_s25 = smov (!%p2863_p3, %s2262_s25), 1  ;;  %2571 = vset.pattern.permute.xlu1 %v2749_v55 }
   0xe   : > { %541 = vmatpush.msra.mxu3 %v2322_v2  ;;  %2522 = vmatpush.msra.mxu1 %v365_v3  ;;  %v363_v9 = vld [vmem:[%s4617_s3 + $0x60] sm:$0xff]  ;;  %v362_v12 = vld [vmem:[%s4617_s3 + $0x58] sm:$0xff]  ;;  %v361_v15 = vld [vmem:[%s4617_s3 + $0x50] sm:$0xff]  ;;  %s2907_s30 = sshll.u32 %s4824_s25, 6 }
   0xf   : > { %484 = vmatpush.msra.mxu2 %v2305_v4  ;;  %v2303_v10 = vld [vmem:[%s4617_s3 + $0x160] sm:$0xff]  ;;  %368 = vmatpush.msra.mxu0 %v365_v3  ;;  %v2302_v13 = vld [vmem:[%s4617_s3 + $0x158] sm:$0xff]  ;;  %v2301_v16 = vld [vmem:[%s4617_s3 + $0x150] sm:$0xff]  ;;  %s2928_s19 = scalar_lea.vmem %s4614_s0, %s2907_s30  ;;  %s2934_s22 = scalar_lea.vmem %s4615_s1, %s2907_s30 }
  0x10   : > { %542 = vmatpush.msra.mxu3 %v2321_v5  ;;  %2523 = vmatpush.msra.mxu1 %v364_v6  ;;  %v2319_v11 = vld [vmem:[%s4618_s4 + $0xe0] sm:$0xff]  ;;  %v2318_v14 = vld [vmem:[%s4618_s4 + $0xd8] sm:$0xff]  ;;  %v2317_v17 = vld [vmem:[%s4618_s4 + $0xd0] sm:$0xff]  ;;  %s2965_s18 = scalar_lea.vmem %s4616_s2, %s2907_s30  ;;  %s4545_s12 = scalar_lea.vmem %s4621_s7, %s2907_s30 }
  0x11   : > { %485 = vmatpush.msra.mxu2 %v2304_v7  ;;  %369 = vmatpush.msra.mxu0 %v364_v6  ;;  %v360_v18 = vld [vmem:[%s4617_s3 + $0x48] sm:$0xff]  ;;  %v359_v21 = vld [vmem:[%s4617_s3 + $0x40] sm:$0xff]  ;;  %v358_v24 = vld [vmem:[%s4617_s3 + $0x38] sm:$0xff] }
  0x12   : > { %543 = vmatpush.msra.mxu3 %v2320_v8  ;;  %2524 = vmatpush.msra.mxu1 %v363_v9  ;;  %v2300_v19 = vld [vmem:[%s4617_s3 + $0x148] sm:$0xff]  ;;  %v2299_v22 = vld [vmem:[%s4617_s3 + $0x140] sm:$0xff]  ;;  %v2298_v25 = vld [vmem:[%s4617_s3 + $0x138] sm:$0xff] }
  0x13   : > { %486 = vmatpush.msra.mxu2 %v2303_v10  ;;  %370 = vmatpush.msra.mxu0 %v363_v9  ;;  %v2316_v20 = vld [vmem:[%s4618_s4 + $0xc8] sm:$0xff]  ;;  %v2315_v23 = vld [vmem:[%s4618_s4 + $0xc0] sm:$0xff]  ;;  %v2314_v26 = vld [vmem:[%s4618_s4 + $0xb8] sm:$0xff] }
  0x14   : > { %544 = vmatpush.msra.mxu3 %v2319_v11  ;;  %2525 = vmatpush.msra.mxu1 %v362_v12  ;;  %v357_v27 = vld [vmem:[%s4617_s3 + $0x30] sm:$0xff]  ;;  %v356_v30 = vld [vmem:[%s4617_s3 + $0x28] sm:$0xff]  ;;  %v355_v33 = vld [vmem:[%s4617_s3 + $0x20] sm:$0xff] }
  0x15   : > { %487 = vmatpush.msra.mxu2 %v2302_v13  ;;  %371 = vmatpush.msra.mxu0 %v362_v12  ;;  %v2297_v28 = vld [vmem:[%s4617_s3 + $0x130] sm:$0xff]  ;;  %v2296_v31 = vld [vmem:[%s4617_s3 + $0x128] sm:$0xff]  ;;  %v2295_v34 = vld [vmem:[%s4617_s3 + $0x120] sm:$0xff] }
  0x16   : > { %545 = vmatpush.msra.mxu3 %v2318_v14  ;;  %2526 = vmatpush.msra.mxu1 %v361_v15  ;;  %v2313_v29 = vld [vmem:[%s4618_s4 + $0xb0] sm:$0xff]  ;;  %v2312_v32 = vld [vmem:[%s4618_s4 + $0xa8] sm:$0xff]  ;;  %v2311_v35 = vld [vmem:[%s4618_s4 + $0xa0] sm:$0xff] }
  0x17   : > { %488 = vmatpush.msra.mxu2 %v2301_v16  ;;  %372 = vmatpush.msra.mxu0 %v361_v15  ;;  %v354_v36 = vld [vmem:[%s4617_s3 + $0x18] sm:$0xff]  ;;  %v353_v39 = vld [vmem:[%s4617_s3 + $0x10] sm:$0xff]  ;;  %v352_v42 = vld [vmem:[%s4617_s3 + $0x8] sm:$0xff] }
  0x18   : > { %546 = vmatpush.msra.mxu3 %v2317_v17  ;;  %2527 = vmatpush.msra.mxu1 %v360_v18  ;;  %v2294_v37 = vld [vmem:[%s4617_s3 + $0x118] sm:$0xff]  ;;  %v2293_v40 = vld [vmem:[%s4617_s3 + $0x110] sm:$0xff]  ;;  %v323_v43 = vld [vmem:[%s2928_s19 + $0x20] sm:$0xff] }
  0x19   : > { %489 = vmatpush.msra.mxu2 %v2300_v19  ;;  %373 = vmatpush.msra.mxu0 %v360_v18  ;;  %v2310_v38 = vld [vmem:[%s4618_s4 + $0x98] sm:$0xff]  ;;  %v2309_v41 = vld [vmem:[%s4618_s4 + $0x90] sm:$0xff]  ;;  %v331_v44 = vld [vmem:[%s2934_s22 + $0x20] sm:$0xff] }
  0x1a   : > { %547 = vmatpush.msra.mxu3 %v2316_v20  ;;  %2528 = vmatpush.msra.mxu1 %v359_v21  ;;  %v2292_v45 = vld [vmem:[%s4617_s3 + $0x108] sm:$0xff]  ;;  %v319_v46 = vld [vmem:[%s2928_s19] sm:$0xff]  ;;  %v2973_v51 = vmul.f32 %v331_v44, %v323_v43  ;;  %v2290_v56 = vld [vmem:[%s4617_s3 + $0xf8] sm:$0xff] }
  0x1b   : > { %490 = vmatpush.msra.mxu2 %v2299_v22  ;;  %374 = vmatpush.msra.mxu0 %v359_v21  ;;  %v327_v47 = vld [vmem:[%s2934_s22] sm:$0xff]  ;;  %v2308_v48 = vld [vmem:[%s4618_s4 + $0x88] sm:$0xff]  ;;  %v642_v57 = vld [vmem:[%s4620_s6 + $0x10] sm:$0xff] }
  0x1c   : > { %548 = vmatpush.msra.mxu3 %v2315_v23  ;;  %2529 = vmatpush.msra.mxu1 %v358_v24  ;;  %v351_v49 = vld [vmem:[%s4617_s3] sm:$0xff]  ;;  %v2978_v53 = vmul.f32 %v327_v47, %v319_v46  ;;  %v2289_v58 = vld [vmem:[%s4617_s3 + $0xf0] sm:$0xff]  ;;  %v324_v59 = vld [vmem:[%s2928_s19 + $0x28] sm:$0xff] }
  0x1d   : > { %491 = vmatpush.msra.mxu2 %v2298_v25  ;;  %375 = vmatpush.msra.mxu0 %v358_v24  ;;  %v2291_v50 = vld [vmem:[%s4617_s3 + $0x100] sm:$0xff]  ;;  %v332_v61 = vld [vmem:[%s2934_s22 + $0x28] sm:$0xff]  ;;  %v2286_v6 = vld [vmem:[%s4617_s3 + $0xd8] sm:$0xff] }
  0x1e   : > { %549 = vmatpush.msra.mxu3 %v2314_v26  ;;  %2530 = vmatpush.msra.mxu1 %v357_v27  ;;  %v2307_v52 = vld [vmem:[%s4618_s4 + $0x80] sm:$0xff]  ;;  %v320_v62 = vld [vmem:[%s2928_s19 + $0x8] sm:$0xff]  ;;  %v3011_v3 = vmul.f32 %v332_v61, %v324_v59  ;;  %v643_v7 = vld [vmem:[%s4620_s6 + $0x18] sm:$0xff] }
  0x1f   : > { %492 = vmatpush.msra.mxu2 %v2297_v28  ;;  %376 = vmatpush.msra.mxu0 %v357_v27  ;;  %v2981_v54 = vld [vmem:[%s2965_s18] sm:$0xff]  ;;  %v328_v63 = vld [vmem:[%s2934_s22 + $0x8] sm:$0xff]  ;;  %v2285_v8 = vld [vmem:[%s4617_s3 + $0xd0] sm:$0xff] }
  0x20   : > { %550 = vmatpush.msra.mxu3 %v2313_v29  ;;  %2531 = vmatpush.msra.mxu1 %v356_v30  ;;  %v640_v60 = vld [vmem:[%s4620_s6] sm:$0xff]  ;;  %v2288_v0 = vld [vmem:[%s4617_s3 + $0xe8] sm:$0xff]  ;;  %v3013_v4 = vmul.f32 %v328_v63, %v320_v62  ;;  %v325_v9 = vld [vmem:[%s2928_s19 + $0x30] sm:$0xff] }
  0x21   : > { %493 = vmatpush.msra.mxu2 %v2296_v31  ;;  %377 = vmatpush.msra.mxu0 %v356_v30  ;;  %v644_v1 = vld [vmem:[%s4620_s6 + $0x20] sm:$0xff]  ;;  %v3017_v5 = vld [vmem:[%s2965_s18 + $0x8] sm:$0xff]  ;;  %v333_v11 = vld [vmem:[%s2934_s22 + $0x30] sm:$0xff] }
  0x22   : > { %551 = vmatpush.msra.mxu3 %v2312_v32  ;;  %2532 = vmatpush.msra.mxu1 %v355_v33  ;;  %v2287_v2 = vld [vmem:[%s4617_s3 + $0xe0] sm:$0xff]  ;;  %v641_v10 = vld [vmem:[%s4620_s6 + $0x8] sm:$0xff]  ;;  %v321_v12 = vld [vmem:[%s2928_s19 + $0x10] sm:$0xff]  ;;  %v3047_v17 = vmul.f32 %v333_v11, %v325_v9 }
  0x23   : > { %494 = vmatpush.msra.mxu2 %v2295_v34  ;;  %378 = vmatpush.msra.mxu0 %v355_v33  ;;  %v329_v13 = vld [vmem:[%s2934_s22 + $0x10] sm:$0xff]  ;;  %v2284_v14 = vld [vmem:[%s4617_s3 + $0xc8] sm:$0xff]  ;;  %v2283_v16 = vld [vmem:[%s4617_s3 + $0xc0] sm:$0xff] }
  0x24   : > { %552 = vmatpush.msra.mxu3 %v2311_v35  ;;  %2533 = vmatpush.msra.mxu1 %v354_v36  ;;  %v645_v15 = vld [vmem:[%s4620_s6 + $0x28] sm:$0xff]  ;;  %v3049_v18 = vmul.f32 %v329_v13, %v321_v12  ;;  %v3053_v19 = vld [vmem:[%s2965_s18 + $0x10] sm:$0xff]  ;;  %v2282_v20 = vld [vmem:[%s4617_s3 + $0xb8] sm:$0xff] }
  0x25   : > { %495 = vmatpush.msra.mxu2 %v2294_v37  ;;  %379 = vmatpush.msra.mxu0 %v354_v36  ;;  %v647_v21 = vld [vmem:[%s4620_s6 + $0x38] sm:$0xff]  ;;  %v2281_v22 = vld [vmem:[%s4617_s3 + $0xb0] sm:$0xff]  ;;  %v2280_v28 = vld [vmem:[%s4617_s3 + $0xa8] sm:$0xff] }
  0x26   : > { %553 = vmatpush.msra.mxu3 %v2310_v38  ;;  %2534 = vmatpush.msra.mxu1 %v353_v39  ;;  %v326_v23 = vld [vmem:[%s2928_s19 + $0x38] sm:$0xff]  ;;  %v646_v24 = vld [vmem:[%s4620_s6 + $0x30] sm:$0xff]  ;;  %v2339_v29 = vld [vmem:[%s4620_s6 + $0x40] sm:$0xff] }
  0x27   : > { %496 = vmatpush.msra.mxu2 %v2293_v40  ;;  %380 = vmatpush.msra.mxu0 %v353_v39  ;;  %v334_v25 = vld [vmem:[%s2934_s22 + $0x38] sm:$0xff]  ;;  %v2279_v30 = vld [vmem:[%s4617_s3 + $0xa0] sm:$0xff]  ;;  %v2341_v35 = vld [vmem:[%s4620_s6 + $0x50] sm:$0xff] }
  0x28   : > { %554 = vmatpush.msra.mxu3 %v2309_v41  ;;  %2535 = vmatpush.msra.mxu1 %v352_v42  ;;  %v322_v26 = vld [vmem:[%s2928_s19 + $0x18] sm:$0xff]  ;;  %v3083_v31 = vmul.f32 %v334_v25, %v326_v23  ;;  %v2277_v36 = vld [vmem:[%s4617_s3 + $0x90] sm:$0xff]  ;;  %v2340_v37 = vld [vmem:[%s4620_s6 + $0x48] sm:$0xff] }
  0x29   : > { %497 = vmatpush.msra.mxu2 %v2292_v45  ;;  %660 = vperm.xlu1 %2571, %v642_v57   ;;  %v330_v27 = vld [vmem:[%s2934_s22 + $0x18] sm:$0xff]  ;;  %v2276_v38 = vld [vmem:[%s4617_s3 + $0x88] sm:$0xff]  ;;  %v2275_v40 = vld [vmem:[%s4617_s3 + $0x80] sm:$0xff] }
  0x2a   : > { %555 = vmatpush.msra.mxu3 %v2308_v48  ;;  %2536 = vmatpush.msra.mxu1 %v351_v49  ;;  %v3085_v32 = vmul.f32 %v330_v27, %v322_v26  ;;  %v3089_v33 = vld [vmem:[%s2965_s18 + $0x18] sm:$0xff]  ;;  %v3117_v41 = vld [vmem:[%s2965_s18 + $0x20] sm:$0xff]  ;;  %v2337_v45 = vld [vmem:[%s4618_s4 + $0x170] sm:$0xff] }
  0x2b   : > { %498 = vmatpush.msra.mxu2 %v2291_v50  ;;  %395 = vmatmul.f32.vlgmr.msra.gmra.mxu1 %v2973_v51  ;;  %v2278_v34 = vld [vmem:[%s4617_s3 + $0x98] sm:$0xff]  ;;  %v2343_v43 = vld [vmem:[%s4620_s6 + $0x60] sm:$0xff]  ;;  %v2336_v46 = vld [vmem:[%s4618_s4 + $0x168] sm:$0xff] }
  0x2c   : > { %556 = vmatpush.msra.mxu3 %v2307_v52  ;;  %499 = vmatmul.f32.vlgmr.msra.gmra.mxu2 %v2978_v53  ;;  %v2342_v39 = vld [vmem:[%s4620_s6 + $0x58] sm:$0xff]  ;;  %v2345_v47 = vld [vmem:[%s4620_s6 + $0x70] sm:$0xff]  ;;  %v3141_v48 = vld [vmem:[%s2965_s18 + $0x28] sm:$0xff] }
  0x2d   : > { %557 = vmatmul.f32.vlgmr.msra.gmra.mxu3 %v2981_v54  ;;  %425 = vmatpush.msrb.mxu1 %v2290_v56  ;;  %v2338_v44 = vld [vmem:[%s4618_s4 + $0x178] sm:$0xff]  ;;  %v2335_v52 = vld [vmem:[%s4618_s4 + $0x160] sm:$0xff]  ;;  %v2348_v56 = vld [vmem:[%s4620_s6 + $0x88] sm:$0xff] }
  0x2e   : > { %381 = vmatpush.msra.mxu0 %v352_v42  ;;  %2570 = vset.pattern.permute.xlu0 %v2749_v55  ;;  %v2344_v42 = vld [vmem:[%s4620_s6 + $0x68] sm:$0xff]  ;;  %v2346_v50 = vld [vmem:[%s4620_s6 + $0x78] sm:$0xff]  ;;  %v2331_v61 = vld [vmem:[%s4618_s4 + $0x140] sm:$0xff] }
  0x2f   : > { %426 = vmatpush.msrb.mxu1 %v2289_v58  ;;  %650 = vperm.xlu0 %2570, %v640_v60   ;;  %v2332_v57 = vld [vmem:[%s4618_s4 + $0x148] sm:$0xff]  ;;  %v3168_v58 = vld [vmem:[%s2965_s18 + $0x30] sm:$0xff]  ;;  %v2350_v59 = vld [vmem:[%s4620_s6 + $0x98] sm:$0xff] }
  0x30   : > { %382 = vmatpush.msra.mxu0 %v351_v49  ;;  %2572 = vset.pattern.permute.xlu2 %v2749_v55  ;;  %v2347_v49 = vld [vmem:[%s4620_s6 + $0x80] sm:$0xff]  ;;  %v2333_v55 = vld [vmem:[%s4618_s4 + $0x150] sm:$0xff]  ;;  %v2330_v62 = vld [vmem:[%s4618_s4 + $0x138] sm:$0xff] }
  0x31   : > { %427 = vmatpush.msrb.mxu1 %v2288_v0  ;;  %383 = vmatmul.f32.vlgmr.msra.gmra.mxu0 %v2978_v53  ;;  %v2349_v60 = vld [vmem:[%s4620_s6 + $0x90] sm:$0xff]  ;;  %v2328_v0 = vld [vmem:[%s4618_s4 + $0x128] sm:$0xff]  ;;  %v2351_v9 = vld [vmem:[%s4620_s6 + $0xa0] sm:$0xff] }
  0x32   : > { %670 = vperm.xlu2 %2572, %v644_v1   ;;  %665 = vperm.xlu1 %2571, %v643_v7   ;;  %v2329_v63 = vld [vmem:[%s4618_s4 + $0x130] sm:$0xff]  ;;  %v3192_v1 = vld [vmem:[%s2965_s18 + $0x38] sm:$0xff]  ;;  %v2323_v11 = vld [vmem:[%s4618_s4 + $0x100] sm:$0xff] }
  0x33   : > { %428 = vmatpush.msrb.mxu1 %v2287_v2  ;;  %599 = vmatpush.msrb.mxu0 %v2338_v44  ;;  %v2353_v2 = vld [vmem:[%s4620_s6 + $0xb0] sm:$0xff]  ;;  %v2326_v7 = vld [vmem:[%s4618_s4 + $0x118] sm:$0xff]  ;;  %v2364_v12 = vld [vmem:[%s4620_s6 + $0xc8] sm:$0xff] }
  0x34   : > { %398 = vmatmul.f32.gmra.mxu1 %v3011_v3  ;;  %502 = vmatmul.f32.gmra.mxu2 %v3013_v4  ;;  %v2363_v13 = vld [vmem:[%s4620_s6 + $0xc0] sm:$0xff]  ;;  %v2386_v26 = vld [vmem:[%s4620_s6 + $0x138] sm:$0xff] }
  0x35   : > { %560 = vmatmul.f32.gmra.mxu3 %v3017_v5  ;;  %429 = vmatpush.msrb.mxu1 %v2286_v6  ;;  %v2327_v6 = vld [vmem:[%s4618_s4 + $0x120] sm:$0xff]  ;;  %v2382_v27 = vld [vmem:[%s4620_s6 + $0x118] sm:$0xff] }
  0x36   : > { %2537 = vmatpush.msrb.mxu2 %v2338_v44  ;;  %600 = vmatpush.msrb.mxu0 %v2337_v45  ;;  %v2383_v23 = vld [vmem:[%s4620_s6 + $0x120] sm:$0xff] }
  0x37   : > { %430 = vmatpush.msrb.mxu1 %v2285_v8  ;;  %655 = vperm.xlu0 %2570, %v641_v10   ;;  %v2325_v8 = vld [vmem:[%s4618_s4 + $0x110] sm:$0xff]  ;;  %v2324_v10 = vld [vmem:[%s4618_s4 + $0x108] sm:$0xff]  ;;  %v2395_v25 = vld [vmem:[%s4620_s6 + $0x140] sm:$0xff] }
  0x38   : > { %2538 = vmatpush.msrb.mxu2 %v2337_v45  ;;  %601 = vmatpush.msrb.mxu0 %v2336_v46  ;;  %v2419_v44 = vld [vmem:[%s4620_s6 + $0x180] sm:$0xff] }
  0x39   : > { %431 = vmatpush.msrb.mxu1 %v2284_v14  ;;  %386 = vmatmul.f32.gmra.mxu0 %v3013_v4  ;;  %v2354_v14 = vld [vmem:[%s4620_s6 + $0xb8] sm:$0xff] }
  0x3a   : > { %675 = vperm.xlu2 %2572, %v645_v15   ;;  %685 = vperm.xlu1 %2571, %v647_v21   ;;  %v2366_v15 = vld [vmem:[%s4620_s6 + $0xd8] sm:$0xff]  ;;  %v2368_v21 = vld [vmem:[%s4620_s6 + $0xe8] sm:$0xff] }
  0x3b   : > { %432 = vmatpush.msrb.mxu1 %v2283_v16  ;;  %2539 = vmatpush.msrb.mxu2 %v2336_v46  ;;  %v2370_v16 = vld [vmem:[%s4620_s6 + $0xf8] sm:$0xff] }
  0x3c   : > { %401 = vmatmul.f32.gmra.mxu1 %v3047_v17  ;;  %505 = vmatmul.f32.gmra.mxu2 %v3049_v18 }
  0x3d   : > { %563 = vmatmul.f32.gmra.mxu3 %v3053_v19  ;;  %433 = vmatpush.msrb.mxu1 %v2282_v20  ;;  %v2381_v20 = vld [vmem:[%s4620_s6 + $0x110] sm:$0xff] }
  0x3e   : > { %602 = vmatpush.msrb.mxu0 %v2335_v52  ;;  %2540 = vmatpush.msrb.mxu2 %v2335_v52 }
  0x3f   : > { %434 = vmatpush.msrb.mxu1 %v2281_v22  ;;  %680 = vperm.xlu0 %2570, %v646_v24   ;;  %v2384_v22 = vld [vmem:[%s4620_s6 + $0x128] sm:$0xff]  ;;  %v2379_v24 = vld [vmem:[%s4620_s6 + $0x100] sm:$0xff] }
  0x41   : > { %435 = vmatpush.msrb.mxu1 %v2280_v28  ;;  %389 = vmatmul.f32.gmra.mxu0 %v3049_v18  ;;  %v2398_v28 = vld [vmem:[%s4620_s6 + $0x158] sm:$0xff] }
  0x42   : > { %707 = vperm.xlu2 %2572, %v2339_v29   ;;  %717 = vperm.xlu1 %2571, %v2341_v35   ;;  %v2397_v29 = vld [vmem:[%s4620_s6 + $0x150] sm:$0xff] }
  0x43   : > { %436 = vmatpush.msrb.mxu1 %v2279_v30  ;;  %v2401_v35 = vld [vmem:[%s4620_s6 + $0x170] sm:$0xff] }
  0x44   : > { %404 = vmatmul.f32.gmra.mxu1 %v3083_v31  ;;  %508 = vmatmul.f32.gmra.mxu2 %v3085_v32 }
  0x45   : > { %566 = vmatmul.f32.gmra.mxu3 %v3089_v33  ;;  %437 = vmatpush.msrb.mxu1 %v2278_v34  ;;  %v2385_v34 = vld [vmem:[%s4620_s6 + $0x130] sm:$0xff] }
  0x47   : > { %438 = vmatpush.msrb.mxu1 %v2277_v36  ;;  %712 = vperm.xlu0 %2570, %v2340_v37   ;;  %v2400_v36 = vld [vmem:[%s4620_s6 + $0x168] sm:$0xff] }
  0x49   : > { %439 = vmatpush.msrb.mxu1 %v2276_v38  ;;  %392 = vmatmul.f32.gmra.mxu0 %v3085_v32 }
  0x4a   : > { %722 = vperm.xlu2 %2572, %v2342_v39   ;;  %732 = vperm.xlu1 %2571, %v2344_v42   ;;  %v2396_v42 = vld [vmem:[%s4620_s6 + $0x148] sm:$0xff] }
  0x4b   : > { %440 = vmatpush.msrb.mxu1 %v2275_v40 }
  0x4c   : > { %441 = vmatmul.f32.vlgmr.msrb.gmra.mxu1 %v2978_v53  ;;  %511 = vmatmul.f32.gmra.mxu2 %v2973_v51  ;;  %v2334_v53 = vld [vmem:[%s4618_s4 + $0x158] sm:$0xff] }
  0x4d   : > { %569 = vmatmul.f32.gmra.mxu3 %v3117_v41  ;;  %603 = vmatpush.msrb.mxu0 %v2334_v53 }
  0x4e   : > { %2541 = vmatpush.msrb.mxu2 %v2334_v53 }
  0x4f   : > { %727 = vperm.xlu0 %2570, %v2343_v43   ;;  %604 = vmatpush.msrb.mxu0 %v2333_v55  ;;  %v2420_v43 = vld [vmem:[%s4620_s6 + $0x188] sm:$0xff] }
  0x50   : > { %2542 = vmatpush.msrb.mxu2 %v2333_v55  ;;  %v2399_v55 = vld [vmem:[%s4620_s6 + $0x160] sm:$0xff] }
  0x51   : > { %605 = vmatpush.msrb.mxu0 %v2332_v57 }
  0x52   : > { %737 = vperm.xlu2 %2572, %v2345_v47   ;;  %772 = vperm.xlu1 %2571, %v2347_v49  }
  0x53   : > { %606 = vmatpush.msrb.mxu0 %v2331_v61  ;;  %2543 = vmatpush.msrb.mxu2 %v2332_v57  ;;  %v2422_v57 = vld [vmem:[%s4620_s6 + $0x198] sm:$0xff] }
  0x54   : > { %444 = vmatmul.f32.gmra.mxu1 %v3013_v4  ;;  %514 = vmatmul.f32.gmra.mxu2 %v3011_v3  ;;  %v2352_v4 = vld [vmem:[%s4620_s6 + $0xa8] sm:$0xff] }
  0x55   : > { %572 = vmatmul.f32.gmra.mxu3 %v3141_v48  ;;  %607 = vmatpush.msrb.mxu0 %v2330_v62 }
  0x56   : > { %2544 = vmatpush.msrb.mxu2 %v2331_v61 }
  0x57   : > { %742 = vperm.xlu0 %2570, %v2346_v50   ;;  %608 = vmatpush.msrb.mxu0 %v2329_v63 }
  0x58   : > { %2545 = vmatpush.msrb.mxu2 %v2330_v62 }
  0x59   : > { %609 = vmatpush.msrb.mxu0 %v2328_v0 }
  0x5a   : > { %777 = vperm.xlu2 %2572, %v2348_v56   ;;  %787 = vperm.xlu1 %2571, %v2350_v59   ;;  %v2423_v56 = vld [vmem:[%s4620_s6 + $0x1a0] sm:$0xff] }
  0x5b   : > { %610 = vmatpush.msrb.mxu0 %v2327_v6  ;;  %2546 = vmatpush.msrb.mxu2 %v2329_v63 }
  0x5c   : > { %447 = vmatmul.f32.gmra.mxu1 %v3049_v18  ;;  %517 = vmatmul.f32.gmra.mxu2 %v3047_v17  ;;  %v2365_v18 = vld [vmem:[%s4620_s6 + $0xd0] sm:$0xff] }
  0x5d   : > { %575 = vmatmul.f32.gmra.mxu3 %v3168_v58  ;;  %611 = vmatpush.msrb.mxu0 %v2326_v7 }
  0x5e   : > { %2547 = vmatpush.msrb.mxu2 %v2328_v0 }
  0x5f   : > { %782 = vperm.xlu0 %2570, %v2349_v60   ;;  %612 = vmatpush.msrb.mxu0 %v2325_v8 }
  0x60   : > { %2548 = vmatpush.msrb.mxu2 %v2327_v6  ;;  %v2426_v6 = vld [vmem:[%s4620_s6 + $0x1b8] sm:$0xff] }
  0x61   : > { %613 = vmatpush.msrb.mxu0 %v2324_v10 }
  0x62   : > { %802 = vperm.xlu1 %2571, %v2353_v2   ;;  %792 = vperm.xlu2 %2572, %v2351_v9  }
  0x63   : > { %2549 = vmatpush.msrb.mxu2 %v2326_v7  ;;  %614 = vmatpush.msrb.mxu0 %v2323_v11  ;;  %v2425_v7 = vld [vmem:[%s4620_s6 + $0x1b0] sm:$0xff] }
  0x64   : > { %450 = vmatmul.f32.gmra.mxu1 %v3085_v32  ;;  %520 = vmatmul.f32.gmra.mxu2 %v3083_v31 }
  0x65   : > { %578 = vmatmul.f32.gmra.mxu3 %v3192_v1  ;;  %615 = vmatmul.f32.vlgmr.msrb.gmra.mxu0 %v2981_v54 }
  0x66   : > { %2550 = vmatpush.msrb.mxu2 %v2325_v8 }
  0x67   : > { %797 = vperm.xlu0 %2570, %v2352_v4   ;;  %v2402_v4 = vld [vmem:[%s4620_s6 + $0x178] sm:$0xff] }
  0x68   : > { %2551 = vmatpush.msrb.mxu2 %v2324_v10 }
  0x6a   : > { %851 = vperm.xlu1 %2571, %v2364_v12   ;;  %807 = vperm.xlu2 %2572, %v2354_v14   ;;  %v2421_v14 = vld [vmem:[%s4620_s6 + $0x190] sm:$0xff] }
  0x6b   : > { %2552 = vmatpush.msrb.mxu2 %v2323_v11 }
  0x6c   : > { %453 = vmatmul.f32.gmra.mxu1 %v2973_v51  ;;  %v2367_v51 = vld [vmem:[%s4620_s6 + $0xe0] sm:$0xff]  ;;  %633 = vmatmul.f32.vlgmr.msrb.gmra.mxu2 %v3168_v58 }
  0x6d   : > { %618 = vmatmul.f32.gmra.mxu0 %v3017_v5 }
  0x6f   : > { %846 = vperm.xlu0 %2570, %v2363_v13  }
  0x72   : > { %866 = vperm.xlu1 %2571, %v2367_v51   ;;  %856 = vperm.xlu2 %2572, %v2365_v18   ;;  %v2437_v51 = vld [vmem:[%s4620_s6 + $0x1d0] sm:$0xff] }
  0x74   : > { %456 = vmatmul.f32.gmra.mxu1 %v3011_v3  ;;  %v2369_v3 = vld [vmem:[%s4620_s6 + $0xf0] sm:$0xff]  ;;  %636 = vmatmul.f32.gmra.mxu2 %v3192_v1 }
  0x75   : > { %621 = vmatmul.f32.gmra.mxu0 %v3053_v19 }
  0x77   : > { %861 = vperm.xlu0 %2570, %v2366_v15  }
  0x7a   : > { %881 = vperm.xlu1 %2571, %v2370_v16   ;;  %871 = vperm.xlu2 %2572, %v2368_v21   ;;  %v2436_v16 = vld [vmem:[%s4620_s6 + $0x1c8] sm:$0xff] }
  0x7c   : > { %459 = vmatmul.f32.gmra.mxu1 %v3047_v17  ;;  %v2380_v17 = vld [vmem:[%s4620_s6 + $0x108] sm:$0xff] }
  0x7d   : > { %624 = vmatmul.f32.gmra.mxu0 %v3089_v33 }
  0x7f   : > { %876 = vperm.xlu0 %2570, %v2369_v3  }
  0x82   : > { %979 = vperm.xlu1 %2571, %v2381_v20   ;;  %969 = vperm.xlu2 %2572, %v2379_v24  }
  0x84   : > { %462 = vmatmul.f32.gmra.mxu1 %v3083_v31 }
  0x85   : > { %627 = vmatmul.f32.gmra.mxu0 %v3117_v41 }
  0x87   : > { %974 = vperm.xlu0 %2570, %v2380_v17  }
  0x8a   : > { %994 = vperm.xlu1 %2571, %v2384_v22   ;;  %984 = vperm.xlu2 %2572, %v2382_v27   ;;  %v2440_v27 = vld [vmem:[%s4620_s6 + $0x1e8] sm:$0xff] }
  0x8c   : > { %v3290_v30 = vpop.permute.xlu2 %670 }
  0x8d   : > { %630 = vmatmul.f32.gmra.mxu0 %v3141_v48 }
  0x8f   : > { %989 = vperm.xlu0 %2570, %v2383_v23  }
  0x92   : > { %1067 = vperm.xlu1 %2571, %v2395_v25   ;;  %999 = vperm.xlu2 %2572, %v2385_v34  }
  0x94   : > { %v3305_v37 = vpop.permute.xlu2 %675 }
  0x97   : > { %1004 = vperm.xlu0 %2570, %v2386_v26   ;;  %v2424_v26 = vld [vmem:[%s4620_s6 + $0x1a8] sm:$0xff] }
  0x9a   : > { %1082 = vperm.xlu1 %2571, %v2398_v28   ;;  %1072 = vperm.xlu2 %2572, %v2396_v42  }
  0x9b   : > { %v3292_v31 = vpop.permute.xlu1 %660 }
  0x9c   : > { %v708_v50 = vpop.permute.xlu2 %707 }
  0x9f   : > { %1077 = vperm.xlu0 %2570, %v2397_v29  }
  0xa1   : > { %v3294_v32 = vpop.permute.xlu0 %650 }
  0xa2   : > { %1097 = vperm.xlu1 %2571, %v2401_v35   ;;  %1087 = vperm.xlu2 %2572, %v2399_v55   ;;  %v3451_v35 = vld [vmem:[%s4619_s5 + $0x70] sm:$0xff] }
  0xa4   : > { %v3309_v39 = vpop.permute.xlu1 %665  ;;  %v3355_v2 = vpop.permute.xlu2 %722 }
  0xa7   : > { %1092 = vperm.xlu0 %2570, %v2400_v36   ;;  %v3456_v36 = vld [vmem:[%s4619_s5 + $0x80] sm:$0xff] }
  0xa8   : > { %v3307_v38 = vpop.f32.mrf.mxu1 }
  0xa9   : > { %v3311_v40 = vpop.permute.xlu0 %655 }
  0xaa   : > { %1179 = vperm.xlu1 %2571, %v2420_v43   ;;  %1102 = vperm.xlu2 %2572, %v2402_v4   ;;  %v3499_v4 = vld [vmem:[%s4619_s5 + $0x48] sm:$0xff] }
  0xac   : > { %v3328_v49 = vpop.permute.xlu1 %685  ;;  %v3390_v15 = vpop.permute.xlu2 %737 }
  0xae   : > { %v3322_v45 = vpop.f32.mrf.mxu0 }
  0xaf   : > { %v3324_v46 = vpop.f32.mrf.mxu2  ;;  %1174 = vperm.xlu0 %2570, %v2419_v44   ;;  %v3408_v21 = vadd.f32 %v3294_v32, %v3322_v45  ;;  %v3443_v32 = vld [vmem:[%s4619_s5 + $0x40] sm:$0xff] }
  0xb0   : > { %v3326_v47 = vpop.f32.mrf.mxu3 }
  0xb1   : > { %v3330_v52 = vpop.f32.mrf.mxu1  ;;  %v3332_v53 = vpop.permute.xlu0 %680  ;;  %4684 = vst [vmem:[#allocation4_spill] sm:$0xff] %v3408_v21 }
  0xb2   : > { %1194 = vperm.xlu1 %2571, %v2423_v56   ;;  %1184 = vperm.xlu2 %2572, %v2421_v14   ;;  %v3511_v14 = vld [vmem:[%s4619_s5 + $0x88] sm:$0xff] }
  0xb4   : > { %v3349_v62 = vpop.permute.xlu1 %717  ;;  %v778_v42 = vpop.permute.xlu2 %777 }
  0xb6   : > { %v3343_v59 = vpop.f32.mrf.mxu0 }
  0xb7   : > { %v3345_v60 = vpop.f32.mrf.mxu2  ;;  %1189 = vperm.xlu0 %2570, %v2422_v57   ;;  %v3464_v44 = vadd.f32 %v3311_v40, %v3343_v59  ;;  %v2435_v57 = vld [vmem:[%s4620_s6 + $0x1c0] sm:$0xff] }
  0xb8   : > { %v3347_v61 = vpop.f32.mrf.mxu3  ;;  %v3483_v40 = vadd.f32 %v778_v42, %v3345_v60  ;;  %v2438_v42 = vld [vmem:[%s4620_s6 + $0x1d8] sm:$0xff] }
  0xb9   : > { %v3351_v63 = vpop.f32.mrf.mxu1  ;;  %v3353_v0 = vpop.permute.xlu0 %712  ;;  %4688 = vst [vmem:[#allocation8_spill] sm:$0xff] %v3464_v44 }
  0xba   : > { %1209 = vperm.xlu1 %2571, %v2426_v6   ;;  %1199 = vperm.xlu2 %2572, %v2424_v26   ;;  %4690 = vst [vmem:[#allocation10_spill] sm:$0xff] %v3483_v40 }
  0xbc   : > { %v3372_v11 = vpop.permute.xlu1 %732 }
  0xbe   : > { %v3366_v8 = vpop.f32.mrf.mxu0 }
  0xbf   : > { %v3368_v9 = vpop.f32.mrf.mxu2  ;;  %1204 = vperm.xlu0 %2570, %v2425_v7   ;;  %v3506_v7 = vld [vmem:[%s4619_s5 + $0x78] sm:$0xff] }
  0xc0   : > { %v3370_v10 = vpop.f32.mrf.mxu3 }
  0xc1   : > { %4682 = vst [vmem:[#allocation2_spill] sm:$0xff] %v3370_v10  ;;  %v3374_v12 = vpop.f32.mrf.mxu1  ;;  %v3379_v13 = vpop.permute.xlu0 %727 }
  0xc2   : > { %917 = vmatpush.msra.mxu1 %v3374_v12  ;;  %2553 = vmatpush.msrb.mxu3 %v3374_v12 }
  0xc3   : > { %1244 = vmatpush.msra.mxu0 %v3374_v12  ;;  %1306 = vperm.xlu1 %2571, %v2437_v51  }
  0xc4   : > { %918 = vmatpush.msra.mxu1 %v3351_v63  ;;  %2554 = vmatpush.msrb.mxu3 %v3351_v63  ;;  %v773_v17 = vpop.permute.xlu1 %772 }
  0xc5   : > { %1245 = vmatpush.msra.mxu0 %v3351_v63  ;;  %v3419_v24 = vadd.f32 %v773_v17, %v3324_v46  ;;  %1296 = vperm.xlu2 %2572, %v2435_v57   ;;  %v3517_v17 = vadd.f32 %v3292_v31, %v3366_v8 }
  0xc6   : > { %919 = vmatpush.msra.mxu1 %v3330_v52  ;;  %2555 = vmatpush.msrb.mxu3 %v3330_v52  ;;  %v3400_v18 = vpop.f32.mrf.mxu0 }
  0xc7   : > { %1246 = vmatpush.msra.mxu0 %v3330_v52  ;;  %v3398_v3 = vpop.f32.mrf.mxu2  ;;  %1301 = vperm.xlu0 %2570, %v2436_v16   ;;  %4686 = vst [vmem:[#allocation6_spill] sm:$0xff] %v3419_v24 }
  0xc8   : > { %v3402_v20 = vpop.f32.mrf.mxu3  ;;  %920 = vmatpush.msra.mxu1 %v3307_v38  ;;  %2556 = vmatpush.msrb.mxu3 %v3307_v38  ;;  %4692 = vst [vmem:[#allocation12_spill] sm:$0xff] %v3517_v17 }
  0xc9   : > { %4683 = vst [vmem:[#allocation3_spill] sm:$0xff] %v3402_v20  ;;  %1247 = vmatpush.msra.mxu0 %v3307_v38  ;;  %v3411_v22 = vpop.f32.mrf.mxu1  ;;  %v3433_v28 = vpop.permute.xlu0 %742 }
  0xca   : > { %v3414_v23 = vadd.f32 %v708_v50, %v3411_v22  ;;  %921 = vmatpush.msra.mxu1 %v3400_v18  ;;  %2557 = vmatpush.msrb.mxu3 %v3400_v18  ;;  %v2439_v50 = vld [vmem:[%s4620_s6 + $0x1e0] sm:$0xff] }
  0xcb   : > { %1248 = vmatpush.msra.mxu0 %v3400_v18  ;;  %1321 = vperm.xlu1 %2571, %v2440_v27  }
  0xcc   : > { %4685 = vst [vmem:[#allocation5_spill] sm:$0xff] %v3414_v23  ;;  %v753_v25 = vmax.f32 %v3408_v21, %v3414_v23  ;;  %922 = vmatpush.msra.mxu1 %v3366_v8  ;;  %2558 = vmatpush.msrb.mxu3 %v3366_v8 }
  0xcd   : > { %1249 = vmatpush.msra.mxu0 %v3366_v8  ;;  %1311 = vperm.xlu2 %2572, %v2438_v42   ;;  %v2453_v42 = vld [vmem:[%s4620_s6 + $0x210] sm:$0xff] }
  0xce   : > { %v3436_v29 = vmax.f32 %v753_v25, %v3419_v24  ;;  %923 = vmatpush.msra.mxu1 %v3343_v59  ;;  %2559 = vmatpush.msrb.mxu3 %v3343_v59  ;;  %v2442_v25 = vld [vmem:[%s4620_s6 + $0x1f8] sm:$0xff] }
  0xcf   : > { %1250 = vmatpush.msra.mxu0 %v3343_v59  ;;  %v3446_v34 = vpop.f32.mrf.mxu2  ;;  %1316 = vperm.xlu0 %2570, %v2439_v50   ;;  %v2451_v59 = vld [vmem:[%s4620_s6 + $0x200] sm:$0xff] }
  0xd0   : > { %v3458_v43 = vpop.f32.mrf.mxu3  ;;  %924 = vmatpush.msra.mxu1 %v3322_v45  ;;  %2560 = vmatpush.msrb.mxu3 %v3322_v45 }
  0xd1   : > { %4687 = vst [vmem:[#allocation7_spill] sm:$0xff] %v3458_v43  ;;  %1251 = vmatpush.msra.mxu0 %v3322_v45  ;;  %v3470_v55 = vpop.f32.mrf.mxu1  ;;  %2371 = vmatmul.msk.f32.vlgmr.msra.gmra.mxu1 %vm884_vm0, %v3443_v32  ;;  %v783_v51 = vpop.permute.xlu0 %782 }
  0xd2   : > { %v3476_v56 = vadd.f32 %v3353_v0, %v3470_v55  ;;  %2377 = vmatmul.msk.f32.vlgmr.msrb.gmra.mxu3 %vm884_vm0, %v3451_v35  ;;  %2427 = vmatmul.msk.f32.vlgmr.msra.gmra.mxu0 %vm884_vm0, %v3456_v36  ;;  %v3535_v31 = vadd.f32 %v783_v51, %v3368_v9  ;;  %v788_v51 = vpop.permute.xlu1 %787 }
  0xd3   : > { %1394 = vperm.xlu1 %2571, %v2451_v59   ;;  %v3558_v59 = vld [vmem:[%s4619_s5 + $0x90] sm:$0xff] }
  0xd4   : > { %4689 = vst [vmem:[#allocation9_spill] sm:$0xff] %v3476_v56  ;;  %v754_v45 = vmax.f32 %v3464_v44, %v3476_v56 }
  0xd5   : > { %4694 = vst [vmem:[#allocation14_spill] sm:$0xff] %v3535_v31 }
  0xd6   : > { %v3494_v0 = vmax.f32 %v754_v45, %v3483_v40  ;;  %v3551_v45 = vld [vmem:[%s4619_s5 + $0x50] sm:$0xff] }
  0xd7   : > { %v3501_v6 = vpop.f32.mrf.mxu2  ;;  %1331 = vperm.xlu0 %2570, %v2442_v25  }
  0xd8   : > { %v3513_v16 = vpop.f32.mrf.mxu3 }
  0xd9   : > { %4691 = vst [vmem:[#allocation11_spill] sm:$0xff] %v3513_v16  ;;  %v3522_v26 = vpop.f32.mrf.mxu1  ;;  %2372 = vmatmul.msk.f32.gmra.mxu1 %vm884_vm0, %v3499_v4 }
  0xda   : > { %v3528_v27 = vadd.f32 %v3349_v62, %v3522_v26  ;;  %2378 = vmatmul.msk.f32.gmra.mxu3 %vm884_vm0, %v3506_v7  ;;  %2428 = vmatmul.msk.f32.gmra.mxu0 %vm884_vm0, %v3511_v14  ;;  %v2454_v62 = vld [vmem:[%s4620_s6 + $0x218] sm:$0xff] }
  0xdb   : > { %1409 = vperm.xlu1 %2571, %v2454_v62   ;;  %v3580_v62 = vadd.f32 %v788_v51, %v3398_v3  ;;  %v3596_v51 = vld [vmem:[%s4619_s5 + $0x58] sm:$0xff] }
  0xdc   : > { %4693 = vst [vmem:[#allocation13_spill] sm:$0xff] %v3528_v27  ;;  %v755_v8 = vmax.f32 %v3517_v17, %v3528_v27  ;;  %v2457_v17 = vld [vmem:[%s4620_s6 + $0x230] sm:$0xff] }
  0xdd   : > { %4698 = vst [vmem:[#allocation18_spill] sm:$0xff] %v3580_v62 }
  0xde   : > { %v3546_v50 = vmax.f32 %v755_v8, %v3535_v31  ;;  %v3564_v8 = vadd.f32 %v3309_v39, %v3400_v18  ;;  %v2441_v18 = vld [vmem:[%s4620_s6 + $0x1f0] sm:$0xff] }
  0xdf   : > { %v3553_v57 = vpop.f32.mrf.mxu2  ;;  %1404 = vperm.xlu0 %2570, %v2453_v42   ;;  %1326 = vperm.xlu2 %2572, %v2441_v18  }
  0xe0   : > { %v3560_v25 = vpop.f32.mrf.mxu3  ;;  %4696 = vst [vmem:[#allocation16_spill] sm:$0xff] %v3564_v8 }
  0xe1   : > { %4695 = vst [vmem:[#allocation15_spill] sm:$0xff] %v3560_v25  ;;  %v3569_v31 = vpop.f32.mrf.mxu1  ;;  %2373 = vmatmul.msk.f32.gmra.mxu1 %vm884_vm0, %v3551_v45 }
  0xe2   : > { %v3575_v27 = vadd.f32 %v3355_v2, %v3569_v31  ;;  %2429 = vmatmul.msk.f32.gmra.mxu0 %vm884_vm0, %v3558_v59 }
  0xe3   : > { %1424 = vperm.xlu1 %2571, %v2457_v17   ;;  %v3625_v17 = vadd.f32 %v3290_v30, %v3307_v38  ;;  %v2452_v30 = vld [vmem:[%s4620_s6 + $0x208] sm:$0xff] }
  0xe4   : > { %4697 = vst [vmem:[#allocation17_spill] sm:$0xff] %v3575_v27  ;;  %v756_v39 = vmax.f32 %v3564_v8, %v3575_v27  ;;  %v3603_v27 = vld [vmem:[%s4619_s5 + $0x98] sm:$0xff]  ;;  %v793_v8 = vpop.permute.xlu2 %792 }
  0xe5   : > { %4701 = vst [vmem:[#allocation21_spill] sm:$0xff] %v3625_v17  ;;  %v3628_v56 = vadd.f32 %v793_v8, %v3446_v34  ;;  %v3647_v8 = vld [vmem:[%s4619_s5 + $0x60] sm:$0xff] }
  0xe6   : > { %v3591_v2 = vmax.f32 %v756_v39, %v3580_v62  ;;  %v2456_v39 = vld [vmem:[%s4620_s6 + $0x228] sm:$0xff] }
  0xe7   : > { %v3598_v42 = vpop.f32.mrf.mxu2  ;;  %4702 = vst [vmem:[#allocation22_spill] sm:$0xff] %v3628_v56  ;;  %1419 = vperm.xlu0 %2570, %v2456_v39   ;;  %1399 = vperm.xlu2 %2572, %v2452_v30   ;;  %v3653_v39 = vld [vmem:[%s4619_s5 + $0xa0] sm:$0xff]  ;;  %v3667_v30 = vadd.f32 %v3305_v37, %v3330_v52  ;;  %v3686_v37 = vld [vmem:[%s4619_s5 + $0x68] sm:$0xff] }
  0xe8   : > { %v3605_v40 = vpop.f32.mrf.mxu3  ;;  %1113 = vmatpush.msra.mxu3 %v3598_v42  ;;  %v2455_v52 = vld [vmem:[%s4620_s6 + $0x220] sm:$0xff] }
  0xe9   : > { %4699 = vst [vmem:[#allocation19_spill] sm:$0xff] %v3605_v40  ;;  %1754 = vmatpush.msrb.mxu0 %v3605_v40  ;;  %v3612_v18 = vpop.f32.mrf.mxu1  ;;  %2374 = vmatmul.msk.f32.gmra.mxu1 %vm884_vm0, %v3596_v51 }
  0xea   : > { %v3618_v62 = vadd.f32 %v3379_v13, %v3612_v18  ;;  %2430 = vmatmul.msk.f32.gmra.mxu0 %vm884_vm0, %v3603_v27  ;;  %1114 = vmatpush.msra.mxu3 %v3553_v57  ;;  %v3634_v13 = vpop.f32.mrf.mxu0  ;;  %4704 = vst [vmem:[#allocation24_spill] sm:$0xff] %v3667_v30 }
  0xeb   : > { %1755 = vmatpush.msrb.mxu0 %v3560_v25 }
  0xec   : > { %4700 = vst [vmem:[#allocation20_spill] sm:$0xff] %v3618_v62  ;;  %v757_v44 = vmax.f32 %v3625_v17, %v3618_v62  ;;  %1115 = vmatpush.msra.mxu3 %v3501_v6  ;;  %v798_v62 = vpop.permute.xlu0 %797 }
  0xed   : > { %1756 = vmatpush.msrb.mxu0 %v3513_v16  ;;  %v3670_v17 = vadd.f32 %v798_v62, %v3501_v6  ;;  %v803_v62 = vpop.permute.xlu1 %802 }
  0xee   : > { %v3641_v38 = vmax.f32 %v757_v44, %v3628_v56  ;;  %1116 = vmatpush.msra.mxu3 %v3446_v34 }
  0xef   : > { %1757 = vmatpush.msrb.mxu0 %v3458_v43  ;;  %4705 = vst [vmem:[#allocation25_spill] sm:$0xff] %v3670_v17  ;;  %1414 = vperm.xlu2 %2572, %v2455_v52  }
  0xf0   : > { %1117 = vmatpush.msra.mxu3 %v3398_v3 }
  0xf1   : > { %1758 = vmatpush.msrb.mxu0 %v3402_v20  ;;  %v457_v44 = vpop.f32.mrf.mxu1  ;;  %2375 = vmatmul.msk.f32.gmra.mxu1 %vm884_vm0, %v3647_v8 }
  0xf2   : > { %v3660_v56 = vadd.f32 %v3372_v11, %v457_v44  ;;  %2431 = vmatmul.msk.f32.gmra.mxu0 %vm884_vm0, %v3653_v39  ;;  %1118 = vmatpush.msra.mxu3 %v3368_v9  ;;  %v3676_v11 = vpop.f32.mrf.mxu0 }
  0xf3   : > { %1759 = vmatpush.msrb.mxu0 %v3370_v10  ;;  %4706 = vst [vmem:[#allocation26_spill] sm:$0xff] %v3676_v11 }
  0xf4   : > { %4703 = vst [vmem:[#allocation23_spill] sm:$0xff] %v3660_v56  ;;  %v758_v24 = vmax.f32 %v3667_v30, %v3660_v56  ;;  %1119 = vmatpush.msra.mxu3 %v3345_v60  ;;  %v3703_v56 = vadd.f32 %v803_v62, %v3553_v57  ;;  %v3707_v30 = vadd.f32 %v3332_v53, %v3351_v63  ;;  %v2458_v53 = vld [vmem:[%s4620_s6 + $0x238] sm:$0xff]  ;;  %v808_v62 = vpop.permute.xlu2 %807 }
  0xf5   : > { %1760 = vmatpush.msrb.mxu0 %v3347_v61 }
  0xf6   : > { %v3680_v23 = vmax.f32 %v758_v24, %v3670_v17  ;;  %1120 = vmatpush.msra.mxu3 %v3324_v46  ;;  %v3697_v24 = vld [vmem:[%s4619_s5 + $0xa8] sm:$0xff]  ;;  %4708 = vst [vmem:[#allocation28_spill] sm:$0xff] %v3703_v56 }
  0xf7   : > { %1761 = vmatpush.msrb.mxu0 %v3326_v47  ;;  %2403 = vmatmul.msk.f32.vlgmr.msra.gmra.mxu3 %vm884_vm0, %v3443_v32  ;;  %4709 = vst [vmem:[#allocation29_spill] sm:$0xff] %v3707_v30 }
  0xf8   : > { %4707 = vst [vmem:[#allocation27_spill] sm:$0xff] %v3680_v23  ;;  %1665 = vmatpush.msrb.mxu3 %v3192_v1  ;;  %1429 = vperm.xlu2 %2572, %v2458_v53   ;;  %v3748_v53 = vpop.f32.mrf.mxu2 }
  0xf9   : > { %v460_v17 = vpop.f32.mrf.mxu1  ;;  %2376 = vmatmul.msk.f32.gmra.mxu1 %vm884_vm0, %v3686_v37  ;;  %4716 = vst [vmem:[#allocation36_spill] sm:$0xff] %v3748_v53 }
  0xfa   : > { %v3710_v21 = vadd.f32 %v3390_v15, %v460_v17  ;;  %2432 = vmatmul.msk.f32.gmra.mxu0 %vm884_vm0, %v3697_v24  ;;  %1666 = vmatpush.msrb.mxu3 %v3168_v58  ;;  %v3718_v23 = vpop.f32.mrf.mxu0  ;;  %v3732_v15 = vld [vmem:[%s4619_s5 + $0xb0] sm:$0xff] }
  0xfb   : > { %4711 = vst [vmem:[#allocation31_spill] sm:$0xff] %v3718_v23 }
  0xfc   : > { %4710 = vst [vmem:[#allocation30_spill] sm:$0xff] %v3710_v21  ;;  %v759_v52 = vmax.f32 %v3707_v30, %v3710_v21  ;;  %1667 = vmatpush.msrb.mxu3 %v3141_v48  ;;  %v3736_v30 = vadd.f32 %v808_v62, %v3598_v42 }
  0xfe   : > { %1668 = vmatpush.msrb.mxu3 %v3117_v41  ;;  %v3725_v63 = vmax.f32 %v759_v52, %v3703_v56  ;;  %4713 = vst [vmem:[#allocation33_spill] sm:$0xff] %v3736_v30  ;;  %v3740_v52 = vadd.f32 %v3328_v49, %v3374_v12  ;;  %v3763_v12 = vld [vmem:[%s4619_s5 + $0xb8] sm:$0xff] }
  0xff   : > { %2404 = vmatmul.msk.f32.gmra.mxu3 %vm884_vm0, %v3499_v4 }
 0x100   : > { %4712 = vst [vmem:[#allocation32_spill] sm:$0xff] %v3725_v63  ;;  %1669 = vmatpush.msrb.mxu3 %v3089_v33 }
 0x101   : > { %v463_v21 = vpop.f32.mrf.mxu1  ;;  %4714 = vst [vmem:[#allocation34_spill] sm:$0xff] %v3740_v52 }
 0x102   : > { %v3743_v56 = vadd.f32 %v3433_v28, %v463_v21  ;;  %2433 = vmatmul.msk.f32.gmra.mxu0 %vm884_vm0, %v3732_v15  ;;  %1670 = vmatpush.msrb.mxu3 %v3053_v19  ;;  %v3753_v63 = vpop.f32.mrf.mxu0  ;;  %v857_v28 = vpop.permute.xlu2 %856 }
 0x103   : > { %1015 = vmatpush.msra.mxu2 %v463_v21  ;;  %1342 = vmatpush.msrb.mxu1 %v463_v21  ;;  %4717 = vst [vmem:[#allocation37_spill] sm:$0xff] %v3753_v63 }
 0x104   : > { %4715 = vst [vmem:[#allocation35_spill] sm:$0xff] %v3743_v56  ;;  %v760_v62 = vmax.f32 %v3740_v52, %v3743_v56  ;;  %1671 = vmatpush.msrb.mxu3 %v3017_v5 }
 0x105   : > { %1016 = vmatpush.msra.mxu2 %v460_v17  ;;  %1343 = vmatpush.msrb.mxu1 %v460_v17 }
 0x106   : > { %1672 = vmatpush.msrb.mxu3 %v2981_v54  ;;  %v3757_v49 = vmax.f32 %v760_v62, %v3736_v30  ;;  %v3773_v54 = vpop.f32.mrf.mxu2 }
 0x107   : > { %1017 = vmatpush.msra.mxu2 %v457_v44  ;;  %1344 = vmatpush.msrb.mxu1 %v457_v44  ;;  %4718 = vst [vmem:[#allocation38_spill] sm:$0xff] %v3773_v54 }
 0x108   : > { %2021 = vmatpush.msra.mxu3 %v3605_v40  ;;  %2110 = vmatpush.msra.mxu0 %v3773_v54 }
 0x109   : > { %2405 = vmatmul.msk.f32.gmra.mxu3 %vm884_vm0, %v3551_v45  ;;  %1018 = vmatpush.msra.mxu2 %v3612_v18 }
 0x10a   : > { %1345 = vmatpush.msrb.mxu1 %v3612_v18  ;;  %2022 = vmatpush.msra.mxu3 %v3560_v25  ;;  %v3777_v5 = vpop.f32.mrf.mxu0 }
 0x10b   : > { %2434 = vmatmul.msk.f32.gmra.mxu0 %vm884_vm0, %v3763_v12  ;;  %1019 = vmatpush.msra.mxu2 %v3569_v31  ;;  %4719 = vst [vmem:[#allocation39_spill] sm:$0xff] %v3777_v5 }
 0x10c   : > { %1346 = vmatpush.msrb.mxu1 %v3569_v31  ;;  %2023 = vmatpush.msra.mxu3 %v3513_v16 }
 0x10d   : > { %1020 = vmatpush.msra.mxu2 %v3522_v26  ;;  %2111 = vmatpush.msra.mxu0 %v3748_v53 }
 0x10e   : > { %1347 = vmatpush.msrb.mxu1 %v3522_v26  ;;  %2024 = vmatpush.msra.mxu3 %v3458_v43 }
 0x10f   : > { %1021 = vmatpush.msra.mxu2 %v3470_v55 }
 0x110   : > { %1348 = vmatpush.msrb.mxu1 %v3470_v55  ;;  %2025 = vmatpush.msra.mxu3 %v3402_v20 }
 0x111   : > { %2406 = vmatmul.msk.f32.gmra.mxu3 %vm884_vm0, %v3596_v51  ;;  %1022 = vmatpush.msra.mxu2 %v3411_v22 }
 0x112   : > { %1349 = vmatpush.msrb.mxu1 %v3411_v22  ;;  %2026 = vmatpush.msra.mxu3 %v3370_v10  ;;  %v3803_v21 = vpop.f32.mrf.mxu0 }
 0x113   : > { %2387 = vmatmul.msk.f32.vlgmr.msra.gmra.mxu2 %vm884_vm0, %v3443_v32  ;;  %2443 = vmatmul.msk.f32.vlgmr.msrb.gmra.mxu1 %vm884_vm0, %v3456_v36  ;;  %4720 = vst [vmem:[#allocation40_spill] sm:$0xff] %v3803_v21 }
 0x114   : > { %1440 = vmatpush.msrb.mxu2 %v3598_v42  ;;  %2027 = vmatpush.msra.mxu3 %v3347_v61 }
 0x115   : > { %2475 = vmatmul.msk.f32.vlgmr.msrb.gmra.mxu0 %vm884_vm0, %v3443_v32  ;;  %1843 = vmatpush.msra.mxu1 %v3773_v54 }
 0x116   : > { %1441 = vmatpush.msrb.mxu2 %v3553_v57  ;;  %2028 = vmatpush.msra.mxu3 %v3326_v47 }
 0x117   : > { %1844 = vmatpush.msra.mxu1 %v3748_v53  ;;  %2112 = vmatpush.msra.mxu0 %v3803_v21 }
 0x118   : > { %1442 = vmatpush.msrb.mxu2 %v3501_v6 }
 0x119   : > { %2407 = vmatmul.msk.f32.gmra.mxu3 %vm884_vm0, %v3647_v8  ;;  %1845 = vmatpush.msra.mxu1 %v3803_v21 }
 0x11a   : > { %1443 = vmatpush.msrb.mxu2 %v3446_v34  ;;  %2113 = vmatpush.msra.mxu0 %v3777_v5 }
 0x11b   : > { %2388 = vmatmul.msk.f32.gmra.mxu2 %vm884_vm0, %v3499_v4  ;;  %2444 = vmatmul.msk.f32.gmra.mxu1 %vm884_vm0, %v3511_v14 }
 0x11c   : > { %1444 = vmatpush.msrb.mxu2 %v3398_v3  ;;  %1846 = vmatpush.msra.mxu1 %v3777_v5 }
 0x11d   : > { %2476 = vmatmul.msk.f32.gmra.mxu0 %vm884_vm0, %v3499_v4 }
 0x11e   : > { %1445 = vmatpush.msrb.mxu2 %v3368_v9  ;;  %1847 = vmatpush.msra.mxu1 %v3753_v63 }
 0x11f   : > { %2114 = vmatpush.msra.mxu0 %v3753_v63 }
 0x120   : > { %1446 = vmatpush.msrb.mxu2 %v3345_v60  ;;  %1848 = vmatpush.msra.mxu1 %v3718_v23 }
 0x121   : > { %2408 = vmatmul.msk.f32.gmra.mxu3 %vm884_vm0, %v3686_v37  ;;  %2115 = vmatpush.msra.mxu0 %v3718_v23 }
 0x122   : > { %1447 = vmatpush.msrb.mxu2 %v3324_v46  ;;  %1849 = vmatpush.msra.mxu1 %v3676_v11  ;;  %v852_v46 = vpop.permute.xlu1 %851 }
 0x123   : > { %2389 = vmatmul.msk.f32.gmra.mxu2 %vm884_vm0, %v3551_v45  ;;  %2445 = vmatmul.msk.f32.gmra.mxu1 %vm884_vm0, %v3558_v59 }
 0x124   : > { %2116 = vmatpush.msra.mxu0 %v3676_v11  ;;  %1850 = vmatpush.msra.mxu1 %v3634_v13 }
 0x125   : > { %2477 = vmatmul.msk.f32.gmra.mxu0 %vm884_vm0, %v3551_v45  ;;  %1932 = vmatpush.msra.mxu2 %v3192_v1 }
 0x126   : > { %2117 = vmatpush.msra.mxu0 %v3634_v13 }
 0x127   : > { %1933 = vmatpush.msra.mxu2 %v3168_v58  ;;  %v3857_v58 = vld [vmem:[%s2965_s18 + $0x8] sm:$0xff] }
 0x129   : > { %2409 = vmatmul.msk.f32.gmra.mxu3 %vm884_vm0, %v3451_v35  ;;  %1934 = vmatpush.msra.mxu2 %v3141_v48 }
 0x12b   : > { %2390 = vmatmul.msk.f32.gmra.mxu2 %vm884_vm0, %v3596_v51  ;;  %2446 = vmatmul.msk.f32.gmra.mxu1 %vm884_vm0, %v3603_v27 }
 0x12c   : > { %1935 = vmatpush.msra.mxu2 %v3117_v41  ;;  %v3865_v41 = vld [vmem:[%s2965_s18] sm:$0xff] }
 0x12d   : > { %2478 = vmatmul.msk.f32.gmra.mxu0 %vm884_vm0, %v3596_v51 }
 0x12e   : > { %1936 = vmatpush.msra.mxu2 %v3089_v33 }
 0x130   : > { %1937 = vmatpush.msra.mxu2 %v3053_v19  ;;  %v847_v19 = vpop.permute.xlu0 %846 }
 0x131   : > { %2410 = vmatmul.msk.f32.gmra.mxu3 %vm884_vm0, %v3506_v7 }
 0x132   : > { %1938 = vmatpush.msra.mxu2 %v3857_v58 }
 0x133   : > { %2391 = vmatmul.msk.f32.gmra.mxu2 %vm884_vm0, %v3647_v8  ;;  %2447 = vmatmul.msk.f32.gmra.mxu1 %vm884_vm0, %v3653_v39 }
 0x134   : > { %1939 = vmatpush.msra.mxu2 %v3865_v41 }
 0x135   : > { %2479 = vmatmul.msk.f32.gmra.mxu0 %vm884_vm0, %v3647_v8 }
 0x138   : > { %v862_v60 = vpop.permute.xlu0 %861 }
 0x139   : > { %2467 = vmatmul.msk.f32.vlgmr.msrb.gmra.mxu3 %vm884_vm0, %v3443_v32 }
 0x13b   : > { %2392 = vmatmul.msk.f32.gmra.mxu2 %vm884_vm0, %v3686_v37  ;;  %2448 = vmatmul.msk.f32.gmra.mxu1 %vm884_vm0, %v3697_v24 }
 0x13d   : > { %2480 = vmatmul.msk.f32.gmra.mxu0 %vm884_vm0, %v3686_v37 }
 0x140   : > { %v3918_v34 = vpop.permute.xlu0 %876 }
 0x141   : > { %2468 = vmatmul.msk.f32.gmra.mxu3 %vm884_vm0, %v3499_v4 }
 0x143   : > { %2393 = vmatmul.msk.f32.gmra.mxu2 %vm884_vm0, %v3451_v35  ;;  %2449 = vmatmul.msk.f32.gmra.mxu1 %vm884_vm0, %v3732_v15 }
 0x145   : > { %2481 = vmatmul.msk.f32.gmra.mxu0 %vm884_vm0, %v3451_v35 }
 0x148   : > { %v3936_v18 = vpop.permute.xlu0 %974 }
 0x149   : > { %2469 = vmatmul.msk.f32.gmra.mxu3 %vm884_vm0, %v3551_v45 }
 0x14b   : > { %2394 = vmatmul.msk.f32.gmra.mxu2 %vm884_vm0, %v3506_v7  ;;  %2450 = vmatmul.msk.f32.gmra.mxu1 %vm884_vm0, %v3763_v12 }
 0x14d   : > { %2482 = vmatmul.msk.f32.gmra.mxu0 %vm884_vm0, %v3506_v7 }
 0x14e   : > { %v926_v33 = vpop.f32.mrf.mxu1 }
 0x14f   : > { %v3894_v48 = vadd.f32 %v926_v33, %v847_v19  ;;  %v1253_v19 = vpop.f32.mrf.mxu0 }
 0x151   : > { %2470 = vmatmul.msk.f32.gmra.mxu3 %vm884_vm0, %v3596_v51  ;;  %v4723_v5 = vmax.f32 %v3436_v29, %v3894_v48 }
 0x153   : > { %2459 = vmatmul.msk.f32.vlgmr.msrb.gmra.mxu2 %vm884_vm0, %v3456_v36  ;;  %2483 = vmatmul.msk.f32.vlgmr.msra.gmra.mxu1 %vm884_vm0, %v3443_v32  ;;  %v867_v32 = vpop.permute.xlu1 %866 }
 0x155   : > { %2507 = vmatmul.msk.f32.vlgmr.msra.gmra.mxu0 %vm884_vm0, %v3456_v36  ;;  %v3938_v17 = vpop.f32.mrf.mxu3 }
 0x156   : > { %v929_v9 = vpop.f32.mrf.mxu1 }
 0x157   : > { %v3906_v3 = vadd.f32 %v929_v9, %v852_v46  ;;  %v3958_v9 = vpop.permute.xlu0 %989 }
 0x159   : > { %2471 = vmatmul.msk.f32.gmra.mxu3 %vm884_vm0, %v3647_v8 }
 0x15b   : > { %2460 = vmatmul.msk.f32.gmra.mxu2 %vm884_vm0, %v3511_v14  ;;  %2484 = vmatmul.msk.f32.gmra.mxu1 %vm884_vm0, %v3499_v4  ;;  %v872_v4 = vpop.permute.xlu2 %871  ;;  %v3932_v31 = vpop.permute.xlu1 %881 }
 0x15d   : > { %2508 = vmatmul.msk.f32.gmra.mxu0 %vm884_vm0, %v3511_v14 }
 0x15e   : > { %v932_v55 = vpop.f32.mrf.mxu1 }
 0x15f   : > { %v3920_v6 = vadd.f32 %v932_v55, %v857_v28  ;;  %v3960_v28 = vpop.f32.mrf.mxu3 }
 0x161   : > { %2472 = vmatmul.msk.f32.gmra.mxu3 %vm884_vm0, %v3686_v37 }
 0x163   : > { %2461 = vmatmul.msk.f32.gmra.mxu2 %vm884_vm0, %v3558_v59  ;;  %2485 = vmatmul.msk.f32.gmra.mxu1 %vm884_vm0, %v3551_v45  ;;  %v970_v45 = vpop.permute.xlu2 %969  ;;  %v3952_v46 = vpop.permute.xlu1 %979 }
 0x165   : > { %2509 = vmatmul.msk.f32.gmra.mxu0 %vm884_vm0, %v3558_v59 }
 0x166   : > { %v935_v57 = vpop.f32.mrf.mxu1 }
 0x167   : > { %v3934_v42 = vadd.f32 %v935_v57, %v862_v60  ;;  %v1256_v57 = vpop.f32.mrf.mxu0 }
 0x169   : > { %2473 = vmatmul.msk.f32.gmra.mxu3 %vm884_vm0, %v3451_v35 }
 0x16b   : > { %2462 = vmatmul.msk.f32.gmra.mxu2 %vm884_vm0, %v3603_v27  ;;  %2486 = vmatmul.msk.f32.gmra.mxu1 %vm884_vm0, %v3596_v51  ;;  %v3970_v55 = vpop.permute.xlu2 %984  ;;  %v3976_v44 = vpop.permute.xlu1 %994 }
 0x16d   : > { %2510 = vmatmul.msk.f32.gmra.mxu0 %vm884_vm0, %v3603_v27 }
 0x16e   : > { %v938_v62 = vpop.f32.mrf.mxu1 }
 0x16f   : > { %v3950_v33 = vadd.f32 %v938_v62, %v867_v32  ;;  %v4722_v62 = vld [vmem:[#allocation27_spill] sm:$0xff]  ;;  %v1259_v60 = vpop.f32.mrf.mxu0 }
 0x171   : > { %2474 = vmatmul.msk.f32.gmra.mxu3 %vm884_vm0, %v3506_v7 }
 0x173   : > { %2463 = vmatmul.msk.f32.gmra.mxu2 %vm884_vm0, %v3653_v39  ;;  %2487 = vmatmul.msk.f32.gmra.mxu1 %vm884_vm0, %v3647_v8  ;;  %v3982_v8 = vpop.permute.xlu0 %1004  ;;  %v1068_v22 = vpop.permute.xlu1 %1067 }
 0x175   : > { %2511 = vmatmul.msk.f32.gmra.mxu0 %vm884_vm0, %v3653_v39 }
 0x176   : > { %v941_v51 = vpop.f32.mrf.mxu1 }
 0x177   : > { %v3968_v32 = vadd.f32 %v941_v51, %v872_v4  ;;  %v3988_v4 = vpop.permute.xlu2 %999  ;;  %v1262_v40 = vpop.f32.mrf.mxu0 }
 0x179   : > { %4721 = vst [vmem:[#allocation41_spill] sm:$0xff] %v3968_v32  ;;  %2499 = vmatmul.msk.f32.vlgmr.msra.gmra.mxu3 %vm884_vm0, %v3456_v36 }
 0x17a   : > { %v1122_v26 = vpop.f32.mrf.mxu3 }
 0x17b   : > { %2464 = vmatmul.msk.f32.gmra.mxu2 %vm884_vm0, %v3697_v24  ;;  %2488 = vmatmul.msk.f32.gmra.mxu1 %vm884_vm0, %v3686_v37  ;;  %v1078_v37 = vpop.permute.xlu0 %1077  ;;  %v4012_v16 = vadd.f32 %v1122_v26, %v1068_v22 }
 0x17d   : > { %2512 = vmatmul.msk.f32.gmra.mxu0 %vm884_vm0, %v3697_v24 }
 0x17f   : > { %v1073_v1 = vpop.permute.xlu2 %1072  ;;  %v1265_v52 = vpop.f32.mrf.mxu0 }
 0x181   : > { %2500 = vmatmul.msk.f32.gmra.mxu3 %vm884_vm0, %v3511_v14 }
 0x182   : > { %v1125_v51 = vpop.f32.mrf.mxu3 }
 0x183   : > { %2465 = vmatmul.msk.f32.gmra.mxu2 %vm884_vm0, %v3732_v15  ;;  %2489 = vmatmul.msk.f32.gmra.mxu1 %vm884_vm0, %v3451_v35  ;;  %v1083_v35 = vpop.permute.xlu1 %1082  ;;  %v4004_v53 = vpop.permute.xlu0 %1092 }
 0x185   : > { %2513 = vmatmul.msk.f32.gmra.mxu0 %vm884_vm0, %v3732_v15 }
 0x187   : > { %v1088_v30 = vpop.permute.xlu2 %1087 }
 0x189   : > { %2501 = vmatmul.msk.f32.gmra.mxu3 %vm884_vm0, %v3558_v59 }
 0x18b   : > { %2466 = vmatmul.msk.f32.gmra.mxu2 %vm884_vm0, %v3763_v12  ;;  %2490 = vmatmul.msk.f32.gmra.mxu1 %vm884_vm0, %v3506_v7  ;;  %v1098_v21 = vpop.permute.xlu1 %1097  ;;  %v1175_v63 = vpop.permute.xlu0 %1174 }
 0x18c   : > { %v1128_v54 = vpop.f32.mrf.mxu3  ;;  %v4020_v20 = vadd.f32 %v1253_v19, %v1175_v63  ;;  %v4035_v63 = vadd.f32 %v1125_v51, %v1073_v1 }
 0x18d   : > { %2514 = vmatmul.msk.f32.gmra.mxu0 %vm884_vm0, %v3763_v12 }
 0x191   : > { %2502 = vmatmul.msk.f32.gmra.mxu3 %vm884_vm0, %v3603_v27 }
 0x193   : > { %2491 = vmatmul.msk.f32.vlgmr.msra.gmra.mxu2 %vm884_vm0, %v3456_v36  ;;  %v4022_v36 = vpop.f32.mrf.mxu1 }
 0x194   : > { %v1131_v25 = vpop.f32.mrf.mxu3 }
 0x196   : > { %v1024_v56 = vpop.f32.mrf.mxu2 }
 0x197   : > { %v4010_v7 = vadd.f32 %v1024_v56, %v970_v45  ;;  %v1268_v45 = vpop.f32.mrf.mxu0 }
 0x199   : > { %v1048_v43 = vmax.f32 %v4723_v5, %v4010_v7  ;;  %2503 = vmatmul.msk.f32.gmra.mxu3 %vm884_vm0, %v3653_v39  ;;  %v4033_v5 = vpop.permute.xlu2 %1102 }
 0x19b   : > { %v1146_v23 = vmax.f32 %v1048_v43, %v4012_v16  ;;  %2492 = vmatmul.msk.f32.gmra.mxu2 %vm884_vm0, %v3511_v14  ;;  %v4724_v43 = vmax.f32 %v3494_v0, %v3906_v3  ;;  %v1180_v14 = vpop.permute.xlu1 %1179 }
 0x19c   : > { %v1134_v56 = vpop.f32.mrf.mxu3 }
 0x19d   : > { %v4028_v22 = vmax.f32 %v1146_v23, %v4020_v20  ;;  %v4043_v23 = vadd.f32 %v1256_v57, %v1180_v14  ;;  %v4726_v57 = vmax.f32 %v3546_v50, %v3920_v6 }
 0x19e   : > { %v1027_v26 = vpop.f32.mrf.mxu2 }
 0x19f   : > { %v4031_v29 = vadd.f32 %v1027_v26, %v3936_v18  ;;  %4725 = vst [vmem:[#allocation27_spill] sm:$0xff] %v4043_v23  ;;  %v4048_v26 = vpop.f32.mrf.mxu1  ;;  %v1271_v11 = vpop.f32.mrf.mxu0 }
 0x1a1   : > { %v1049_v19 = vmax.f32 %v4724_v43, %v4031_v29  ;;  %2504 = vmatmul.msk.f32.gmra.mxu3 %vm884_vm0, %v3697_v24  ;;  %v4056_v43 = vadd.f32 %v1128_v54, %v1078_v37 }
 0x1a3   : > { %v1147_v10 = vmax.f32 %v1049_v19, %v4035_v63  ;;  %2493 = vmatmul.msk.f32.gmra.mxu2 %vm884_vm0, %v3558_v59  ;;  %v1185_v59 = vpop.permute.xlu2 %1184  ;;  %v1195_v50 = vpop.permute.xlu1 %1194 }
 0x1a4   : > { %v1137_v18 = vpop.f32.mrf.mxu3  ;;  %v4064_v14 = vadd.f32 %v1259_v60, %v1185_v59  ;;  %v4079_v60 = vadd.f32 %v1131_v25, %v1083_v35 }
 0x1a5   : > { %v4051_v1 = vmax.f32 %v1147_v10, %v4043_v23 }
 0x1a6   : > { %v1030_v51 = vpop.f32.mrf.mxu2  ;;  %4727 = vst [vmem:[#allocation42_spill] sm:$0xff] %v4064_v14 }
 0x1a7   : > { %v4054_v0 = vadd.f32 %v1030_v51, %v3952_v46  ;;  %4729 = vst [vmem:[#allocation44_spill] sm:$0xff] %v4079_v60 }
 0x1a9   : > { %v1050_v19 = vmax.f32 %v4726_v57, %v4054_v0  ;;  %2505 = vmatmul.msk.f32.gmra.mxu3 %vm884_vm0, %v3732_v15  ;;  %v4074_v57 = vpop.f32.mrf.mxu1 }
 0x1ab   : > { %v1148_v10 = vmax.f32 %v1050_v19, %v4056_v43  ;;  %2494 = vmatmul.msk.f32.gmra.mxu2 %vm884_vm0, %v3603_v27  ;;  %v4730_v19 = vmax.f32 %v3591_v2, %v3934_v42  ;;  %v1200_v35 = vpop.permute.xlu2 %1199 }
 0x1ac   : > { %v1140_v46 = vpop.f32.mrf.mxu3 }
 0x1ad   : > { %v4069_v54 = vadd.f32 %v1140_v46, %v1098_v21  ;;  %v4072_v37 = vmax.f32 %v1148_v10, %v4064_v14  ;;  %v1190_v21 = vpop.permute.xlu0 %1189  ;;  %v1274_v46 = vpop.f32.mrf.mxu0  ;;  %v4098_v14 = vadd.f32 %v1134_v56, %v1088_v30 }
 0x1ae   : > { %v1033_v51 = vpop.f32.mrf.mxu2  ;;  %v4087_v59 = vadd.f32 %v1262_v40, %v1190_v21  ;;  %v4106_v21 = vadd.f32 %v1265_v52, %v1195_v50  ;;  %v4122_v52 = vadd.f32 %v1137_v18, %v4004_v53 }
 0x1af   : > { %4728 = vst [vmem:[#allocation43_spill] sm:$0xff] %v4069_v54  ;;  %v4077_v23 = vadd.f32 %v1033_v51, %v3970_v55 }
 0x1b0   : > { %4731 = vst [vmem:[#allocation45_spill] sm:$0xff] %v4087_v59 }
 0x1b1   : > { %v1051_v27 = vmax.f32 %v4730_v19, %v4077_v23  ;;  %2506 = vmatmul.msk.f32.gmra.mxu3 %vm884_vm0, %v3763_v12  ;;  %v1210_v19 = vpop.permute.xlu1 %1209  ;;  %v4100_v40 = vpop.f32.mrf.mxu1  ;;  %4733 = vst [vmem:[#allocation46_spill] sm:$0xff] %v4106_v21 }
 0x1b2   : > { %4735 = vst [vmem:[#allocation48_spill] sm:$0xff] %v4122_v52 }
 0x1b3   : > { %v1149_v10 = vmax.f32 %v1051_v27, %v4079_v60  ;;  %2495 = vmatmul.msk.f32.gmra.mxu2 %vm884_vm0, %v3653_v39  ;;  %v4732_v27 = vmax.f32 %v3641_v38, %v3950_v33  ;;  %v1297_v38 = vpop.permute.xlu2 %1296 }
 0x1b4   : > { %v1143_v55 = vpop.f32.mrf.mxu3 }
 0x1b5   : > { %v4093_v25 = vmax.f32 %v1149_v10, %v4087_v59  ;;  %v1205_v56 = vpop.permute.xlu0 %1204 }
 0x1b6   : > { %v1036_v51 = vpop.f32.mrf.mxu2 }
 0x1b7   : > { %v4096_v2 = vadd.f32 %v1036_v51, %v3958_v9  ;;  %v4113_v9 = vpop.f32.mrf.mxu0 }
 0x1b9   : > { %v1052_v39 = vmax.f32 %v4732_v27, %v4096_v2  ;;  %v1307_v27 = vpop.permute.xlu1 %1306 }
 0x1bb   : > { %v1150_v10 = vmax.f32 %v1052_v39, %v4098_v14  ;;  %2496 = vmatmul.msk.f32.gmra.mxu2 %vm884_vm0, %v3697_v24  ;;  %v4736_v24 = vmax.f32 %v4722_v62, %v3968_v32  ;;  %v4130_v39 = vadd.f32 %v3938_v17, %v3918_v34 }
 0x1bc   : > { %v4111_v59 = vpop.f32.mrf.mxu3 }
 0x1bd   : > { %v4116_v30 = vmax.f32 %v1150_v10, %v4106_v21  ;;  %4737 = vst [vmem:[#allocation49_spill] sm:$0xff] %v4130_v39  ;;  %v4132_v10 = vadd.f32 %v1268_v45, %v1200_v35  ;;  %v4134_v21 = vpop.f32.mrf.mxu1  ;;  %v1302_v45 = vpop.permute.xlu0 %1301 }
 0x1be   : > { %v1039_v51 = vpop.f32.mrf.mxu2 }
 0x1bf   : > { %v4119_v60 = vadd.f32 %v1039_v51, %v3976_v44  ;;  %4738 = vst [vmem:[#allocation50_spill] sm:$0xff] %v4132_v10  ;;  %v4739_v51 = vld [vmem:[#allocation32_spill] sm:$0xff]  ;;  %v4146_v34 = vpop.f32.mrf.mxu0 }
 0x1c1   : > { %4734 = vst [vmem:[#allocation47_spill] sm:$0xff] %v4119_v60  ;;  %v1053_v50 = vmax.f32 %v4736_v24, %v4119_v60  ;;  %v956_v24 = vmax.f32 %v4739_v51, %v4130_v39  ;;  %v1322_v51 = vpop.permute.xlu1 %1321  ;;  %v4216_v60 = vadd.f32 %v4074_v57, %v1307_v27 }
 0x1c3   : > { %v1151_v44 = vmax.f32 %v1053_v50, %v4122_v52  ;;  %2497 = vmatmul.msk.f32.gmra.mxu2 %vm884_vm0, %v3732_v15  ;;  %v1312_v50 = vpop.permute.xlu2 %1311  ;;  %v4154_v15 = vadd.f32 %v3960_v28, %v3932_v31  ;;  %v4156_v52 = vadd.f32 %v1271_v11, %v1205_v56  ;;  %v4172_v11 = vadd.f32 %v1143_v55, %v4033_v5 }
 0x1c4   : > { %v4139_v53 = vpop.f32.mrf.mxu3 }
 0x1c5   : > { %v4142_v18 = vmax.f32 %v1151_v44, %v4132_v10  ;;  %4741 = vst [vmem:[#allocation51_spill] sm:$0xff] %v4154_v15  ;;  %v1366_v10 = vpop.f32.mrf.mxu1  ;;  %v1317_v56 = vpop.permute.xlu0 %1316 }
 0x1c6   : > { %v1042_v62 = vpop.f32.mrf.mxu2  ;;  %4742 = vst [vmem:[#allocation52_spill] sm:$0xff] %v4156_v52  ;;  %v4229_v27 = vadd.f32 %v4134_v21, %v1317_v56  ;;  %v4751_v21 = vld [vmem:[#allocation8_spill] sm:$0xff] }
 0x1c7   : > { %v4149_v17 = vadd.f32 %v1042_v62, %v3988_v4  ;;  %4744 = vst [vmem:[#allocation54_spill] sm:$0xff] %v4172_v11  ;;  %v4174_v28 = vpop.f32.mrf.mxu0 }
 0x1c9   : > { %4740 = vst [vmem:[#allocation32_spill] sm:$0xff] %v4149_v17  ;;  %v1054_v35 = vmax.f32 %v956_v24, %v4149_v17  ;;  %v957_v24 = vmax.f32 %v3757_v49, %v4154_v15  ;;  %v1395_v49 = vpop.permute.xlu1 %1394  ;;  %v4183_v15 = vadd.f32 %v1274_v46, %v1210_v19  ;;  %v4749_v19 = vld [vmem:[#allocation5_spill] sm:$0xff] }
 0x1cb   : > { %v1152_v44 = vmax.f32 %v1054_v35, %v4069_v54  ;;  %2498 = vmatmul.msk.f32.gmra.mxu2 %vm884_vm0, %v3763_v12  ;;  %4745 = vst [vmem:[#allocation55_spill] sm:$0xff] %v4183_v15  ;;  %v4750_v54 = vld [vmem:[#allocation6_spill] sm:$0xff] }
 0x1cc   : > { %v4166_v17 = vpop.f32.mrf.mxu3 }
 0x1cd   : > { %v4162_v4 = vmax.f32 %v1152_v44, %v4156_v52  ;;  %v4178_v44 = vpop.permute.xlu2 %1326  ;;  %v4181_v52 = vadd.f32 %v4022_v36, %v1297_v38  ;;  %v4748_v36 = vld [vmem:[#allocation4_spill] sm:$0xff] }
 0x1ce   : > { %v1045_v62 = vpop.f32.mrf.mxu2 }
 0x1cf   : > { %v4169_v31 = vadd.f32 %v1045_v62, %v3982_v8  ;;  %v4185_v62 = vpop.f32.mrf.mxu1  ;;  %v1375_v5 = vmax.f32 %v4028_v22, %v4181_v52  ;;  %v4204_v22 = vpop.permute.xlu0 %1331 }
 0x1d1   : > { %4743 = vst [vmem:[#allocation53_spill] sm:$0xff] %v4169_v31  ;;  %v1055_v12 = vmax.f32 %v957_v24, %v4169_v31 }
 0x1d3   : > { %v1153_v35 = vmax.f32 %v1055_v12, %v4172_v11  ;;  %v4196_v11 = vpop.f32.mrf.mxu0 }
 0x1d4   : > { %v4192_v31 = vpop.f32.mrf.mxu3  ;;  %4747 = vst [vmem:[#allocation57_spill] sm:$0xff] %v4196_v11 }
 0x1d5   : > { %v4190_v24 = vmax.f32 %v1153_v35, %v4183_v15 }
 0x1d6   : > { %v1449_v8 = vpop.f32.mrf.mxu2 }
 0x1d7   : > { %v1450_v55 = vadd.f32 %v1449_v8, %v1395_v49  ;;  %4746 = vst [vmem:[#allocation56_spill] sm:$0xff] %v4190_v24 }
 0x1d9   : > { %v4194_v12 = vmax.f32 %v1375_v5, %v1450_v55  ;;  %v4213_v5 = vadd.f32 %v4048_v26, %v1302_v45  ;;  %v1377_v45 = vmax.f32 %v4072_v37, %v4216_v60 }
 0x1db   : > { %v1481_v46 = vsub.f32 %v4748_v36, %v4194_v12  ;;  %v1529_v38 = vsub.f32 %v4749_v19, %v4194_v12  ;;  %v1577_v39 = vsub.f32 %v4750_v54, %v4194_v12  ;;  %v1625_v35 = vsub.f32 %v3894_v48, %v4194_v12  ;;  %v1400_v19 = vpop.permute.xlu2 %1399 }
 0x1dc   : > { %v1714_v49 = vsub.f32 %v4010_v7, %v4194_v12  ;;  %v1803_v8 = vsub.f32 %v4012_v16, %v4194_v12  ;;  %v2070_v54 = vsub.f32 %v1450_v55, %v4194_v12  ;;  %v4220_v48 = vadd.f32 %v4100_v40, %v1312_v50  ;;  %v4239_v37 = vpop.f32.mrf.mxu3 }
 0x1dd   : > { %v1489_v36 = vmul.f32 1.442695, %v1481_v46  ;;  %v1537_v15 = vmul.f32 1.442695, %v1529_v38  ;;  %v1585_v32 = vmul.f32 1.442695, %v1577_v39  ;;  %v1376_v7 = vmax.f32 %v4051_v1, %v4213_v5  ;;  %v4231_v39 = vpop.f32.mrf.mxu1 }
 0x1de   : > { %v1452_v24 = vpop.f32.mrf.mxu2  ;;  %v1633_v11 = vmul.f32 1.442695, %v1625_v35  ;;  %v1722_v26 = vmul.f32 1.442695, %v1714_v49  ;;  %v1811_v50 = vmul.f32 1.442695, %v1803_v8  ;;  %v4235_v1 = vadd.f32 %v1366_v10, %v1322_v51  ;;  %v4252_v49 = vpop.f32.mrf.mxu0 }
 0x1df   : > { %v1453_v16 = vadd.f32 %v1452_v24, %v1400_v19  ;;  %2573 = vpow2.f32 %v1489_v36  ;;  %v2078_v55 = vmul.f32 1.442695, %v2070_v54  ;;  %v4752_v38 = vld [vmem:[#allocation9_spill] sm:$0xff]  ;;  %v4753_v10 = vld [vmem:[#allocation10_spill] sm:$0xff]  ;;  %v1405_v54 = vpop.permute.xlu0 %1404 }
 0x1e0   : > { %2575 = vpow2.f32 %v1537_v15 }
 0x1e1   : > { %v4233_v40 = vmax.f32 %v1376_v7, %v1453_v16  ;;  %2577 = vpow2.f32 %v1585_v32 }
 0x1e2   : > { %2579 = vpow2.f32 %v1633_v11 }
 0x1e3   : > { %v2071_v46 = vsub.f32 %v1453_v16, %v4233_v40  ;;  %v1482_v56 = vsub.f32 %v4751_v21, %v4233_v40  ;;  %v1530_v35 = vsub.f32 %v4752_v38, %v4233_v40  ;;  %2581 = vpow2.f32 %v1722_v26 }
 0x1e4   : > { %v1578_v15 = vsub.f32 %v4753_v10, %v4233_v40  ;;  %v1626_v32 = vsub.f32 %v3906_v3, %v4233_v40  ;;  %v1715_v51 = vsub.f32 %v4031_v29, %v4233_v40  ;;  %2583 = vpow2.f32 %v1811_v50 }
 0x1e5   : > { %v2080_v8 = vmul.f32 1.442695, %v2071_v46  ;;  %v1491_v11 = vmul.f32 1.442695, %v1482_v56  ;;  %v1539_v36 = vmul.f32 1.442695, %v1530_v35  ;;  %v2574_v19 = vpop.eup %2573  ;;  %2585 = vpow2.f32 %v2078_v55 }
 0x1e6   : > { %v1455_v7 = vpop.f32.mrf.mxu2  ;;  %v1587_v16 = vmul.f32 1.442695, %v1578_v15  ;;  %v1635_v26 = vmul.f32 1.442695, %v1626_v32  ;;  %v2576_v38 = vpop.eup %2575  ;;  %v1513_v3 = vmul.f32 %v3865_v41, %v2574_v19  ;;  %v1804_v46 = vsub.f32 %v4035_v63, %v4233_v40 }
 0x1e7   : > { %2587 = vpow2.f32 %v2080_v8  ;;  %v1456_v29 = vadd.f32 %v1455_v7, %v1405_v54  ;;  %v2578_v50 = vpop.eup %2577  ;;  %v1553_v56 = vadd.f32 %v2576_v38, %v2574_v19  ;;  %v1561_v35 = vmul.f32 %v2576_v38, %v3326_v47  ;;  %v1852_v32 = vpop.f32.mrf.mxu1  ;;  %v4754_v47 = vld [vmem:[#allocation12_spill] sm:$0xff] }
 0x1e8   : > { %2589 = vpow2.f32 %v1491_v11  ;;  %v1724_v55 = vmul.f32 1.442695, %v1715_v51  ;;  %v2580_v10 = vpop.eup %2579  ;;  %v1609_v15 = vmul.f32 %v2578_v50, %v3634_v13  ;;  %v1813_v8 = vmul.f32 1.442695, %v1804_v46 }
 0x1e9   : > { %v4261_v57 = vmax.f32 %v1377_v45, %v1456_v29  ;;  %2591 = vpow2.f32 %v1539_v36  ;;  %v2582_v21 = vpop.eup %2581  ;;  %v1569_v41 = vadd.f32 %v1561_v35, %v1513_v3  ;;  %v1601_v54 = vadd.f32 %v2578_v50, %v1553_v56  ;;  %v1410_v56 = vpop.permute.xlu1 %1409 }
 0x1ea   : > { %v1698_v7 = vmul.f32 %v2580_v10, %v4111_v59  ;;  %2593 = vpow2.f32 %v1587_v16  ;;  %v2584_v63 = vpop.eup %2583  ;;  %v1981_v13 = vsub.f32 %v4181_v52, %v4194_v12  ;;  %v1787_v38 = vmul.f32 %v2582_v21, %v4113_v9  ;;  %v4274_v59 = vpop.f32.mrf.mxu3 }
 0x1eb   : > { %v2072_v19 = vsub.f32 %v1456_v29, %v4261_v57  ;;  %2595 = vpow2.f32 %v1635_v26  ;;  %v1483_v51 = vsub.f32 %v4754_v47, %v4261_v57  ;;  %v4269_v45 = vpop.eup %2585  ;;  %v1617_v11 = vadd.f32 %v1609_v15, %v1569_v41  ;;  %v4756_v29 = vld [vmem:[#allocation13_spill] sm:$0xff]  ;;  %v4280_v41 = vpop.f32.mrf.mxu0 }
 0x1ec   : > { %v1649_v36 = vadd.f32 %v2580_v10, %v1601_v54  ;;  %2597 = vpow2.f32 %v1724_v55  ;;  %v1531_v46 = vsub.f32 %v4756_v29, %v4261_v57  ;;  %v1876_v47 = vmul.f32 %v2584_v63, %v1852_v32  ;;  %v4757_v10 = vld [vmem:[#allocation14_spill] sm:$0xff] }
 0x1ed   : > { %v4272_v3 = vpop.eup %2587  ;;  %v2082_v16 = vmul.f32 1.442695, %v2072_v19  ;;  %2599 = vpow2.f32 %v1813_v8  ;;  %v1493_v26 = vmul.f32 1.442695, %v1483_v51  ;;  %v1706_v52 = vadd.f32 %v1698_v7, %v1617_v11  ;;  %v4758_v7 = vld [vmem:[#allocation26_spill] sm:$0xff] }
 0x1ee   : > { %4755 = vst [vmem:[#allocation4_spill] sm:$0xff] %v4272_v3  ;;  %v2590_v50 = vpop.eup %2589  ;;  %v1738_v35 = vadd.f32 %v2582_v21, %v1649_v36  ;;  %v1458_v15 = vpop.f32.mrf.mxu2  ;;  %v1579_v9 = vsub.f32 %v4757_v10, %v4261_v57  ;;  %v1541_v19 = vmul.f32 1.442695, %v1531_v46  ;;  %v4759_v36 = vmax.f32 %v4093_v25, %v4220_v48 }
 0x1ef   : > { %v2592_v55 = vpop.eup %2591  ;;  %2601 = vpow2.f32 %v2082_v16  ;;  %v1514_v54 = vmul.f32 %v3857_v58, %v2590_v50  ;;  %v1459_v8 = vadd.f32 %v1458_v15, %v1410_v56  ;;  %v1795_v24 = vadd.f32 %v1787_v38, %v1706_v52  ;;  %v1855_v52 = vpop.f32.mrf.mxu1 }
 0x1f0   : > { %v2594_v51 = vpop.eup %2593  ;;  %v4283_v29 = vadd.f32 %v2584_v63, %v1738_v35  ;;  %v1554_v3 = vadd.f32 %v2592_v55, %v2590_v50  ;;  %v1562_v21 = vmul.f32 %v2592_v55, %v3347_v61  ;;  %2603 = vpow2.f32 %v1493_v26 }
 0x1f1   : > { %v2596_v32 = vpop.eup %2595  ;;  %v1610_v11 = vmul.f32 %v2594_v51, %v4758_v7  ;;  %v4290_v10 = vmax.f32 %v4759_v36, %v1459_v8  ;;  %v1589_v16 = vmul.f32 1.442695, %v1579_v9  ;;  %v4292_v56 = vadd.f32 %v1876_v47, %v1795_v24 }
 0x1f2   : > { %v2598_v58 = vpop.eup %2597  ;;  %v1570_v46 = vadd.f32 %v1562_v21, %v1514_v54  ;;  %v1602_v38 = vadd.f32 %v2594_v51, %v1554_v3  ;;  %v1699_v63 = vmul.f32 %v2596_v32, %v4139_v53  ;;  %2605 = vpow2.f32 %v1541_v19  ;;  %v4309_v51 = vpop.f32.mrf.mxu3 }
 0x1f3   : > { %v2600_v50 = vpop.eup %2599  ;;  %v2073_v61 = vsub.f32 %v1459_v8, %v4290_v10  ;;  %v1627_v35 = vsub.f32 %v3920_v6, %v4261_v57  ;;  %v1989_v25 = vmul.f32 1.442695, %v1981_v13  ;;  %v4300_v26 = vadd.f32 %v4185_v62, %v4178_v44  ;;  %v1415_v13 = vpop.permute.xlu2 %1414 }
 0x1f4   : > { %v1618_v15 = vadd.f32 %v1610_v11, %v1570_v46  ;;  %v1650_v24 = vadd.f32 %v2596_v32, %v1602_v38  ;;  %2607 = vpow2.f32 %v1589_v16  ;;  %v1788_v53 = vmul.f32 %v2598_v58, %v4146_v34  ;;  %v4314_v16 = vpop.f32.mrf.mxu0  ;;  %v4761_v38 = vld [vmem:[#allocation16_spill] sm:$0xff] }
 0x1f5   : > { %v4302_v47 = vpop.eup %2601  ;;  %v1637_v3 = vmul.f32 1.442695, %v1627_v35  ;;  %v1716_v9 = vsub.f32 %v4054_v0, %v4261_v57  ;;  %v1805_v6 = vsub.f32 %v4056_v43, %v4261_v57  ;;  %v1877_v44 = vmul.f32 %v2600_v50, %v1855_v52  ;;  %v2735_v0 = vld [vmem:[%s2965_s18 + $0x10] sm:$0xff]  ;;  %v4762_v52 = vld [vmem:[#allocation17_spill] sm:$0xff] }
 0x1f6   : > { %v1707_v55 = vadd.f32 %v1699_v63, %v1618_v15  ;;  %v1739_v54 = vadd.f32 %v2598_v58, %v1650_v24  ;;  %v2084_v62 = vmul.f32 1.442695, %v2073_v61  ;;  %v1461_v8 = vpop.f32.mrf.mxu2  ;;  %v2604_v19 = vpop.eup %2603  ;;  %2609 = vpow2.f32 %v1989_v25  ;;  %v4763_v15 = vld [vmem:[#allocation2_spill] sm:$0xff] }
 0x1f7   : > { %v1726_v21 = vmul.f32 1.442695, %v1716_v9  ;;  %v1815_v32 = vmul.f32 1.442695, %v1805_v6  ;;  %v1462_v34 = vadd.f32 %v1461_v8, %v1415_v13  ;;  %v1515_v36 = vmul.f32 %v2735_v0, %v2604_v19 }
 0x1f8   : > { %v1796_v7 = vadd.f32 %v1788_v53, %v1707_v55  ;;  %v4311_v11 = vadd.f32 %v2600_v50, %v1739_v54  ;;  %2611 = vpow2.f32 %v1637_v3  ;;  %v2606_v43 = vpop.eup %2605  ;;  %v4760_v58 = vmax.f32 %v4116_v30, %v4229_v27  ;;  %v4764_v53 = vld [vmem:[#allocation31_spill] sm:$0xff]  ;;  %v4765_v54 = vld [vmem:[#allocation18_spill] sm:$0xff] }
 0x1f9   : > { %2613 = vpow2.f32 %v1726_v21  ;;  %v1484_v63 = vsub.f32 %v4761_v38, %v4290_v10  ;;  %v1532_v61 = vsub.f32 %v4762_v52, %v4290_v10  ;;  %v1555_v25 = vadd.f32 %v2606_v43, %v2604_v19 }
 0x1fa   : > { %v4319_v46 = vmax.f32 %v4760_v58, %v1462_v34  ;;  %v2608_v50 = vpop.eup %2607  ;;  %v4325_v35 = vadd.f32 %v1877_v44, %v1796_v7  ;;  %v1563_v24 = vmul.f32 %v2606_v43, %v4763_v15  ;;  %2615 = vpow2.f32 %v1815_v32  ;;  %v4349_v15 = vpop.f32.mrf.mxu3 }
 0x1fb   : > { %v1611_v3 = vmul.f32 %v2608_v50, %v4764_v53  ;;  %v1495_v30 = vmul.f32 1.442695, %v1484_v63  ;;  %v1543_v6 = vmul.f32 1.442695, %v1532_v61  ;;  %v1603_v55 = vadd.f32 %v2608_v50, %v1555_v25  ;;  %v1420_v25 = vpop.permute.xlu0 %1419 }
 0x1fc   : > { %v2074_v9 = vsub.f32 %v1462_v34, %v4319_v46  ;;  %v1571_v13 = vadd.f32 %v1563_v24, %v1515_v36  ;;  %v1580_v8 = vsub.f32 %v4765_v54, %v4290_v10  ;;  %v1628_v21 = vsub.f32 %v3934_v42, %v4290_v10  ;;  %v4334_v44 = vpop.eup %2609 }
 0x1fd   : > { %v4338_v19 = vadd.f32 %v4231_v39, %v4204_v22  ;;  %2617 = vpow2.f32 %v1495_v30  ;;  %v1717_v32 = vsub.f32 %v4077_v23, %v4290_v10  ;;  %v1380_v34 = vmax.f32 %v4142_v18, %v4235_v1  ;;  %v1858_v22 = vpop.f32.mrf.mxu1  ;;  %v4766_v23 = vld [vmem:[#allocation44_spill] sm:$0xff] }
 0x1fe   : > { %v2612_v7 = vpop.eup %2611  ;;  %v1619_v0 = vadd.f32 %v1611_v3, %v1571_v13  ;;  %2619 = vpow2.f32 %v1543_v6  ;;  %v1591_v36 = vmul.f32 1.442695, %v1580_v8  ;;  %v1639_v43 = vmul.f32 1.442695, %v1628_v21  ;;  %v1464_v58 = vpop.f32.mrf.mxu2  ;;  %v4768_v8 = vld [vmem:[#allocation20_spill] sm:$0xff] }
 0x1ff   : > { %v2614_v42 = vpop.eup %2613  ;;  %2621 = vpow2.f32 %v2084_v62  ;;  %v1651_v38 = vadd.f32 %v2612_v7, %v1603_v55  ;;  %v1700_v63 = vmul.f32 %v2612_v7, %v4166_v17  ;;  %v1728_v39 = vmul.f32 1.442695, %v1717_v32  ;;  %v4352_v6 = vpop.f32.mrf.mxu0  ;;  %v2736_v7 = vld [vmem:[%s2965_s18 + $0x18] sm:$0xff] }
 0x200   : > { %v2616_v52 = vpop.eup %2615  ;;  %v2086_v61 = vmul.f32 1.442695, %v2074_v9  ;;  %2623 = vpow2.f32 %v1591_v36  ;;  %v1806_v50 = vsub.f32 %v4766_v23, %v4290_v10  ;;  %v1982_v18 = vsub.f32 %v4213_v5, %v4233_v40  ;;  %v4767_v5 = vld [vmem:[#allocation21_spill] sm:$0xff]  ;;  %v4769_v36 = vld [vmem:[#allocation22_spill] sm:$0xff] }
 0x201   : > { %v1708_v24 = vadd.f32 %v1700_v63, %v1619_v0  ;;  %v1740_v62 = vadd.f32 %v2614_v42, %v1651_v38  ;;  %v1789_v53 = vmul.f32 %v2614_v42, %v4174_v28  ;;  %2625 = vpow2.f32 %v1639_v43  ;;  %v4770_v63 = vld [vmem:[#allocation3_spill] sm:$0xff] }
 0x202   : > { %v1878_v17 = vmul.f32 %v2616_v52, %v1858_v22  ;;  %2627 = vpow2.f32 %v1728_v39  ;;  %v1817_v3 = vmul.f32 1.442695, %v1806_v50  ;;  %v1465_v9 = vadd.f32 %v1464_v58, %v1420_v25 }
 0x203   : > { %v2618_v30 = vpop.eup %2617  ;;  %v1797_v13 = vadd.f32 %v1789_v53, %v1708_v24  ;;  %v4354_v55 = vadd.f32 %v2616_v52, %v1740_v62  ;;  %v1485_v54 = vsub.f32 %v4767_v5, %v4319_v46  ;;  %v1533_v21 = vsub.f32 %v4768_v8, %v4319_v46 }
 0x204   : > { %v2620_v32 = vpop.eup %2619  ;;  %v1516_v28 = vmul.f32 %v2736_v7, %v2618_v30  ;;  %2629 = vpow2.f32 %v1817_v3  ;;  %v4361_v0 = vmax.f32 %v1380_v34, %v1465_v9  ;;  %v1581_v43 = vsub.f32 %v4769_v36, %v4319_v46  ;;  %v4771_v3 = vld [vmem:[#allocation37_spill] sm:$0xff]  ;;  %v4381_v36 = vpop.f32.mrf.mxu3 }
 0x205   : > { %v4365_v58 = vpop.eup %2621  ;;  %v4367_v42 = vadd.f32 %v1878_v17, %v1797_v13  ;;  %v1556_v38 = vadd.f32 %v2620_v32, %v2618_v30  ;;  %v1564_v22 = vmul.f32 %v2620_v32, %v4770_v63  ;;  %v1991_v39 = vmul.f32 1.442695, %v1982_v18 }
 0x206   : > { %v2624_v52 = vpop.eup %2623  ;;  %2631 = vpow2.f32 %v2086_v61  ;;  %v1497_v23 = vmul.f32 1.442695, %v1485_v54  ;;  %v1545_v50 = vmul.f32 1.442695, %v1533_v21  ;;  %v1593_v25 = vmul.f32 1.442695, %v1581_v43  ;;  %v1467_v24 = vpop.f32.mrf.mxu2 }
 0x207   : > { %v2626_v62 = vpop.eup %2625  ;;  %v1572_v34 = vadd.f32 %v1564_v22, %v1516_v28  ;;  %v1604_v53 = vadd.f32 %v2624_v52, %v1556_v38  ;;  %v1612_v5 = vmul.f32 %v2624_v52, %v4771_v3  ;;  %v1629_v8 = vsub.f32 %v3950_v33, %v4319_v46  ;;  %v1861_v21 = vpop.f32.mrf.mxu1  ;;  %v4772_v38 = vld [vmem:[#allocation57_spill] sm:$0xff] }
 0x208   : > { %v2628_v17 = vpop.eup %2627  ;;  %v1701_v30 = vmul.f32 %v2626_v62, %v4192_v31  ;;  %v2075_v13 = vsub.f32 %v1465_v9, %v4361_v0  ;;  %2633 = vpow2.f32 %v1497_v23  ;;  %v1718_v61 = vsub.f32 %v4096_v2, %v4319_v46  ;;  %v1425_v22 = vpop.permute.xlu1 %1424 }
 0x209   : > { %v1620_v18 = vadd.f32 %v1612_v5, %v1572_v34  ;;  %v1652_v54 = vadd.f32 %v2626_v62, %v1604_v53  ;;  %2635 = vpow2.f32 %v1545_v50  ;;  %v1381_v32 = vmax.f32 %v4162_v4, %v4300_v26  ;;  %v4774_v53 = vld [vmem:[#allocation24_spill] sm:$0xff]  ;;  %v4775_v5 = vld [vmem:[#allocation23_spill] sm:$0xff] }
 0x20a   : > { %v2630_v7 = vpop.eup %2629  ;;  %2637 = vpow2.f32 %v1991_v39  ;;  %v1641_v28 = vmul.f32 1.442695, %v1629_v8  ;;  %v1730_v33 = vmul.f32 1.442695, %v1718_v61  ;;  %v1807_v31 = vsub.f32 %v4098_v14, %v4319_v46  ;;  %v4386_v39 = vpop.f32.mrf.mxu0  ;;  %v2737_v61 = vld [vmem:[%s2965_s18 + $0x20] sm:$0xff] }
 0x20b   : > { %v1709_v9 = vadd.f32 %v1701_v30, %v1620_v18  ;;  %v1741_v43 = vadd.f32 %v2628_v17, %v1652_v54  ;;  %v1790_v2 = vmul.f32 %v2628_v17, %v4772_v38  ;;  %2639 = vpow2.f32 %v1593_v25 }
 0x20c   : > { %v4384_v63 = vpop.eup %2631  ;;  %v1879_v52 = vmul.f32 %v2630_v7, %v1861_v21  ;;  %v2088_v23 = vmul.f32 1.442695, %v2075_v13  ;;  %2641 = vpow2.f32 %v1641_v28  ;;  %v1819_v4 = vmul.f32 1.442695, %v1807_v31  ;;  %v4777_v28 = vld [vmem:[#allocation7_spill] sm:$0xff] }
 0x20d   : > { %4773 = vst [vmem:[#allocation5_spill] sm:$0xff] %v4384_v63  ;;  %v1798_v50 = vadd.f32 %v1790_v2, %v1709_v9  ;;  %v4388_v62 = vadd.f32 %v2630_v7, %v1741_v43  ;;  %2643 = vpow2.f32 %v1730_v33  ;;  %v1468_v14 = vadd.f32 %v1467_v24, %v1425_v22  ;;  %v4776_v24 = vld [vmem:[#allocation25_spill] sm:$0xff] }
 0x20e   : > { %v2634_v34 = vpop.eup %2633  ;;  %2645 = vpow2.f32 %v1819_v4  ;;  %v1983_v25 = vsub.f32 %v4216_v60, %v4261_v57  ;;  %v1486_v3 = vsub.f32 %v4774_v53, %v4361_v0  ;;  %v1534_v8 = vsub.f32 %v4775_v5, %v4361_v0  ;;  %v1470_v17 = vpop.f32.mrf.mxu2  ;;  %v4778_v22 = vld [vmem:[#allocation41_spill] sm:$0xff]  ;;  %v4779_v53 = vld [vmem:[#allocation39_spill] sm:$0xff] }
 0x20f   : > { %v2636_v30 = vpop.eup %2635  ;;  %v4396_v13 = vadd.f32 %v1879_v52, %v1798_v50  ;;  %v1517_v18 = vmul.f32 %v2737_v61, %v2634_v34  ;;  %v4399_v54 = vmax.f32 %v1381_v32, %v1468_v14  ;;  %v1582_v21 = vsub.f32 %v4776_v24, %v4361_v0 }
 0x210   : > { %v4403_v7 = vpop.eup %2637  ;;  %2647 = vpow2.f32 %v2088_v23  ;;  %v1557_v60 = vadd.f32 %v2636_v30, %v2634_v34  ;;  %v1565_v33 = vmul.f32 %v2636_v30, %v4777_v28  ;;  %v1499_v31 = vmul.f32 1.442695, %v1486_v3  ;;  %v1864_v34 = vpop.f32.mrf.mxu1  ;;  %v4780_v30 = vld [vmem:[#allocation56_spill] sm:$0xff] }
 0x211   : > { %v2640_v9 = vpop.eup %2639  ;;  %v2076_v43 = vsub.f32 %v1468_v14, %v4399_v54  ;;  %v1993_v38 = vmul.f32 1.442695, %v1983_v25  ;;  %v1547_v2 = vmul.f32 1.442695, %v1534_v8  ;;  %v1630_v52 = vsub.f32 %v4778_v22, %v4361_v0 }
 0x212   : > { %v2642_v32 = vpop.eup %2641  ;;  %v1573_v4 = vadd.f32 %v1565_v33, %v1517_v18  ;;  %v1605_v50 = vadd.f32 %v2640_v9, %v1557_v60  ;;  %v1613_v5 = vmul.f32 %v2640_v9, %v4779_v53  ;;  %v1595_v61 = vmul.f32 1.442695, %v1582_v21  ;;  %v4414_v18 = vpop.f32.mrf.mxu3  ;;  %v4781_v21 = vld [vmem:[#allocation47_spill] sm:$0xff] }
 0x213   : > { %v2644_v24 = vpop.eup %2643  ;;  %v1702_v23 = vmul.f32 %v2642_v32, %v4239_v37  ;;  %2649 = vpow2.f32 %v1499_v31  ;;  %v1643_v3 = vmul.f32 1.442695, %v1630_v52  ;;  %v1382_v14 = vmax.f32 %v4780_v30, %v4338_v19  ;;  %v4782_v37 = vld [vmem:[#allocation48_spill] sm:$0xff]  ;;  %v1430_v52 = vpop.permute.xlu2 %1429 }
 0x214   : > { %v2646_v25 = vpop.eup %2645  ;;  %v1621_v8 = vadd.f32 %v1613_v5, %v1573_v4  ;;  %v1653_v28 = vadd.f32 %v2642_v32, %v1605_v50  ;;  %v1791_v22 = vmul.f32 %v2644_v24, %v4252_v49  ;;  %2651 = vpow2.f32 %v1547_v2  ;;  %v4424_v49 = vpop.f32.mrf.mxu0 }
 0x215   : > { %v2090_v60 = vmul.f32 1.442695, %v2076_v43  ;;  %2653 = vpow2.f32 %v1993_v38  ;;  %v1719_v33 = vsub.f32 %v4781_v21, %v4361_v0  ;;  %v1808_v31 = vsub.f32 %v4782_v37, %v4361_v0 }
 0x216   : > { %v4420_v9 = vpop.eup %2647  ;;  %v1710_v53 = vadd.f32 %v1702_v23, %v1621_v8  ;;  %v1742_v30 = vadd.f32 %v2644_v24, %v1653_v28  ;;  %v1880_v4 = vmul.f32 %v2646_v25, %v1864_v34  ;;  %2655 = vpow2.f32 %v1595_v61  ;;  %v4422_v32 = vpop.f32.mrf.mxu2  ;;  %v4785_v23 = vld [vmem:[#allocation29_spill] sm:$0xff]  ;;  %v4786_v8 = vld [vmem:[#allocation30_spill] sm:$0xff] }
 0x217   : > { %4783 = vst [vmem:[#allocation6_spill] sm:$0xff] %v4420_v9  ;;  %2657 = vpow2.f32 %v1643_v3  ;;  %v1732_v43 = vmul.f32 1.442695, %v1719_v33  ;;  %v1821_v38 = vmul.f32 1.442695, %v1808_v31  ;;  %v1471_v2 = vadd.f32 %v1470_v17, %v1430_v52  ;;  %v2738_v17 = vld [vmem:[%s2965_s18 + $0x28] sm:$0xff] }
 0x218   : > { %v1799_v50 = vadd.f32 %v1791_v22, %v1710_v53  ;;  %v4426_v5 = vadd.f32 %v2646_v25, %v1742_v30  ;;  %v1984_v21 = vsub.f32 %v4220_v48, %v4290_v10  ;;  %v1487_v24 = vsub.f32 %v4785_v23, %v4399_v54  ;;  %v4789_v52 = vld [vmem:[#allocation11_spill] sm:$0xff] }
 0x219   : > { %v2650_v34 = vpop.eup %2649  ;;  %2659 = vpow2.f32 %v1732_v43  ;;  %v4432_v61 = vmax.f32 %v1382_v14, %v1471_v2  ;;  %v1535_v28 = vsub.f32 %v4786_v8, %v4399_v54  ;;  %v4788_v25 = vsub.f32 %v4020_v20, %v4194_v12  ;;  %v4791_v8 = vld [vmem:[#allocation49_spill] sm:$0xff]  ;;  %v4792_v12 = vld [vmem:[#allocation40_spill] sm:$0xff] }
 0x21a   : > { %4784 = vst [vmem:[#allocation8_spill] sm:$0xff] %v4426_v5  ;;  %v2652_v3 = vpop.eup %2651  ;;  %v4436_v33 = vadd.f32 %v1880_v4, %v1799_v50  ;;  %v1518_v22 = vmul.f32 %v2738_v17, %v2650_v34  ;;  %2661 = vpow2.f32 %v1821_v38  ;;  %v1995_v14 = vmul.f32 1.442695, %v1984_v21  ;;  %v4790_v4 = vld [vmem:[#allocation28_spill] sm:$0xff] }
 0x21b   : > { %v1900_v48 = vmul.f32 1.442695, %v4788_v25  ;;  %v4442_v37 = vpop.eup %2653  ;;  %v1558_v31 = vadd.f32 %v2652_v3, %v2650_v34  ;;  %v1566_v53 = vmul.f32 %v2652_v3, %v4789_v52  ;;  %v1501_v30 = vmul.f32 1.442695, %v1487_v24 }
 0x21c   : > { %4787 = vst [vmem:[#allocation9_spill] sm:$0xff] %v4436_v33  ;;  %v2656_v43 = vpop.eup %2655  ;;  %2663 = vpow2.f32 %v2090_v60  ;;  %v1549_v23 = vmul.f32 1.442695, %v1535_v28  ;;  %v1583_v50 = vsub.f32 %v4790_v4, %v4399_v54  ;;  %v1631_v38 = vsub.f32 %v4791_v8, %v4399_v54  ;;  %v4452_v28 = vpop.f32.mrf.mxu3  ;;  %v4793_v8 = vld [vmem:[#allocation32_spill] sm:$0xff] }
 0x21d   : > { %v2658_v17 = vpop.eup %2657  ;;  %v1574_v9 = vadd.f32 %v1566_v53, %v1518_v22  ;;  %v1606_v20 = vadd.f32 %v2656_v43, %v1558_v31  ;;  %v1614_v25 = vmul.f32 %v2656_v43, %v4792_v12  ;;  %v2077_v34 = vsub.f32 %v1471_v2, %v4432_v61  ;;  %v1867_v2 = vpop.f32.mrf.mxu1 }
 0x21e   : > { %v1703_v3 = vmul.f32 %v2658_v17, %v4274_v59  ;;  %2665 = vpow2.f32 %v1501_v30  ;;  %v1597_v21 = vmul.f32 1.442695, %v1583_v50  ;;  %v1645_v24 = vmul.f32 1.442695, %v1631_v38  ;;  %v4456_v22 = vpop.f32.mrf.mxu2  ;;  %v4794_v59 = vld [vmem:[#allocation43_spill] sm:$0xff]  ;;  %v4461_v43 = vpop.f32.mrf.mxu0 }
 0x21f   : > { %v2660_v60 = vpop.eup %2659  ;;  %v1622_v52 = vadd.f32 %v1614_v25, %v1574_v9  ;;  %v1654_v4 = vadd.f32 %v2658_v17, %v1606_v20  ;;  %2667 = vpow2.f32 %v1995_v14  ;;  %v1720_v33 = vsub.f32 %v4793_v8, %v4399_v54 }
 0x220   : > { %v2662_v31 = vpop.eup %2661  ;;  %v1792_v53 = vmul.f32 %v2660_v60, %v4280_v41  ;;  %2669 = vpow2.f32 %v1549_v23  ;;  %v1809_v30 = vsub.f32 %v4794_v59, %v4399_v54  ;;  %v2092_v14 = vmul.f32 1.442695, %v2077_v34  ;;  %v4801_v59 = vld [vmem:[#allocation51_spill] sm:$0xff] }
 0x221   : > { %v1711_v50 = vadd.f32 %v1703_v3, %v1622_v52  ;;  %v1743_v38 = vadd.f32 %v2660_v60, %v1654_v4  ;;  %2671 = vpow2.f32 %v1597_v21  ;;  %v1734_v17 = vmul.f32 1.442695, %v1720_v33  ;;  %v4797_v3 = vld [vmem:[#allocation34_spill] sm:$0xff]  ;;  %v4798_v60 = vld [vmem:[#allocation35_spill] sm:$0xff]  ;;  %v2739_v52 = vld [vmem:[%s2965_s18 + $0x30] sm:$0xff] }
 0x222   : > { %v4463_v9 = vpop.eup %2663  ;;  %2673 = vpow2.f32 %v1645_v24  ;;  %v1823_v20 = vmul.f32 1.442695, %v1809_v30  ;;  %v1881_v41 = vmul.f32 %v2662_v31, %v1867_v2  ;;  %v4469_v8 = vmul.f32 %v4269_v45, %v4386_v39 }
 0x223   : > { %4795 = vst [vmem:[#allocation10_spill] sm:$0xff] %v4463_v9  ;;  %v1800_v12 = vadd.f32 %v1792_v53, %v1711_v50  ;;  %v4465_v25 = vadd.f32 %v2662_v31, %v1743_v38  ;;  %2675 = vpow2.f32 %v1900_v48  ;;  %v1488_v21 = vsub.f32 %v4797_v3, %v4432_v61  ;;  %v4800_v48 = vld [vmem:[#allocation33_spill] sm:$0xff] }
 0x224   : > { %v2666_v23 = vpop.eup %2665  ;;  %2677 = vpow2.f32 %v1734_v17  ;;  %v1536_v34 = vsub.f32 %v4798_v60, %v4432_v61  ;;  %v1584_v31 = vsub.f32 %v4800_v48, %v4432_v61  ;;  %v1632_v30 = vsub.f32 %v4801_v59, %v4432_v61  ;;  %v4802_v17 = vld [vmem:[#allocation15_spill] sm:$0xff]  ;;  %v4491_v9 = vpop.f32.mrf.mxu3 }
 0x225   : > { %4796 = vst [vmem:[#allocation12_spill] sm:$0xff] %v4465_v25  ;;  %v4475_v24 = vpop.eup %2667  ;;  %v4477_v33 = vadd.f32 %v1881_v41, %v1800_v12  ;;  %v1519_v4 = vmul.f32 %v2739_v52, %v2666_v23  ;;  %2679 = vpow2.f32 %v1823_v20  ;;  %v1503_v39 = vmul.f32 1.442695, %v1488_v21  ;;  %v4803_v12 = vld [vmem:[#allocation53_spill] sm:$0xff] }
 0x226   : > { %v2670_v53 = vpop.eup %2669  ;;  %2681 = vpow2.f32 %v2092_v14  ;;  %v1551_v2 = vmul.f32 1.442695, %v1536_v34  ;;  %v1599_v60 = vmul.f32 1.442695, %v1584_v31  ;;  %v1721_v41 = vsub.f32 %v4803_v12, %v4432_v61  ;;  %v4804_v14 = vld [vmem:[#allocation54_spill] sm:$0xff]  ;;  %v4494_v31 = vpop.f32.mrf.mxu2 }
 0x227   : > { %4799 = vst [vmem:[#allocation13_spill] sm:$0xff] %v4477_v33  ;;  %v2672_v50 = vpop.eup %2671  ;;  %v1559_v38 = vadd.f32 %v2670_v53, %v2666_v23  ;;  %v1567_v3 = vmul.f32 %v2670_v53, %v4802_v17  ;;  %v2054_v20 = vmul.f32 %v4334_v44, %v4381_v36  ;;  %2683 = vpow2.f32 %v1503_v39  ;;  %v4805_v33 = vld [vmem:[#allocation36_spill] sm:$0xff]  ;;  %v1870_v12 = vpop.f32.mrf.mxu1 }
 0x228   : > { %v2674_v52 = vpop.eup %2673  ;;  %v1647_v48 = vmul.f32 1.442695, %v1632_v30  ;;  %v1810_v21 = vsub.f32 %v4804_v14, %v4432_v61  ;;  %v1615_v53 = vmul.f32 %v2672_v50, %v4805_v33  ;;  %2685 = vpow2.f32 %v1551_v2  ;;  %v4498_v14 = vpop.f32.mrf.mxu0 }
 0x229   : > { %v2676_v34 = vpop.eup %2675  ;;  %v1575_v59 = vadd.f32 %v1567_v3, %v1519_v4  ;;  %v1607_v23 = vadd.f32 %v2672_v50, %v1559_v38  ;;  %2687 = vpow2.f32 %v1599_v60  ;;  %v1736_v39 = vmul.f32 1.442695, %v1721_v41 }
 0x22a   : > { %v2678_v17 = vpop.eup %2677  ;;  %v1916_v25 = vadd.f32 %v2676_v34, %v4283_v29  ;;  %v1965_v36 = vmul.f32 %v2676_v34, %v4422_v32  ;;  %v1704_v4 = vmul.f32 %v2674_v52, %v4309_v51  ;;  %2689 = vpow2.f32 %v1647_v48  ;;  %v4806_v48 = vld [vmem:[#allocation27_spill] sm:$0xff] }
 0x22b   : > { %v2680_v30 = vpop.eup %2679  ;;  %v1623_v63 = vadd.f32 %v1615_v53, %v1575_v59  ;;  %v1655_v5 = vadd.f32 %v2674_v52, %v1607_v23  ;;  %v1985_v29 = vsub.f32 %v4229_v27, %v4319_v46  ;;  %2691 = vpow2.f32 %v1736_v39 }
 0x22c   : > { %v4501_v33 = vpop.eup %2681  ;;  %v1973_v2 = vadd.f32 %v1965_v36, %v4292_v56  ;;  %v2005_v50 = vadd.f32 %v4334_v44, %v1916_v25  ;;  %v1793_v3 = vmul.f32 %v2678_v17, %v4314_v16  ;;  %v1825_v60 = vmul.f32 1.442695, %v1810_v21  ;;  %v2740_v25 = vld [vmem:[%s2965_s18 + $0x38] sm:$0xff]  ;;  %v4807_v21 = vld [vmem:[#allocation19_spill] sm:$0xff] }
 0x22d   : > { %v1712_v32 = vadd.f32 %v1704_v4, %v1623_v63  ;;  %v1744_v38 = vadd.f32 %v2678_v17, %v1655_v5  ;;  %v2684_v41 = vpop.eup %2683  ;;  %v1882_v34 = vmul.f32 %v2680_v30, %v1870_v12  ;;  %v1893_v56 = vsub.f32 %v4806_v48, %v4233_v40  ;;  %v4811_v48 = vld [vmem:[#allocation45_spill] sm:$0xff] }
 0x22e   : > { %v2062_v51 = vadd.f32 %v2054_v20, %v1973_v2  ;;  %v2094_v52 = vadd.f32 %v4269_v45, %v2005_v50  ;;  %v2686_v59 = vpop.eup %2685  ;;  %v1520_v27 = vmul.f32 %v2740_v25, %v2684_v41  ;;  %2693 = vpow2.f32 %v1825_v60  ;;  %v4520_v36 = vpop.f32.mrf.mxu2  ;;  %v4808_v2 = vld [vmem:[#allocation38_spill] sm:$0xff] }
 0x22f   : > { %v1801_v23 = vadd.f32 %v1793_v3, %v1712_v32  ;;  %v4511_v44 = vadd.f32 %v2680_v30, %v1744_v38  ;;  %v2688_v63 = vpop.eup %2687  ;;  %v1560_v16 = vadd.f32 %v2686_v59, %v2684_v41  ;;  %v1568_v53 = vmul.f32 %v2686_v59, %v4807_v21  ;;  %v4810_v38 = vld [vmem:[#allocation4_spill] sm:$0xff]  ;;  %v4529_v60 = vpop.f32.mrf.mxu3 }
 0x230   : > { %v2151_v5 = vadd.f32 %v4469_v8, %v2062_v51  ;;  %2695 = vrcp.f32 %v2094_v52  ;;  %v2690_v20 = vpop.eup %2689  ;;  %v1997_v45 = vmul.f32 1.442695, %v1985_v29  ;;  %v1902_v12 = vmul.f32 1.442695, %v1893_v56  ;;  %v4809_v8 = vld [vmem:[#allocation42_spill] sm:$0xff]  ;;  %v1873_v51 = vpop.f32.mrf.mxu1 }
 0x231   : > { %v4516_v17 = vadd.f32 %v1882_v34, %v1801_v23  ;;  %v1986_v40 = vsub.f32 %v4235_v1, %v4361_v0  ;;  %v2692_v39 = vpop.eup %2691  ;;  %v1576_v30 = vadd.f32 %v1568_v53, %v1520_v27  ;;  %v1608_v4 = vadd.f32 %v2688_v63, %v1560_v16  ;;  %v4536_v59 = vpop.f32.mrf.mxu0 }
 0x232   : > { %v1616_v50 = vmul.f32 %v2688_v63, %v4808_v2  ;;  %v1894_v32 = vsub.f32 %v4809_v8, %v4261_v57  ;;  %v4527_v3 = vmul.f32 %v4810_v38, %v4424_v49  ;;  %v1705_v29 = vmul.f32 %v2690_v20, %v4349_v15  ;;  %v4812_v15 = vld [vmem:[#allocation46_spill] sm:$0xff] }
 0x233   : > { %2697 = vpow2.f32 %v1902_v12  ;;  %v1987_v1 = vsub.f32 %v4300_v26, %v4399_v54  ;;  %v1656_v34 = vadd.f32 %v2690_v20, %v1608_v4  ;;  %v1895_v57 = vsub.f32 %v4811_v48, %v4290_v10  ;;  %v4813_v12 = vld [vmem:[#allocation50_spill] sm:$0xff] }
 0x234   : > { %v1624_v41 = vadd.f32 %v1616_v50, %v1576_v30  ;;  %v1904_v52 = vmul.f32 1.442695, %v1894_v32  ;;  %v2694_v56 = vpop.eup %2693  ;;  %2699 = vpow2.f32 %v1997_v45  ;;  %v1794_v49 = vmul.f32 %v2692_v39, %v4352_v6  ;;  %v4815_v50 = vld [vmem:[#allocation55_spill] sm:$0xff] }
 0x235   : > { %v1999_v23 = vmul.f32 1.442695, %v1986_v40  ;;  %v1896_v25 = vsub.f32 %v4812_v15, %v4319_v46  ;;  %v1745_v63 = vadd.f32 %v2692_v39, %v1656_v34  ;;  %v2001_v10 = vmul.f32 1.442695, %v1987_v1 }
 0x236   : > { %v2696_v27 = vpop.eup %2695  ;;  %v1713_v26 = vadd.f32 %v1705_v29, %v1624_v41  ;;  %2701 = vpow2.f32 %v1904_v52  ;;  %v1883_v21 = vmul.f32 %v2694_v56, %v1873_v51  ;;  %v1906_v53 = vmul.f32 1.442695, %v1895_v57  ;;  %v1953_v39 = vpop.f32.mrf.mxu2 }
 0x237   : > { %v2167_v16 = vmul.f32 %v2696_v27, %v2151_v5  ;;  %v1988_v6 = vsub.f32 %v4338_v19, %v4432_v61  ;;  %v4549_v45 = vadd.f32 %v2694_v56, %v1745_v63  ;;  %v1908_v46 = vmul.f32 1.442695, %v1896_v25  ;;  %v4814_v5 = vld [vmem:[#allocation52_spill] sm:$0xff]  ;;  %v2045_v52 = vpop.f32.mrf.mxu3 }
 0x238   : > { %v1802_v20 = vadd.f32 %v1794_v49, %v1713_v26  ;;  %v1897_v40 = vsub.f32 %v4813_v12, %v4361_v0  ;;  %v2145_v4 = vmul.f32 %v4302_v47, %v4461_v43  ;;  %2703 = vpow2.f32 %v1906_v53  ;;  %v4818_v12 = vld [vmem:[#allocation9_spill] sm:$0xff] }
 0x239   : > { %v2698_v30 = vpop.eup %2697  ;;  %2175 = vst [vmem:[%s4545_s12] sm:$0xff] %v2167_v16  ;;  %v1898_v2 = vsub.f32 %v4814_v5, %v4399_v54  ;;  %v1899_v19 = vsub.f32 %v4815_v50, %v4432_v61  ;;  %2705 = vpow2.f32 %v1999_v23  ;;  %v2003_v1 = vmul.f32 1.442695, %v1988_v6  ;;  %v4819_v5 = vld [vmem:[#allocation12_spill] sm:$0xff] }
 0x23a   : > { %v4560_v8 = vadd.f32 %v1883_v21, %v1802_v20  ;;  %v1917_v32 = vadd.f32 %v2698_v30, %v4311_v11  ;;  %v1966_v29 = vmul.f32 %v2698_v30, %v4456_v22  ;;  %v2700_v0 = vpop.eup %2699  ;;  %2707 = vpow2.f32 %v1908_v46 }
 0x23b   : > { %v1910_v43 = vmul.f32 1.442695, %v1897_v40  ;;  %v1912_v41 = vmul.f32 1.442695, %v1898_v2  ;;  %v2055_v51 = vmul.f32 %v4403_v7, %v4414_v18  ;;  %2709 = vpow2.f32 %v2001_v10 }
 0x23c   : > { %v2702_v34 = vpop.eup %2701  ;;  %v1974_v54 = vadd.f32 %v1966_v29, %v4325_v35  ;;  %v2006_v61 = vadd.f32 %v4403_v7, %v1917_v32  ;;  %v1914_v48 = vmul.f32 1.442695, %v1899_v19  ;;  %v2146_v57 = vmul.f32 %v4365_v58, %v4498_v14  ;;  %v2134_v7 = vpop.f32.mrf.mxu0 }
 0x23d   : > { %v1918_v11 = vadd.f32 %v2702_v34, %v4354_v55  ;;  %v1967_v22 = vmul.f32 %v2702_v34, %v4494_v31  ;;  %2711 = vpow2.f32 %v1910_v43  ;;  %v2056_v35 = vmul.f32 %v4442_v37, %v4452_v28 }
 0x23e   : > { %v2063_v56 = vadd.f32 %v2055_v51, %v1974_v54  ;;  %v2095_v49 = vadd.f32 %v4810_v38, %v2006_v61  ;;  %2713 = vpow2.f32 %v1912_v41  ;;  %v2704_v18 = vpop.eup %2703  ;;  %v2057_v27 = vmul.f32 %v4475_v24, %v4491_v9  ;;  %v1956_v63 = vpop.f32.mrf.mxu2  ;;  %v4821_v54 = vld [vmem:[#allocation6_spill] sm:$0xff] }
 0x23f   : > { %v1975_v23 = vadd.f32 %v1967_v22, %v4367_v42  ;;  %v2007_v55 = vadd.f32 %v4442_v37, %v1918_v11  ;;  %2715 = vpow2.f32 %v2003_v1  ;;  %v2706_v31 = vpop.eup %2705  ;;  %v1919_v14 = vadd.f32 %v2704_v18, %v4388_v62  ;;  %v4820_v1 = vld [vmem:[#allocation13_spill] sm:$0xff] }
 0x240   : > { %v2152_v15 = vadd.f32 %v4527_v3, %v2063_v56  ;;  %2717 = vrcp.f32 %v2095_v49  ;;  %v1968_v25 = vmul.f32 %v2704_v18, %v4520_v36  ;;  %v2708_v38 = vpop.eup %2707  ;;  %v4816_v3 = vld [vmem:[#allocation8_spill] sm:$0xff]  ;;  %v4817_v36 = vld [vmem:[#allocation5_spill] sm:$0xff]  ;;  %v2058_v6 = vmul.f32 %v2700_v0, %v4529_v60 }
 0x241   : > { %v2064_v26 = vadd.f32 %v2056_v35, %v1975_v23  ;;  %v2096_v28 = vadd.f32 %v4302_v47, %v2007_v55  ;;  %2719 = vpow2.f32 %v1914_v48  ;;  %v2710_v42 = vpop.eup %2709  ;;  %v2008_v10 = vadd.f32 %v4475_v24, %v1919_v14 }
 0x242   : > { %v1976_v37 = vadd.f32 %v1968_v25, %v4396_v13  ;;  %v1920_v16 = vadd.f32 %v2708_v38, %v4816_v3  ;;  %v1969_v21 = vmul.f32 %v2708_v38, %v1953_v39  ;;  %v2147_v53 = vmul.f32 %v4817_v36, %v4536_v59 }
 0x243   : > { %v2712_v62 = vpop.eup %2711  ;;  %v2153_v9 = vadd.f32 %v2145_v4, %v2064_v26  ;;  %2721 = vrcp.f32 %v2096_v28  ;;  %v2097_v46 = vadd.f32 %v4365_v58, %v2008_v10  ;;  %v2059_v24 = vmul.f32 %v2706_v31, %v2045_v52  ;;  %v2048_v58 = vpop.f32.mrf.mxu3 }
 0x244   : > { %v2714_v20 = vpop.eup %2713  ;;  %v2065_v47 = vadd.f32 %v2057_v27, %v1976_v37  ;;  %v1977_v40 = vadd.f32 %v1969_v21, %v4818_v12  ;;  %v2009_v13 = vadd.f32 %v2700_v0, %v1920_v16  ;;  %v1921_v2 = vadd.f32 %v2712_v62, %v4819_v5  ;;  %v2137_v52 = vpop.f32.mrf.mxu0 }
 0x245   : > { %v2716_v30 = vpop.eup %2715  ;;  %v1970_v39 = vmul.f32 %v2712_v62, %v1956_v63  ;;  %v1922_v50 = vadd.f32 %v2714_v20, %v4511_v44  ;;  %2723 = vrcp.f32 %v2097_v46  ;;  %v2148_v61 = vmul.f32 %v4821_v54, %v2134_v7 }
 0x246   : > { %v2718_v19 = vpop.eup %2717  ;;  %v2154_v59 = vadd.f32 %v2146_v57, %v2065_v47  ;;  %v2066_v60 = vadd.f32 %v2058_v6, %v1977_v40  ;;  %v2098_v4 = vadd.f32 %v4817_v36, %v2009_v13  ;;  %v2010_v0 = vadd.f32 %v2706_v31, %v1921_v2  ;;  %v1959_v48 = vpop.f32.mrf.mxu2  ;;  %v4822_v57 = vld [vmem:[#allocation10_spill] sm:$0xff] }
 0x247   : > { %v2720_v32 = vpop.eup %2719  ;;  %v2168_v29 = vmul.f32 %v2718_v19, %v2152_v15  ;;  %v1978_v43 = vadd.f32 %v1970_v39, %v4820_v1  ;;  %v2011_v41 = vadd.f32 %v2710_v42, %v1922_v50  ;;  %v1971_v18 = vmul.f32 %v2714_v20, %v1959_v48 }
 0x248   : > { %v2155_v34 = vadd.f32 %v2147_v53, %v2066_v60  ;;  %2725 = vrcp.f32 %v2098_v4  ;;  %v1923_v51 = vadd.f32 %v2720_v32, %v4549_v45  ;;  %v2099_v22 = vadd.f32 %v4821_v54, %v2010_v0 }
 0x249   : > { %v2722_v44 = vpop.eup %2721  ;;  %2176 = vst [vmem:[%s4545_s12 + $0x8] sm:$0xff] %v2168_v29  ;;  %v2067_v11 = vadd.f32 %v2059_v24, %v1978_v43  ;;  %v2100_v56 = vadd.f32 %v4822_v57, %v2011_v41  ;;  %v2060_v45 = vmul.f32 %v2710_v42, %v2048_v58  ;;  %v1979_v7 = vadd.f32 %v1971_v18, %v4516_v17 }
 0x24a   : > { %v2169_v49 = vmul.f32 %v2722_v44, %v2153_v9  ;;  %v2012_v35 = vadd.f32 %v2716_v30, %v1923_v51  ;;  %2727 = vrcp.f32 %v2099_v22  ;;  %v2149_v25 = vmul.f32 %v4822_v57, %v2137_v52 }
 0x24b   : > { %v2156_v23 = vadd.f32 %v2148_v61, %v2067_v11  ;;  %v2724_v55 = vpop.eup %2723  ;;  %2729 = vrcp.f32 %v2100_v56  ;;  %v2068_v38 = vadd.f32 %v2060_v45, %v1979_v7  ;;  %v2051_v63 = vpop.f32.mrf.mxu3 }
 0x24c   : > { %2177 = vst [vmem:[%s4545_s12 + $0x10] sm:$0xff] %v2169_v49  ;;  %v2101_v31 = vadd.f32 %v4501_v33, %v2012_v35  ;;  %v2170_v15 = vmul.f32 %v2724_v55, %v2154_v59  ;;  %v2140_v3 = vpop.f32.mrf.mxu0  ;;  %v2061_v21 = vmul.f32 %v2716_v30, %v2051_v63 }
 0x24d   : > { %v2157_v26 = vadd.f32 %v2149_v25, %v2068_v38  ;;  %v2150_v36 = vmul.f32 %v4501_v33, %v2140_v3 }
 0x24e   : > { %v2726_v14 = vpop.eup %2725  ;;  %2178 = vst [vmem:[%s4545_s12 + $0x18] sm:$0xff] %v2170_v15  ;;  %v1962_v37 = vpop.f32.mrf.mxu2  ;;  %2731 = vrcp.f32 %v2101_v31 }
 0x24f   : > { %v2171_v27 = vmul.f32 %v2726_v14, %v2155_v34  ;;  %v1972_v10 = vmul.f32 %v2720_v32, %v1962_v37 }
 0x250   : > { %v2728_v28 = vpop.eup %2727 }
 0x251   : > { %2179 = vst [vmem:[%s4545_s12 + $0x20] sm:$0xff] %v2171_v27  ;;  %v2730_v42 = vpop.eup %2729  ;;  %v2172_v17 = vmul.f32 %v2728_v28, %v2156_v23  ;;  %v1980_v62 = vadd.f32 %v1972_v10, %v4560_v8 }
 0x252   : > { %v2173_v16 = vmul.f32 %v2730_v42, %v2157_v26 }
 0x253   : > { %2180 = vst [vmem:[%s4545_s12 + $0x28] sm:$0xff] %v2172_v17  ;;  %v2069_v53 = vadd.f32 %v2061_v21, %v1980_v62 }
 0x254   : > { %2181 = vst [vmem:[%s4545_s12 + $0x30] sm:$0xff] %v2173_v16  ;;  %v2732_v9 = vpop.eup %2731 }
 0x255   : > { %v2158_v6 = vadd.f32 %v2150_v36, %v2069_v53 }
 0x257   : > { %v2174_v20 = vmul.f32 %v2732_v9, %v2158_v6 }
 0x259   : > { %2182 = vst [vmem:[%s4545_s12 + $0x38] sm:$0xff] %v2174_v20 }
 0x25a PF: > { %s17_s24 = sadd.s32 1, %s2747_s24  }
 0x25b   : > { %p14_p4 = scmp.ge.s32.totalorder %s17_s24, 4  }
 0x25d   :  { %16 = sbr.rel (!%p14_p4) target bundleno = 1 (0x1), region = 98 }

// kernel: nat2d_forward.5
= control target key start
LH: loop header
LB: loop body
LE: loop exit
PB: predicated region body
PF: predicated region fallthrough
CT: control target
= control target key end

     0   :  { %8 = vsyncpa [#allocation3], 0  ;;  %s987_s0 = inlined_call_operand.vmem [shape: f32[512,32], index: 0, kind: input, shape index: {}]   ;;  %s988_s1 = inlined_call_operand.vmem [shape: f32[32,32], index: 1, kind: input, shape index: {}]   ;;  %s989_s2 = inlined_call_operand.vmem [shape: f32[1,32], index: 2, kind: input, shape index: {}]   ;;  %s990_s3 = inlined_call_operand.hbm [shape: f32[512,32], index: 3, kind: output, shape index: {}]  }
   0x1   :  { %10 = vsyncpa [#allocation3 + $0x1], 0  ;;  %s717_s12 = smov 0   ;;  %s719_s13 = smov 0  }
   0x2   :  { %s721_s14 = smov 0   ;;  %s723_s15 = smov 0  }
   0x3 LB: > { %s738_s16 = sadd.s32 4294967295, %s693_s15   ;;  %s532_s17 = sadd.s32 4294967294, %s693_s15   ;;  %s693_s15 = sphi %s723_s15, %s996_s15   ;;  %s689_s14 = sphi %s721_s14, %s995_s14   ;;  %s685_s13 = sphi %s719_s13, %s994_s13   ;;  %s681_s12 = sphi %s717_s12, %s993_s12  }
   0x4   : > { %s742_s18 = sadd.s32 1, %s693_s15   ;;  %s91_s19 = sadd.s32 1, %s689_s14 }
   0x5   : > { %s88_s20 = ssub.s32 %s693_s15, %s742_s18  ;;  %p101_p0 = scmp.ne.s32.totalorder %s689_s14, %s685_s13 }
   0x6   : > { %p89_p1 = scmp.eq.s32.totalorder %s88_s20, 0  ;;  %p102_p2 = scmp.eq.s32.totalorder %s738_s16, 1 }
   0x7   : > { %p107_p3 = scmp.ne.s32.totalorder %s685_s13, %s681_s12  ;;  %p108_p4 = scmp.eq.s32.totalorder %s532_s17, 1 }
   0x8   : > { %s753_s21 = scalar_select %p89_p1, %s689_s14, %s91_s19  }
   0x9   : > { %p755_p5 = por %p102_p2, %p101_p0  ;;  %p759_p6 = por %p108_p4, %p107_p3 }
   0xa   : > { %p535_p7 = scmp.ge.s32.totalorder %s693_s15, 1  ;;  %p141_p8 = scmp.lt.s32.totalorder %s693_s15, 3 }
   0xc   : > { %p142_p9 = pnand %p535_p7, %p141_p8 }
   0xd   : > { %s537_s28 = sshll.u32 (!%p142_p9), %s738_s16, 5  ;;  %s162_s10 = sand.u32 (!%p142_p9), 1, %s685_s13  }
   0xe   : > { %145 = sbr.rel (%p142_p9) target bundleno = 222 (0xde), region = 32  ;;  %p166_p10 = scmp.lt.s32.totalorder (!%p142_p9), %s537_s28, 63 }
   0xf   : > { %s536_s11 = sshll.u32 (!%p142_p9), %s162_s10, 8  ;;  %s576_s24 = sshll.u32 (!%p142_p9), %s738_s16, 8 }
  0x10   : > { %s857_s20 = scalar_lea.vmem (!%p142_p9), [#allocation2], %s536_s11  ;;  %s466_s27 = scalar_lea.hbm (!%p142_p9), %s990_s3, %s576_s24 }
  0x11   : > { %s467_s16 = sshll.u32 (!%p142_p9), %s857_s20, 4  ;;  %s455_s29 = scalar_lea.sflag (!%p142_p9), [#allocation3], %s162_s10  ;;  %s468_s16 = int_to_ptr.vmem [resolvable:$true] %s467_s16 }
  0x12   : > { %s651_s7 = scalar_lea.hbm (!%p142_p9), %s990_s3, 512 }
  0x13   : > { %v207_v0 = vld [vmem:[%s988_s1 + $0x18] sm:$0xff]  ;;  %v206_v1 = vld [vmem:[%s988_s1 + $0x10] sm:$0xff]  ;;  %v205_v2 = vld [vmem:[%s988_s1 + $0x8] sm:$0xff]  ;;  %s998_s28 = smov (!%p166_p10, %s537_s28), 63  ;;  %vm212_vm0 = vcmask 261120  }
  0x14   : > { %578 = vmatpush.msra.mxu2 %v207_v0  ;;  %579 = vmatpush.msra.mxu3 %v207_v0  ;;  %v204_v3 = vld [vmem:[%s988_s1] sm:$0xff]  ;;  %s538_s6 = sshll.u32 %s998_s28, 3  ;;  %s469_s28 = sshll.u32 %s466_s27, 4  ;;  %s470_s28 = int_to_ptr.hbm [resolvable:$true] %s469_s28 }
  0x15   : > { %321 = vmatpush.msra.mxu0 %v207_v0  ;;  %577 = vmatpush.msra.mxu1 %v207_v0  ;;  %s781_s9 = scalar_lea.vmem %s987_s0, %s538_s6  ;;  %v853_v36 = vld [vmem:[%s989_s2] ss:$0 sm:$0xff]  ;;  %s645_s30 = sshra.s32 %s470_s28, 4  ;;  %s646_s30 = int_to_ptr.hbm [resolvable:$true] %s645_s30 }
  0x16   : > { %581 = vmatpush.msra.mxu2 %v206_v1  ;;  %582 = vmatpush.msra.mxu3 %v206_v1  ;;  %v188_v4 = vld [vmem:[%s781_s9 + $0x80] sm:$0xff]  ;;  %v189_v8 = vld [vmem:[%s781_s9 + $0x88] sm:$0xff]  ;;  %v190_v12 = vld [vmem:[%s781_s9 + $0x90] sm:$0xff]  ;;  %s647_s4 = scalar_lea.hbm %s646_s30, 256  ;;  %p652_p0 = scmp.lt.s32.totalorder %s646_s30, %s990_s3 }
  0x17   : > { %322 = vmatpush.msra.mxu0 %v206_v1  ;;  %580 = vmatpush.msra.mxu1 %v206_v1  ;;  %v196_v5 = vld [vmem:[%s781_s9 + $0xc0] sm:$0xff]  ;;  %v197_v9 = vld [vmem:[%s781_s9 + $0xc8] sm:$0xff]  ;;  %v198_v13 = vld [vmem:[%s781_s9 + $0xd0] sm:$0xff]  ;;  %p648_p11 = scmp.ne.s32.totalorder %s646_s30, %s647_s4  ;;  %p653_p1 = scmp.lt.s32.totalorder %s651_s7, %s647_s4 }
  0x18   : > { %584 = vmatpush.msra.mxu2 %v205_v2  ;;  %585 = vmatpush.msra.mxu3 %v205_v2  ;;  %v172_v6 = vld [vmem:[%s781_s9] sm:$0xff]  ;;  %v173_v10 = vld [vmem:[%s781_s9 + $0x8] sm:$0xff]  ;;  %v174_v14 = vld [vmem:[%s781_s9 + $0x10] sm:$0xff] }
  0x19   : > { %323 = vmatpush.msra.mxu0 %v205_v2  ;;  %583 = vmatpush.msra.mxu1 %v205_v2  ;;  %v180_v7 = vld [vmem:[%s781_s9 + $0x40] sm:$0xff]  ;;  %v181_v11 = vld [vmem:[%s781_s9 + $0x48] sm:$0xff]  ;;  %v182_v15 = vld [vmem:[%s781_s9 + $0x50] sm:$0xff]  ;;  %p649_p12 = pnand %p648_p11, %p755_p5  ;;  %p654_p2 = por %p653_p1, %p652_p0 }
  0x1a   : > { %587 = vmatpush.msra.mxu2 %v204_v3  ;;  %588 = vmatpush.msra.mxu3 %v204_v3  ;;  %v191_v16 = vld [vmem:[%s781_s9 + $0x98] sm:$0xff]  ;;  %v192_v20 = vld [vmem:[%s781_s9 + $0xa0] sm:$0xff]  ;;  %v193_v24 = vld [vmem:[%s781_s9 + $0xa8] sm:$0xff] }
  0x1b   : > { %555 = vmatmul.msk.f32.vlgmr.msra.gmra.mxu2 %vm212_vm0, %v188_v4  ;;  %563 = vmatmul.msk.f32.vlgmr.msra.gmra.mxu3 %vm212_vm0, %v196_v5  ;;  %v199_v17 = vld [vmem:[%s781_s9 + $0xd8] sm:$0xff]  ;;  %v200_v21 = vld [vmem:[%s781_s9 + $0xe0] sm:$0xff]  ;;  %v201_v25 = vld [vmem:[%s781_s9 + $0xe8] sm:$0xff]  ;;  %p650_p13 = pneg %p649_p12 }
  0x1c   : > { %324 = vmatpush.msra.mxu0 %v204_v3  ;;  %586 = vmatpush.msra.mxu1 %v204_v3  ;;  %v175_v18 = vld [vmem:[%s781_s9 + $0x18] sm:$0xff]  ;;  %v176_v22 = vld [vmem:[%s781_s9 + $0x20] sm:$0xff]  ;;  %v177_v26 = vld [vmem:[%s781_s9 + $0x28] sm:$0xff] }
  0x1d   : > { %539 = vmatmul.msk.f32.vlgmr.msra.gmra.mxu0 %vm212_vm0, %v172_v6  ;;  %547 = vmatmul.msk.f32.vlgmr.msra.gmra.mxu1 %vm212_vm0, %v180_v7  ;;  %v183_v19 = vld [vmem:[%s781_s9 + $0x58] sm:$0xff]  ;;  %v184_v23 = vld [vmem:[%s781_s9 + $0x60] sm:$0xff]  ;;  %v185_v27 = vld [vmem:[%s781_s9 + $0x68] sm:$0xff]  ;;  %p655_p3 = pnand %p654_p2, %p650_p13 }
  0x1e   : > { %v194_v28 = vld [vmem:[%s781_s9 + $0xb0] sm:$0xff]  ;;  %v195_v32 = vld [vmem:[%s781_s9 + $0xb8] sm:$0xff] }
  0x1f   : > { %v202_v29 = vld [vmem:[%s781_s9 + $0xf0] sm:$0xff]  ;;  %v203_v33 = vld [vmem:[%s781_s9 + $0xf8] sm:$0xff] }
  0x20   : > { %v178_v30 = vld [vmem:[%s781_s9 + $0x30] sm:$0xff]  ;;  %v179_v34 = vld [vmem:[%s781_s9 + $0x38] sm:$0xff] }
  0x21   : > { %v186_v31 = vld [vmem:[%s781_s9 + $0x70] sm:$0xff]  ;;  %v187_v35 = vld [vmem:[%s781_s9 + $0x78] sm:$0xff] }
  0x23   : > { %556 = vmatmul.msk.f32.gmra.mxu2 %vm212_vm0, %v189_v8  ;;  %564 = vmatmul.msk.f32.gmra.mxu3 %vm212_vm0, %v197_v9 }
  0x25   : > { %540 = vmatmul.msk.f32.gmra.mxu0 %vm212_vm0, %v173_v10  ;;  %548 = vmatmul.msk.f32.gmra.mxu1 %vm212_vm0, %v181_v11 }
  0x2b   : > { %557 = vmatmul.msk.f32.gmra.mxu2 %vm212_vm0, %v190_v12  ;;  %565 = vmatmul.msk.f32.gmra.mxu3 %vm212_vm0, %v198_v13 }
  0x2d   : > { %541 = vmatmul.msk.f32.gmra.mxu0 %vm212_vm0, %v174_v14  ;;  %549 = vmatmul.msk.f32.gmra.mxu1 %vm212_vm0, %v182_v15 }
  0x33   : > { %558 = vmatmul.msk.f32.gmra.mxu2 %vm212_vm0, %v191_v16  ;;  %566 = vmatmul.msk.f32.gmra.mxu3 %vm212_vm0, %v199_v17 }
  0x35   : > { %542 = vmatmul.msk.f32.gmra.mxu0 %vm212_vm0, %v175_v18  ;;  %550 = vmatmul.msk.f32.gmra.mxu1 %vm212_vm0, %v183_v19 }
  0x3b   : > { %559 = vmatmul.msk.f32.gmra.mxu2 %vm212_vm0, %v192_v20  ;;  %567 = vmatmul.msk.f32.gmra.mxu3 %vm212_vm0, %v200_v21 }
  0x3d   : > { %543 = vmatmul.msk.f32.gmra.mxu0 %vm212_vm0, %v176_v22  ;;  %551 = vmatmul.msk.f32.gmra.mxu1 %vm212_vm0, %v184_v23 }
  0x43   : > { %560 = vmatmul.msk.f32.gmra.mxu2 %vm212_vm0, %v193_v24  ;;  %568 = vmatmul.msk.f32.gmra.mxu3 %vm212_vm0, %v201_v25 }
  0x45   : > { %544 = vmatmul.msk.f32.gmra.mxu0 %vm212_vm0, %v177_v26  ;;  %552 = vmatmul.msk.f32.gmra.mxu1 %vm212_vm0, %v185_v27 }
  0x4b   : > { %561 = vmatmul.msk.f32.gmra.mxu2 %vm212_vm0, %v194_v28  ;;  %569 = vmatmul.msk.f32.gmra.mxu3 %vm212_vm0, %v202_v29 }
  0x4d   : > { %545 = vmatmul.msk.f32.gmra.mxu0 %vm212_vm0, %v178_v30  ;;  %553 = vmatmul.msk.f32.gmra.mxu1 %vm212_vm0, %v186_v31 }
  0x53   : > { %562 = vmatmul.msk.f32.gmra.mxu2 %vm212_vm0, %v195_v32  ;;  %570 = vmatmul.msk.f32.gmra.mxu3 %vm212_vm0, %v203_v33 }
  0x55   : > { %546 = vmatmul.msk.f32.gmra.mxu0 %vm212_vm0, %v179_v34  ;;  %554 = vmatmul.msk.f32.gmra.mxu1 %vm212_vm0, %v187_v35 }
  0x9a   : > { %v326_v37 = vpop.f32.mrf.mxu0  ;;  %v350_v38 = vpop.f32.mrf.mxu1 }
  0x9b   : > { %v327_v39 = vadd.f32 %v853_v36, %v326_v37  ;;  %v351_v40 = vadd.f32 %v853_v36, %v350_v38 }
  0x9d   : > { %422 = vst.msk [vmem:[%s857_s20] sm:$0xff] %vm212_vm0, %v327_v39 }
  0x9e   : > { %430 = vst.msk [vmem:[%s857_s20 + $0x40] sm:$0xff] %vm212_vm0, %v351_v40  ;;  %v374_v41 = vpop.f32.mrf.mxu2  ;;  %v398_v42 = vpop.f32.mrf.mxu3 }
  0x9f   : > { %v375_v43 = vadd.f32 %v853_v36, %v374_v41  ;;  %v399_v44 = vadd.f32 %v853_v36, %v398_v42 }
  0xa1   : > { %438 = vst.msk [vmem:[%s857_s20 + $0x80] sm:$0xff] %vm212_vm0, %v375_v43 }
  0xa2   : > { %446 = vst.msk [vmem:[%s857_s20 + $0xc0] sm:$0xff] %vm212_vm0, %v399_v44  ;;  %v329_v45 = vpop.f32.mrf.mxu0  ;;  %v353_v46 = vpop.f32.mrf.mxu1 }
  0xa3   : > { %v330_v47 = vadd.f32 %v853_v36, %v329_v45  ;;  %v354_v48 = vadd.f32 %v853_v36, %v353_v46 }
  0xa5   : > { %423 = vst.msk [vmem:[%s857_s20 + $0x8] sm:$0xff] %vm212_vm0, %v330_v47 }
  0xa6   : > { %431 = vst.msk [vmem:[%s857_s20 + $0x48] sm:$0xff] %vm212_vm0, %v354_v48  ;;  %v377_v49 = vpop.f32.mrf.mxu2  ;;  %v401_v50 = vpop.f32.mrf.mxu3 }
  0xa7   : > { %v378_v51 = vadd.f32 %v853_v36, %v377_v49  ;;  %v402_v52 = vadd.f32 %v853_v36, %v401_v50 }
  0xa9   : > { %439 = vst.msk [vmem:[%s857_s20 + $0x88] sm:$0xff] %vm212_vm0, %v378_v51 }
  0xaa   : > { %447 = vst.msk [vmem:[%s857_s20 + $0xc8] sm:$0xff] %vm212_vm0, %v402_v52  ;;  %v332_v53 = vpop.f32.mrf.mxu0  ;;  %v356_v54 = vpop.f32.mrf.mxu1 }
  0xab   : > { %v333_v55 = vadd.f32 %v853_v36, %v332_v53  ;;  %v357_v56 = vadd.f32 %v853_v36, %v356_v54 }
  0xad   : > { %424 = vst.msk [vmem:[%s857_s20 + $0x10] sm:$0xff] %vm212_vm0, %v333_v55 }
  0xae   : > { %432 = vst.msk [vmem:[%s857_s20 + $0x50] sm:$0xff] %vm212_vm0, %v357_v56  ;;  %v380_v57 = vpop.f32.mrf.mxu2  ;;  %v404_v58 = vpop.f32.mrf.mxu3 }
  0xaf   : > { %v381_v59 = vadd.f32 %v853_v36, %v380_v57  ;;  %v405_v60 = vadd.f32 %v853_v36, %v404_v58 }
  0xb1   : > { %440 = vst.msk [vmem:[%s857_s20 + $0x90] sm:$0xff] %vm212_vm0, %v381_v59 }
  0xb2   : > { %448 = vst.msk [vmem:[%s857_s20 + $0xd0] sm:$0xff] %vm212_vm0, %v405_v60  ;;  %v335_v61 = vpop.f32.mrf.mxu0  ;;  %v359_v62 = vpop.f32.mrf.mxu1 }
  0xb3   : > { %v336_v63 = vadd.f32 %v853_v36, %v335_v61  ;;  %v360_v0 = vadd.f32 %v853_v36, %v359_v62 }
  0xb5   : > { %425 = vst.msk [vmem:[%s857_s20 + $0x18] sm:$0xff] %vm212_vm0, %v336_v63 }
  0xb6   : > { %433 = vst.msk [vmem:[%s857_s20 + $0x58] sm:$0xff] %vm212_vm0, %v360_v0  ;;  %v383_v1 = vpop.f32.mrf.mxu2  ;;  %v407_v2 = vpop.f32.mrf.mxu3 }
  0xb7   : > { %v384_v3 = vadd.f32 %v853_v36, %v383_v1  ;;  %v408_v4 = vadd.f32 %v853_v36, %v407_v2 }
  0xb9   : > { %441 = vst.msk [vmem:[%s857_s20 + $0x98] sm:$0xff] %vm212_vm0, %v384_v3 }
  0xba   : > { %449 = vst.msk [vmem:[%s857_s20 + $0xd8] sm:$0xff] %vm212_vm0, %v408_v4  ;;  %v338_v5 = vpop.f32.mrf.mxu0  ;;  %v362_v6 = vpop.f32.mrf.mxu1 }
  0xbb   : > { %v339_v7 = vadd.f32 %v853_v36, %v338_v5  ;;  %v363_v8 = vadd.f32 %v853_v36, %v362_v6 }
  0xbd   : > { %426 = vst.msk [vmem:[%s857_s20 + $0x20] sm:$0xff] %vm212_vm0, %v339_v7 }
  0xbe   : > { %434 = vst.msk [vmem:[%s857_s20 + $0x60] sm:$0xff] %vm212_vm0, %v363_v8  ;;  %v386_v9 = vpop.f32.mrf.mxu2  ;;  %v410_v10 = vpop.f32.mrf.mxu3 }
  0xbf   : > { %v387_v11 = vadd.f32 %v853_v36, %v386_v9  ;;  %v411_v12 = vadd.f32 %v853_v36, %v410_v10 }
  0xc1   : > { %442 = vst.msk [vmem:[%s857_s20 + $0xa0] sm:$0xff] %vm212_vm0, %v387_v11 }
  0xc2   : > { %450 = vst.msk [vmem:[%s857_s20 + $0xe0] sm:$0xff] %vm212_vm0, %v411_v12  ;;  %v341_v13 = vpop.f32.mrf.mxu0  ;;  %v365_v14 = vpop.f32.mrf.mxu1 }
  0xc3   : > { %v342_v15 = vadd.f32 %v853_v36, %v341_v13  ;;  %v366_v16 = vadd.f32 %v853_v36, %v365_v14 }
  0xc5   : > { %427 = vst.msk [vmem:[%s857_s20 + $0x28] sm:$0xff] %vm212_vm0, %v342_v15 }
  0xc6   : > { %435 = vst.msk [vmem:[%s857_s20 + $0x68] sm:$0xff] %vm212_vm0, %v366_v16  ;;  %v389_v17 = vpop.f32.mrf.mxu2  ;;  %v413_v18 = vpop.f32.mrf.mxu3 }
  0xc7   : > { %v390_v19 = vadd.f32 %v853_v36, %v389_v17  ;;  %v414_v20 = vadd.f32 %v853_v36, %v413_v18 }
  0xc9   : > { %443 = vst.msk [vmem:[%s857_s20 + $0xa8] sm:$0xff] %vm212_vm0, %v390_v19 }
  0xca   : > { %451 = vst.msk [vmem:[%s857_s20 + $0xe8] sm:$0xff] %vm212_vm0, %v414_v20  ;;  %v344_v21 = vpop.f32.mrf.mxu0  ;;  %v368_v22 = vpop.f32.mrf.mxu1 }
  0xcb   : > { %v345_v23 = vadd.f32 %v853_v36, %v344_v21  ;;  %v369_v24 = vadd.f32 %v853_v36, %v368_v22 }
  0xcd   : > { %428 = vst.msk [vmem:[%s857_s20 + $0x30] sm:$0xff] %vm212_vm0, %v345_v23 }
  0xce   : > { %436 = vst.msk [vmem:[%s857_s20 + $0x70] sm:$0xff] %vm212_vm0, %v369_v24  ;;  %v392_v25 = vpop.f32.mrf.mxu2  ;;  %v416_v26 = vpop.f32.mrf.mxu3 }
  0xcf   : > { %v393_v27 = vadd.f32 %v853_v36, %v392_v25  ;;  %v417_v28 = vadd.f32 %v853_v36, %v416_v26 }
  0xd1   : > { %444 = vst.msk [vmem:[%s857_s20 + $0xb0] sm:$0xff] %vm212_vm0, %v393_v27 }
  0xd2   : > { %452 = vst.msk [vmem:[%s857_s20 + $0xf0] sm:$0xff] %vm212_vm0, %v417_v28  ;;  %v347_v29 = vpop.f32.mrf.mxu0  ;;  %v371_v30 = vpop.f32.mrf.mxu1 }
  0xd3   : > { %v348_v31 = vadd.f32 %v853_v36, %v347_v29  ;;  %v372_v32 = vadd.f32 %v853_v36, %v371_v30 }
  0xd5   : > { %429 = vst.msk [vmem:[%s857_s20 + $0x38] sm:$0xff] %vm212_vm0, %v348_v31 }
  0xd6   : > { %437 = vst.msk [vmem:[%s857_s20 + $0x78] sm:$0xff] %vm212_vm0, %v372_v32  ;;  %v395_v33 = vpop.f32.mrf.mxu2  ;;  %v419_v34 = vpop.f32.mrf.mxu3 }
  0xd7   : > { %v396_v35 = vadd.f32 %v853_v36, %v395_v33  ;;  %v420_v37 = vadd.f32 %v853_v36, %v419_v34 }
  0xd9   : > { %445 = vst.msk [vmem:[%s857_s20 + $0xb8] sm:$0xff] %vm212_vm0, %v396_v35 }
  0xda   : > { %453 = vst.msk [vmem:[%s857_s20 + $0xf8] sm:$0xff] %vm212_vm0, %v420_v37 }
  0xdb   : > { %658 = shalt.err (!%p655_p3)
}
  0xdc   : > { %s695_s10 = smov 128   ;;  %s696_s11 = smov 8  }
  0xdd   : > { %589 = dma.vmem_to_hbm [thread:$0]  (%p755_p5), %s468_s16, 4096, %s470_s28, %s455_s29, %s695_s10, %s695_s10, %s696_s11  }
  0xde PF: > { %p595_p4 = scmp.ge.s32.totalorder %s693_s15, 2  ;;  %s484_s17 = sand.u32 1, %s681_s12  }
  0xdf   : > { %s485_s19 = scalar_lea.sflag [#allocation3], %s484_s17 }
  0xe0   : > { %p592_p7 = pnand %p595_p4, %p759_p6 }
  0xe2   : > { %p593_p8 = pneg %p592_p7 }
  0xe4   : > { %676 = dma.done.wait (%p593_p8), %s485_s19, 4096  }
  0xe5   : > { %678 = vsyncadd (%p593_p8), %s485_s19, 4294963200  ;;  %p13_p9 = scmp.ge.s32.totalorder %s742_s18, 4   ;;  %s993_s12 = smov %s685_s13 }
  0xe6   : > { %s994_s13 = smov %s689_s14  ;;  %s995_s14 = smov %s753_s21 }
  0xe7   : > { %s996_s15 = smov %s742_s18  ;;  %15 = sbr.rel (!%p13_p9) target bundleno = 3 (0x3), region = 67 }
  0xec   :  { %491 = vsyncpa [#allocation3], 1 }
  0xed   :  { %493 = vsyncpa [#allocation3 + $0x1], 1 }

</bundles_post_ra>
